<compile_context>
chip_gen: v5e
topology: v5e:2x2
jax: 0.10.0
libtpu: 0.0.40
codegen_flags: <defaults>
</compile_context>

<pallas_src>
import functools

import numpy as np
import jax
import jax.numpy as jnp
from jax.experimental import pallas as pl
from jax.experimental.pallas import tpu as pltpu


# ----------------------------- configuration ------------------------------
SAMPLE_POINT_DIM = 3      # input channels (e.g. xyz)
TEXTURE_FEATURES = 8      # output channels
N_LAYERS = 8              # hidden layers
N_FREQ = 4                # positional-encoding freqs (module default 10; small config)
NGF = 64                  # hidden width (module default 256; small config)
SKIPS = (4,)              # skip-connection layer indices (module: [4])
EMBED_DIM = SAMPLE_POINT_DIM * (1 + 2 * N_FREQ)   # NeRF embedder out_dim (= 27)
EMBED_PAD = 32            # embedding padded to a sublane-aligned channel count
NEG_SLOPE = 0.01          # F.leaky_relu default


def _embed_channels_first(x):
    """Reference NeRF positional encoding along the channel axis.

    x: (..., C, P) -> (..., C*(1+2*N_FREQ), P) with channel order
    [x, sin(2^0 x), cos(2^0 x), sin(2^1 x), cos(2^1 x), ...]."""
    feats = [x]
    for k in range(N_FREQ):
        fx = x * (2.0 ** k)
        feats.append(jnp.sin(fx))
        feats.append(jnp.cos(fx))
    return jnp.concatenate(feats, axis=-2)


def _embedding_tables():
    """Constant tables so the kernel builds the (padded) embedding with one
    matmul + one sin pass + a single select (no sublane concat, no blend)."""
    sel = np.zeros((EMBED_PAD, SAMPLE_POINT_DIM), np.float32)   # scaled copies
    phase = np.zeros((EMBED_PAD, 1), np.float32)                # 0 -> sin, pi/2 -> cos
    isx = np.zeros((EMBED_PAD, 1), np.float32)                  # 1.0 -> raw x row
    r = 0
    for c in range(SAMPLE_POINT_DIM):
        sel[r, c] = 1.0
        isx[r, 0] = 1.0
        r += 1
    for k in range(N_FREQ):
        for fn in ("sin", "cos"):
            for c in range(SAMPLE_POINT_DIM):
                sel[r, c] = 2.0 ** k
                phase[r, 0] = 0.0 if fn == "sin" else np.pi / 2.0
                r += 1
    assert r == EMBED_DIM
    # rows EMBED_DIM..EMBED_PAD-1 stay zero: scaled=0, sin(0)=0, isx=0 -> emb row == 0
    return jnp.asarray(sel), jnp.asarray(phase), jnp.asarray(isx)


# --------------------------------- kernel ----------------------------------
def _nettexture_kernel(x_ref, sel_ref, phase_ref, isx_ref,
                       w_emb_ref, w_hid_ref, w_out_ref, b_hid_ref, b_out_ref,
                       out_ref, *, compute_dtype):
    x = x_ref[0].astype(jnp.float32)                       # (C, T)

    # Positional embedding: per-row scaled copy of an input channel (MXU),
    # one f32 sin pass (cos via +pi/2 phase), then a single select to pick
    # the raw-x rows.  Padded rows (27..31) are exact zeros.
    scaled = jnp.dot(sel_ref[...], x,
                     preferred_element_type=jnp.float32)   # (EMBED_PAD, T)
    trig = jnp.sin(scaled + phase_ref[...])                # (EMBED_PAD, T), f32
    emb = jnp.where(isx_ref[...] > 0.0, scaled, trig)      # select, no blend
    emb_bf = emb.astype(jnp.bfloat16)

    b_hid = b_hid_ref[...].astype(compute_dtype)           # (NGF, N_LAYERS)

    h_bf = None
    emb_idx = 0
    hid_idx = 0
    for i in range(N_LAYERS):
        if i == 0:
            acc = jnp.dot(w_emb_ref[emb_idx], emb_bf,
                          preferred_element_type=jnp.float32)
            emb_idx += 1
        else:
            acc = jnp.dot(w_hid_ref[hid_idx], h_bf,
                          preferred_element_type=jnp.float32)
            hid_idx += 1
            if (i - 1) in SKIPS:
                # skip concat [embed, h] folded into a second matmul
                acc = acc + jnp.dot(w_emb_ref[emb_idx], emb_bf,
                                    preferred_element_type=jnp.float32)
                emb_idx += 1
        # Epilogue (bias + leaky_relu) in compute_dtype: bf16 halves the VALU
        # op count and vst traffic on v6e/v7x; f32 path is for v5e.
        a = acc.astype(compute_dtype) + b_hid[:, i:i + 1]   # (NGF, T) + (NGF, 1)
        h = jnp.maximum(a, NEG_SLOPE * a)                   # leaky_relu
        h_bf = h.astype(jnp.bfloat16)

    y = jnp.dot(w_out_ref[...], h_bf, preferred_element_type=jnp.float32)
    y = y + b_out_ref[...]                                  # (TEX, T) + (TEX, 1)
    out_ref[0] = y.astype(out_ref.dtype)


# ------------------------------- parameters --------------------------------
def init_params(key):
    """Logical (PyTorch-like) params: list of (weight (Cout, Cin), bias (Cout,)).

    Each 1x1 Conv2d(Cin, Cout) is stored as conv_weight[:, :, 0, 0] plus bias;
    init matches nn.Conv2d's default uniform(-1/sqrt(Cin), 1/sqrt(Cin))."""
    in_dims = []
    for i in range(N_LAYERS):
        if i == 0:
            in_dims.append(EMBED_DIM)
        elif (i - 1) in SKIPS:
            in_dims.append(NGF + EMBED_DIM)
        else:
            in_dims.append(NGF)

    params = []
    keys = jax.random.split(key, N_LAYERS + 1)
    for i, cin in enumerate(in_dims):
        kw, kb = jax.random.split(keys[i])
        s = float(cin) ** -0.5
        params.append((jax.random.uniform(kw, (NGF, cin), jnp.float32, -s, s),
                       jax.random.uniform(kb, (NGF,), jnp.float32, -s, s)))
    kw, kb = jax.random.split(keys[-1])
    s = float(NGF) ** -0.5
    params.append((jax.random.uniform(kw, (TEXTURE_FEATURES, NGF), jnp.float32, -s, s),
                   jax.random.uniform(kb, (TEXTURE_FEATURES,), jnp.float32, -s, s)))
    return params


def pack_params(params):
    """Pack logical params into kernel operands (bf16 weights, f32 biases).

    The post-skip layer's (NGF, NGF+EMBED_DIM) weight is split: first EMBED_DIM
    input columns act on the embedding half of cat([embed, h]), the rest on h.
    Embed-consuming weights are zero-padded from EMBED_DIM to EMBED_PAD cols."""
    w_emb_list, w_hid_list, b_list = [], [], []
    for i in range(N_LAYERS):
        w, b = params[i]
        if i == 0:
            w_emb_list.append(w)
        elif (i - 1) in SKIPS:
            w_emb_list.append(w[:, :EMBED_DIM])
            w_hid_list.append(w[:, EMBED_DIM:])
        else:
            w_hid_list.append(w)
        b_list.append(b)
    w_out, b_out = params[N_LAYERS]

    pad = EMBED_PAD - EMBED_DIM
    w_emb_list = [jnp.pad(w, ((0, 0), (0, pad))) for w in w_emb_list]

    w_emb = jnp.stack(w_emb_list).astype(jnp.bfloat16)      # (1+len(SKIPS), NGF, EMBED_PAD)
    w_hid = jnp.stack(w_hid_list).astype(jnp.bfloat16)      # (N_LAYERS-1, NGF, NGF)
    w_out = w_out.astype(jnp.bfloat16)                      # (TEX, NGF)
    b_hid = jnp.stack(b_list, axis=1).astype(jnp.float32)   # (NGF, N_LAYERS)
    b_out = b_out.reshape(TEXTURE_FEATURES, 1).astype(jnp.float32)
    return (w_emb, w_hid, w_out, b_hid, b_out)


# -------------------------------- wrapper -----------------------------------
def net_texture_forward(x_nchw, packed, *, tm=8192, bf16_epilogue=True):
    """x_nchw: (N, SAMPLE_POINT_DIM, H, W) -> (N, TEXTURE_FEATURES, H, W).

    bf16_epilogue=True targets v6e/v7x (bf16 VALU); pass False on v5e."""
    n, c, hh, ww = x_nchw.shape
    assert c == SAMPLE_POINT_DIM
    hw = hh * ww

    # Spatial tile: large to amortize per-grid-step overhead; must be a
    # multiple of 128 lanes or cover the whole spatial extent.  Ragged tails
    # are handled via cdiv (the network is pointwise per pixel).
    if hw <= tm:
        thw = hw
    else:
        thw = max(128, (tm // 128) * 128)
    num_tiles = pl.cdiv(hw, thw)

    # v7x has 2 TensorCores and "parallel" grid axes shard across them:
    # keep at least 2 grid steps when the image fits a single tile.
    if n * num_tiles == 1 and hw >= 256:
        thw = max(128, ((hw // 2 + 127) // 128) * 128)
        num_tiles = pl.cdiv(hw, thw)

    grid = (n, num_tiles)

    x_rows = x_nchw.reshape(n, c, hw)                      # free reshape, no transpose
    w_emb, w_hid, w_out, b_hid, b_out = packed
    sel, phase, isx = _embedding_tables()

    pixels = n * hw
    macs_per_pixel = (EMBED_PAD * SAMPLE_POINT_DIM            # embedding scale matmul
                      + EMBED_PAD * NGF * (1 + len(SKIPS))    # embed-consuming layers
                      + NGF * NGF * (N_LAYERS - 1)            # hidden layers
                      + NGF * TEXTURE_FEATURES)               # output layer
    weight_bytes = int(sum(int(a.size) * a.dtype.itemsize for a in packed))
    cost = pl.CostEstimate(
        flops=2 * pixels * macs_per_pixel,
        transcendentals=EMBED_PAD * pixels,
        bytes_accessed=pixels * (SAMPLE_POINT_DIM + TEXTURE_FEATURES) * 4 + weight_bytes,
    )

    const2 = lambda b, i: (0, 0)
    const3 = lambda b, i: (0, 0, 0)

    kernel = functools.partial(
        _nettexture_kernel,
        compute_dtype=jnp.bfloat16 if bf16_epilogue else jnp.float32)

    out = pl.pallas_call(
        kernel,
        out_shape=jax.ShapeDtypeStruct((n, TEXTURE_FEATURES, hw), jnp.float32),
        grid_spec=pltpu.PrefetchScalarGridSpec(
            num_scalar_prefetch=0,
            grid=grid,
            in_specs=[
                pl.BlockSpec((1, c, thw), lambda b, i: (b, 0, i)),
                pl.BlockSpec(sel.shape, const2),
                pl.BlockSpec(phase.shape, const2),
                pl.BlockSpec(isx.shape, const2),
                pl.BlockSpec(w_emb.shape, const3),
                pl.BlockSpec(w_hid.shape, const3),
                pl.BlockSpec(w_out.shape, const2),
                pl.BlockSpec(b_hid.shape, const2),
                pl.BlockSpec(b_out.shape, const2),
            ],
            out_specs=pl.BlockSpec((1, TEXTURE_FEATURES, thw), lambda b, i: (b, 0, i)),
        ),
        compiler_params=pltpu.CompilerParams(
            dimension_semantics=("parallel", "parallel"),
            vmem_limit_bytes=48 * 1024 * 1024),
        cost_estimate=cost,
    )(x_rows, sel, phase, isx, w_emb, w_hid, w_out, b_hid, b_out)

    return out.reshape(n, TEXTURE_FEATURES, hh, ww)


# ------------------------------- reference ----------------------------------
def net_texture_reference(x_nchw, params):
    """Pure-JAX f32 reference of the PyTorch forward (for correctness)."""
    n, c, hh, ww = x_nchw.shape
    x = x_nchw.reshape(n, c, hh * ww)                       # (N, C, P)
    emb = _embed_channels_first(x)                          # (N, EMBED_DIM, P)
    h = emb
    for i in range(N_LAYERS):
        w, b = params[i]
        h = jnp.einsum('oc,ncp->nop', w, h) + b[None, :, None]
        h = jnp.where(h >= 0.0, h, NEG_SLOPE * h)
        if i in SKIPS:
            h = jnp.concatenate([emb, h], axis=1)
    w, b = params[N_LAYERS]
    y = jnp.einsum('oc,ncp->nop', w, h) + b[None, :, None]
    return y.reshape(n, TEXTURE_FEATURES, hh, ww)


if __name__ == "__main__":
    key = jax.random.PRNGKey(0)
    k_x, k_p = jax.random.split(key)

    # small, module-consistent shapes: batch=2, C=sample_point_dim=3, 16x16 spatial
    x = jax.random.normal(k_x, (2, SAMPLE_POINT_DIM, 16, 16), jnp.float32)
    params = init_params(k_p)
    packed = pack_params(params)

    out = net_texture_forward(x, packed)
    out = jax.block_until_ready(out)

    ref = net_texture_reference(x, params)
    assert out.shape == (2, TEXTURE_FEATURES, 16, 16)
    denom = float(jnp.max(jnp.abs(ref))) + 1e-6
    rel = float(jnp.max(jnp.abs(out - ref))) / denom
    # bf16 matmul operands / bf16 epilogue with f32 accumulation -> ~1e-2 agreement.
    assert rel < 0.05, f"mismatch vs reference: rel max err {rel}"

    print("KERNEL_OK")
</pallas_src>

<mosaic_0001>
module attributes {stable_mosaic.version = 11 : i64} {
  func.func @_nettexture_kernel(%arg0: i32, %arg1: i32, %arg2: memref<1x3x256xf32, #tpu.memory_space<vmem>>, %arg3: memref<32x3xf32, #tpu.memory_space<vmem>>, %arg4: memref<32x1xf32, #tpu.memory_space<vmem>>, %arg5: memref<32x1xf32, #tpu.memory_space<vmem>>, %arg6: memref<2x64x32xbf16, #tpu.memory_space<vmem>>, %arg7: memref<7x64x64xbf16, #tpu.memory_space<vmem>>, %arg8: memref<8x64xbf16, #tpu.memory_space<vmem>>, %arg9: memref<64x8xf32, #tpu.memory_space<vmem>>, %arg10: memref<8x1xf32, #tpu.memory_space<vmem>>, %arg11: memref<1x8x256xf32, #tpu.memory_space<vmem>>) attributes {dimension_semantics = [#tpu.dimension_semantics<parallel>, #tpu.dimension_semantics<parallel>], iteration_bounds = array<i64: 2, 1>, scalar_prefetch = 0 : i64, scratch_operands = 0 : i64, tpu.core_type = #tpu.core_type<tc>, window_params = [{transform_indices = @transform_0, window_bounds = array<i64: 1, 3, 256>}, {pipeline_mode = #tpu.pipeline_mode<synchronous>, transform_indices = @transform_1, window_bounds = array<i64: 32, 3>}, {pipeline_mode = #tpu.pipeline_mode<synchronous>, transform_indices = @transform_2, window_bounds = array<i64: 32, 1>}, {pipeline_mode = #tpu.pipeline_mode<synchronous>, transform_indices = @transform_3, window_bounds = array<i64: 32, 1>}, {pipeline_mode = #tpu.pipeline_mode<synchronous>, transform_indices = @transform_4, window_bounds = array<i64: 2, 64, 32>}, {pipeline_mode = #tpu.pipeline_mode<synchronous>, transform_indices = @transform_5, window_bounds = array<i64: 7, 64, 64>}, {pipeline_mode = #tpu.pipeline_mode<synchronous>, transform_indices = @transform_6, window_bounds = array<i64: 8, 64>}, {pipeline_mode = #tpu.pipeline_mode<synchronous>, transform_indices = @transform_7, window_bounds = array<i64: 64, 8>}, {pipeline_mode = #tpu.pipeline_mode<synchronous>, transform_indices = @transform_8, window_bounds = array<i64: 8, 1>}, {transform_indices = @transform_9, window_bounds = array<i64: 1, 8, 256>}]} {
    %c0 = arith.constant 0 : index
    %c0_0 = arith.constant 0 : index
    %c0_1 = arith.constant 0 : index
    %0 = vector.load %arg2[%c0, %c0_0, %c0_1] : memref<1x3x256xf32, #tpu.memory_space<vmem>>, vector<1x3x256xf32>
    %1 = vector.shape_cast %0 : vector<1x3x256xf32> to vector<3x256xf32>
    %c0_2 = arith.constant 0 : index
    %c0_3 = arith.constant 0 : index
    %2 = vector.load %arg3[%c0_2, %c0_3] : memref<32x3xf32, #tpu.memory_space<vmem>>, vector<32x3xf32>
    %cst = arith.constant dense<0.000000e+00> : vector<32x256xf32>
    %3 = tpu.matmul %2, %1, %cst {dimension_numbers = #tpu.dot_dimension_numbers<[1], [0], [0], [1], [0, 0, 1, 1], [], []>} : vector<32x3xf32>, vector<3x256xf32>, vector<32x256xf32> -> vector<32x256xf32>
    %c0_4 = arith.constant 0 : index
    %c0_5 = arith.constant 0 : index
    %4 = vector.load %arg4[%c0_4, %c0_5] : memref<32x1xf32, #tpu.memory_space<vmem>>, vector<32x1xf32>
    %5 = vector.broadcast %4 : vector<32x1xf32> to vector<32x256xf32>
    %6 = arith.addf %3, %5 : vector<32x256xf32>
    %7 = math.sin %6 : vector<32x256xf32>
    %c0_6 = arith.constant 0 : index
    %c0_7 = arith.constant 0 : index
    %8 = vector.load %arg5[%c0_6, %c0_7] : memref<32x1xf32, #tpu.memory_space<vmem>>, vector<32x1xf32>
    %cst_8 = arith.constant 0.000000e+00 : f32
    %9 = vector.broadcast %cst_8 : f32 to vector<32x1xf32>
    %10 = arith.cmpf ogt, %8, %9 : vector<32x1xf32>
    %11 = vector.shape_cast %10 : vector<32x1xi1> to vector<32x1xi1>
    %12 = vector.broadcast %11 : vector<32x1xi1> to vector<32x256xi1>
    %13 = arith.select %12, %3, %7 : vector<32x256xi1>, vector<32x256xf32>
    %14 = arith.truncf %13 : vector<32x256xf32> to vector<32x256xbf16>
    %c0_9 = arith.constant 0 : index
    %c0_10 = arith.constant 0 : index
    %15 = vector.load %arg9[%c0_9, %c0_10] : memref<64x8xf32, #tpu.memory_space<vmem>>, vector<64x8xf32>
    %16 = arith.truncf %15 : vector<64x8xf32> to vector<64x8xbf16>
    %c0_11 = arith.constant 0 : index
    %c0_12 = arith.constant 0 : index
    %c0_13 = arith.constant 0 : index
    %17 = vector.load %arg6[%c0_11, %c0_12, %c0_13] : memref<2x64x32xbf16, #tpu.memory_space<vmem>>, vector<1x64x32xbf16>
    %18 = vector.shape_cast %17 : vector<1x64x32xbf16> to vector<64x32xbf16>
    %cst_14 = arith.constant dense<0.000000e+00> : vector<64x256xf32>
    %19 = tpu.matmul %18, %14, %cst_14 {dimension_numbers = #tpu.dot_dimension_numbers<[1], [0], [0], [1], [0, 0, 1, 1], [], []>} : vector<64x32xbf16>, vector<32x256xbf16>, vector<64x256xf32> -> vector<64x256xf32>
    %20 = arith.truncf %19 : vector<64x256xf32> to vector<64x256xbf16>
    %21 = vector.extract_strided_slice %16 {offsets = [0, 0], sizes = [64, 1], strides = [1, 1]} : vector<64x8xbf16> to vector<64x1xbf16>
    %22 = vector.broadcast %21 : vector<64x1xbf16> to vector<64x256xbf16>
    %23 = arith.addf %20, %22 : vector<64x256xbf16>
    %cst_15 = arith.constant 1.000980e-02 : bf16
    %24 = vector.broadcast %cst_15 : bf16 to vector<64x256xbf16>
    %25 = arith.mulf %24, %23 : vector<64x256xbf16>
    %26 = arith.maximumf %23, %25 : vector<64x256xbf16>
    %c0_16 = arith.constant 0 : index
    %c0_17 = arith.constant 0 : index
    %c0_18 = arith.constant 0 : index
    %27 = vector.load %arg7[%c0_16, %c0_17, %c0_18] : memref<7x64x64xbf16, #tpu.memory_space<vmem>>, vector<1x64x64xbf16>
    %28 = vector.shape_cast %27 : vector<1x64x64xbf16> to vector<64x64xbf16>
    %cst_19 = arith.constant dense<0.000000e+00> : vector<64x256xf32>
    %29 = tpu.matmul %28, %26, %cst_19 {dimension_numbers = #tpu.dot_dimension_numbers<[1], [0], [0], [1], [0, 0, 1, 1], [], []>} : vector<64x64xbf16>, vector<64x256xbf16>, vector<64x256xf32> -> vector<64x256xf32>
    %30 = arith.truncf %29 : vector<64x256xf32> to vector<64x256xbf16>
    %31 = vector.extract_strided_slice %16 {offsets = [0, 1], sizes = [64, 1], strides = [1, 1]} : vector<64x8xbf16> to vector<64x1xbf16>
    %32 = vector.broadcast %31 : vector<64x1xbf16> to vector<64x256xbf16>
    %33 = arith.addf %30, %32 : vector<64x256xbf16>
    %cst_20 = arith.constant 1.000980e-02 : bf16
    %34 = vector.broadcast %cst_20 : bf16 to vector<64x256xbf16>
    %35 = arith.mulf %34, %33 : vector<64x256xbf16>
    %36 = arith.maximumf %33, %35 : vector<64x256xbf16>
    %c1 = arith.constant 1 : index
    %c0_21 = arith.constant 0 : index
    %c0_22 = arith.constant 0 : index
    %37 = vector.load %arg7[%c1, %c0_21, %c0_22] : memref<7x64x64xbf16, #tpu.memory_space<vmem>>, vector<1x64x64xbf16>
    %38 = vector.shape_cast %37 : vector<1x64x64xbf16> to vector<64x64xbf16>
    %cst_23 = arith.constant dense<0.000000e+00> : vector<64x256xf32>
    %39 = tpu.matmul %38, %36, %cst_23 {dimension_numbers = #tpu.dot_dimension_numbers<[1], [0], [0], [1], [0, 0, 1, 1], [], []>} : vector<64x64xbf16>, vector<64x256xbf16>, vector<64x256xf32> -> vector<64x256xf32>
    %40 = arith.truncf %39 : vector<64x256xf32> to vector<64x256xbf16>
    %41 = vector.extract_strided_slice %16 {offsets = [0, 2], sizes = [64, 1], strides = [1, 1]} : vector<64x8xbf16> to vector<64x1xbf16>
    %42 = vector.broadcast %41 : vector<64x1xbf16> to vector<64x256xbf16>
    %43 = arith.addf %40, %42 : vector<64x256xbf16>
    %cst_24 = arith.constant 1.000980e-02 : bf16
    %44 = vector.broadcast %cst_24 : bf16 to vector<64x256xbf16>
    %45 = arith.mulf %44, %43 : vector<64x256xbf16>
    %46 = arith.maximumf %43, %45 : vector<64x256xbf16>
    %c2 = arith.constant 2 : index
    %c0_25 = arith.constant 0 : index
    %c0_26 = arith.constant 0 : index
    %47 = vector.load %arg7[%c2, %c0_25, %c0_26] : memref<7x64x64xbf16, #tpu.memory_space<vmem>>, vector<1x64x64xbf16>
    %48 = vector.shape_cast %47 : vector<1x64x64xbf16> to vector<64x64xbf16>
    %cst_27 = arith.constant dense<0.000000e+00> : vector<64x256xf32>
    %49 = tpu.matmul %48, %46, %cst_27 {dimension_numbers = #tpu.dot_dimension_numbers<[1], [0], [0], [1], [0, 0, 1, 1], [], []>} : vector<64x64xbf16>, vector<64x256xbf16>, vector<64x256xf32> -> vector<64x256xf32>
    %50 = arith.truncf %49 : vector<64x256xf32> to vector<64x256xbf16>
    %51 = vector.extract_strided_slice %16 {offsets = [0, 3], sizes = [64, 1], strides = [1, 1]} : vector<64x8xbf16> to vector<64x1xbf16>
    %52 = vector.broadcast %51 : vector<64x1xbf16> to vector<64x256xbf16>
    %53 = arith.addf %50, %52 : vector<64x256xbf16>
    %cst_28 = arith.constant 1.000980e-02 : bf16
    %54 = vector.broadcast %cst_28 : bf16 to vector<64x256xbf16>
    %55 = arith.mulf %54, %53 : vector<64x256xbf16>
    %56 = arith.maximumf %53, %55 : vector<64x256xbf16>
    %c3 = arith.constant 3 : index
    %c0_29 = arith.constant 0 : index
    %c0_30 = arith.constant 0 : index
    %57 = vector.load %arg7[%c3, %c0_29, %c0_30] : memref<7x64x64xbf16, #tpu.memory_space<vmem>>, vector<1x64x64xbf16>
    %58 = vector.shape_cast %57 : vector<1x64x64xbf16> to vector<64x64xbf16>
    %cst_31 = arith.constant dense<0.000000e+00> : vector<64x256xf32>
    %59 = tpu.matmul %58, %56, %cst_31 {dimension_numbers = #tpu.dot_dimension_numbers<[1], [0], [0], [1], [0, 0, 1, 1], [], []>} : vector<64x64xbf16>, vector<64x256xbf16>, vector<64x256xf32> -> vector<64x256xf32>
    %60 = arith.truncf %59 : vector<64x256xf32> to vector<64x256xbf16>
    %61 = vector.extract_strided_slice %16 {offsets = [0, 4], sizes = [64, 1], strides = [1, 1]} : vector<64x8xbf16> to vector<64x1xbf16>
    %62 = vector.broadcast %61 : vector<64x1xbf16> to vector<64x256xbf16>
    %63 = arith.addf %60, %62 : vector<64x256xbf16>
    %cst_32 = arith.constant 1.000980e-02 : bf16
    %64 = vector.broadcast %cst_32 : bf16 to vector<64x256xbf16>
    %65 = arith.mulf %64, %63 : vector<64x256xbf16>
    %66 = arith.maximumf %63, %65 : vector<64x256xbf16>
    %c4 = arith.constant 4 : index
    %c0_33 = arith.constant 0 : index
    %c0_34 = arith.constant 0 : index
    %67 = vector.load %arg7[%c4, %c0_33, %c0_34] : memref<7x64x64xbf16, #tpu.memory_space<vmem>>, vector<1x64x64xbf16>
    %68 = vector.shape_cast %67 : vector<1x64x64xbf16> to vector<64x64xbf16>
    %cst_35 = arith.constant dense<0.000000e+00> : vector<64x256xf32>
    %69 = tpu.matmul %68, %66, %cst_35 {dimension_numbers = #tpu.dot_dimension_numbers<[1], [0], [0], [1], [0, 0, 1, 1], [], []>} : vector<64x64xbf16>, vector<64x256xbf16>, vector<64x256xf32> -> vector<64x256xf32>
    %c1_36 = arith.constant 1 : index
    %c0_37 = arith.constant 0 : index
    %c0_38 = arith.constant 0 : index
    %70 = vector.load %arg6[%c1_36, %c0_37, %c0_38] : memref<2x64x32xbf16, #tpu.memory_space<vmem>>, vector<1x64x32xbf16>
    %71 = vector.shape_cast %70 : vector<1x64x32xbf16> to vector<64x32xbf16>
    %cst_39 = arith.constant dense<0.000000e+00> : vector<64x256xf32>
    %72 = tpu.matmul %71, %14, %cst_39 {dimension_numbers = #tpu.dot_dimension_numbers<[1], [0], [0], [1], [0, 0, 1, 1], [], []>} : vector<64x32xbf16>, vector<32x256xbf16>, vector<64x256xf32> -> vector<64x256xf32>
    %73 = arith.addf %69, %72 : vector<64x256xf32>
    %74 = arith.truncf %73 : vector<64x256xf32> to vector<64x256xbf16>
    %75 = vector.extract_strided_slice %16 {offsets = [0, 5], sizes = [64, 1], strides = [1, 1]} : vector<64x8xbf16> to vector<64x1xbf16>
    %76 = vector.broadcast %75 : vector<64x1xbf16> to vector<64x256xbf16>
    %77 = arith.addf %74, %76 : vector<64x256xbf16>
    %cst_40 = arith.constant 1.000980e-02 : bf16
    %78 = vector.broadcast %cst_40 : bf16 to vector<64x256xbf16>
    %79 = arith.mulf %78, %77 : vector<64x256xbf16>
    %80 = arith.maximumf %77, %79 : vector<64x256xbf16>
    %c5 = arith.constant 5 : index
    %c0_41 = arith.constant 0 : index
    %c0_42 = arith.constant 0 : index
    %81 = vector.load %arg7[%c5, %c0_41, %c0_42] : memref<7x64x64xbf16, #tpu.memory_space<vmem>>, vector<1x64x64xbf16>
    %82 = vector.shape_cast %81 : vector<1x64x64xbf16> to vector<64x64xbf16>
    %cst_43 = arith.constant dense<0.000000e+00> : vector<64x256xf32>
    %83 = tpu.matmul %82, %80, %cst_43 {dimension_numbers = #tpu.dot_dimension_numbers<[1], [0], [0], [1], [0, 0, 1, 1], [], []>} : vector<64x64xbf16>, vector<64x256xbf16>, vector<64x256xf32> -> vector<64x256xf32>
    %84 = arith.truncf %83 : vector<64x256xf32> to vector<64x256xbf16>
    %85 = vector.extract_strided_slice %16 {offsets = [0, 6], sizes = [64, 1], strides = [1, 1]} : vector<64x8xbf16> to vector<64x1xbf16>
    %86 = vector.broadcast %85 : vector<64x1xbf16> to vector<64x256xbf16>
    %87 = arith.addf %84, %86 : vector<64x256xbf16>
    %cst_44 = arith.constant 1.000980e-02 : bf16
    %88 = vector.broadcast %cst_44 : bf16 to vector<64x256xbf16>
    %89 = arith.mulf %88, %87 : vector<64x256xbf16>
    %90 = arith.maximumf %87, %89 : vector<64x256xbf16>
    %c6 = arith.constant 6 : index
    %c0_45 = arith.constant 0 : index
    %c0_46 = arith.constant 0 : index
    %91 = vector.load %arg7[%c6, %c0_45, %c0_46] : memref<7x64x64xbf16, #tpu.memory_space<vmem>>, vector<1x64x64xbf16>
    %92 = vector.shape_cast %91 : vector<1x64x64xbf16> to vector<64x64xbf16>
    %cst_47 = arith.constant dense<0.000000e+00> : vector<64x256xf32>
    %93 = tpu.matmul %92, %90, %cst_47 {dimension_numbers = #tpu.dot_dimension_numbers<[1], [0], [0], [1], [0, 0, 1, 1], [], []>} : vector<64x64xbf16>, vector<64x256xbf16>, vector<64x256xf32> -> vector<64x256xf32>
    %94 = arith.truncf %93 : vector<64x256xf32> to vector<64x256xbf16>
    %95 = vector.extract_strided_slice %16 {offsets = [0, 7], sizes = [64, 1], strides = [1, 1]} : vector<64x8xbf16> to vector<64x1xbf16>
    %96 = vector.broadcast %95 : vector<64x1xbf16> to vector<64x256xbf16>
    %97 = arith.addf %94, %96 : vector<64x256xbf16>
    %cst_48 = arith.constant 1.000980e-02 : bf16
    %98 = vector.broadcast %cst_48 : bf16 to vector<64x256xbf16>
    %99 = arith.mulf %98, %97 : vector<64x256xbf16>
    %100 = arith.maximumf %97, %99 : vector<64x256xbf16>
    %c0_49 = arith.constant 0 : index
    %c0_50 = arith.constant 0 : index
    %101 = vector.load %arg8[%c0_49, %c0_50] : memref<8x64xbf16, #tpu.memory_space<vmem>>, vector<8x64xbf16>
    %cst_51 = arith.constant dense<0.000000e+00> : vector<8x256xf32>
    %102 = tpu.matmul %101, %100, %cst_51 {dimension_numbers = #tpu.dot_dimension_numbers<[1], [0], [0], [1], [0, 0, 1, 1], [], []>} : vector<8x64xbf16>, vector<64x256xbf16>, vector<8x256xf32> -> vector<8x256xf32>
    %c0_52 = arith.constant 0 : index
    %c0_53 = arith.constant 0 : index
    %103 = vector.load %arg10[%c0_52, %c0_53] : memref<8x1xf32, #tpu.memory_space<vmem>>, vector<8x1xf32>
    %104 = vector.broadcast %103 : vector<8x1xf32> to vector<8x256xf32>
    %105 = arith.addf %102, %104 : vector<8x256xf32>
    %c0_54 = arith.constant 0 : index
    %c0_55 = arith.constant 0 : index
    %c0_56 = arith.constant 0 : index
    %106 = vector.load %arg11[%c0_54, %c0_55, %c0_56] : memref<1x8x256xf32, #tpu.memory_space<vmem>>, vector<1x8x256xf32>
    %107 = vector.shape_cast %106 : vector<1x8x256xf32> to vector<8x256xf32>
    %108 = vector.shape_cast %105 : vector<8x256xf32> to vector<1x8x256xf32>
    tpu.vector_store %arg11[%c0_54, %c0_55, %c0_56], %108 {strides = array<i32>} : memref<1x8x256xf32, #tpu.memory_space<vmem>>, vector<1x8x256xf32>,
    return
  }
  func.func @transform_0(%arg0: i32, %arg1: i32) -> (i32, i32, i32) {
    %c0_i32 = arith.constant 0 : i32
    %c0_i32_0 = arith.constant 0 : i32
    return %arg0, %c0_i32, %arg1 : i32, i32, i32
  }
  func.func @transform_1(%arg0: i32, %arg1: i32) -> (i32, i32) {
    %c0_i32 = arith.constant 0 : i32
    %c0_i32_0 = arith.constant 0 : i32
    %c0_i32_1 = arith.constant 0 : i32
    return %c0_i32, %c0_i32_0 : i32, i32
  }
  func.func @transform_2(%arg0: i32, %arg1: i32) -> (i32, i32) {
    %c0_i32 = arith.constant 0 : i32
    %c0_i32_0 = arith.constant 0 : i32
    %c0_i32_1 = arith.constant 0 : i32
    return %c0_i32, %c0_i32_0 : i32, i32
  }
  func.func @transform_3(%arg0: i32, %arg1: i32) -> (i32, i32) {
    %c0_i32 = arith.constant 0 : i32
    %c0_i32_0 = arith.constant 0 : i32
    %c0_i32_1 = arith.constant 0 : i32
    return %c0_i32, %c0_i32_0 : i32, i32
  }
  func.func @transform_4(%arg0: i32, %arg1: i32) -> (i32, i32, i32) {
    %c0_i32 = arith.constant 0 : i32
    %c0_i32_0 = arith.constant 0 : i32
    %c0_i32_1 = arith.constant 0 : i32
    %c0_i32_2 = arith.constant 0 : i32
    return %c0_i32, %c0_i32_0, %c0_i32_1 : i32, i32, i32
  }
  func.func @transform_5(%arg0: i32, %arg1: i32) -> (i32, i32, i32) {
    %c0_i32 = arith.constant 0 : i32
    %c0_i32_0 = arith.constant 0 : i32
    %c0_i32_1 = arith.constant 0 : i32
    %c0_i32_2 = arith.constant 0 : i32
    return %c0_i32, %c0_i32_0, %c0_i32_1 : i32, i32, i32
  }
  func.func @transform_6(%arg0: i32, %arg1: i32) -> (i32, i32) {
    %c0_i32 = arith.constant 0 : i32
    %c0_i32_0 = arith.constant 0 : i32
    %c0_i32_1 = arith.constant 0 : i32
    return %c0_i32, %c0_i32_0 : i32, i32
  }
  func.func @transform_7(%arg0: i32, %arg1: i32) -> (i32, i32) {
    %c0_i32 = arith.constant 0 : i32
    %c0_i32_0 = arith.constant 0 : i32
    %c0_i32_1 = arith.constant 0 : i32
    return %c0_i32, %c0_i32_0 : i32, i32
  }
  func.func @transform_8(%arg0: i32, %arg1: i32) -> (i32, i32) {
    %c0_i32 = arith.constant 0 : i32
    %c0_i32_0 = arith.constant 0 : i32
    %c0_i32_1 = arith.constant 0 : i32
    return %c0_i32, %c0_i32_0 : i32, i32
  }
  func.func @transform_9(%arg0: i32, %arg1: i32) -> (i32, i32, i32) {
    %c0_i32 = arith.constant 0 : i32
    %c0_i32_0 = arith.constant 0 : i32
    return %arg0, %c0_i32, %arg1 : i32, i32, i32
  }
}

</mosaic_0001>

<bundles_post_ra>
// kernel: tpu_custom_call.1
= control target key start
LH: loop header
LB: loop body
LE: loop exit
PB: predicated region body
PF: predicated region fallthrough
CT: control target
= control target key end

     0   :  { %s6761_s0 = inlined_call_operand.vmem [shape: f32[2,3,256], index: 0, kind: input, shape index: {}]   ;;  %s6762_s1 = inlined_call_operand.vmem [shape: f32[32,3], index: 1, kind: input, shape index: {}]   ;;  %s6763_s2 = inlined_call_operand.vmem [shape: f32[32,1], index: 2, kind: input, shape index: {}]   ;;  %s6764_s3 = inlined_call_operand.vmem [shape: f32[32,1], index: 3, kind: input, shape index: {}]   ;;  %s6765_s4 = inlined_call_operand.vmem [shape: bf16[2,64,32], index: 4, kind: input, shape index: {}]   ;;  %s6766_s5 = inlined_call_operand.hbm [shape: bf16[7,64,64], index: 5, kind: input, shape index: {}]   ;;  %s6767_s6 = inlined_call_operand.vmem [shape: bf16[8,64], index: 6, kind: input, shape index: {}]   ;;  %s6768_s7 = inlined_call_operand.vmem [shape: f32[64,8], index: 7, kind: input, shape index: {}]   ;;  %s6769_s8 = inlined_call_operand.vmem [shape: f32[8,1], index: 8, kind: input, shape index: {}]   ;;  %s6770_s9 = inlined_call_operand.hbm [shape: f32[2,8,256], index: 9, kind: output, shape index: {}]  }
   0x1   :  { %6845 = sst [smem:[#allocation57_spill]] %s6766_s5 }
   0x2   :  { %14 = vsyncpa [#allocation3], 0 }
   0x3   :  { %15 = vsyncpa [#allocation4], 0 }
   0x4   :  { %17 = vsyncpa [#allocation4 + $0x1], 0  ;;  %s5041_s30 = smov 0   ;;  %s5043_s10 = smov 0  }
   0x5   :  { %s5045_s11 = smov 0   ;;  %s5047_s12 = smov 0  }
   0x6   :  { %s5049_s13 = smov 0   ;;  %s5051_s14 = smov 0  }
   0x7 LB: > { %s4437_s15 = sadd.s32 4294967295, %s4971_s14   ;;  %s4438_s16 = sadd.s32 4294967294, %s4971_s14   ;;  %s4971_s14 = sphi %s5051_s14, %s23_s14   ;;  %s4967_s13 = sphi %s5049_s13, %s6991_s13   ;;  %s4963_s12 = sphi %s5047_s12, %s6990_s12   ;;  %s4959_s11 = sphi %s5045_s11, %s6989_s11   ;;  %s4955_s10 = sphi %s5043_s10, %s6988_s10   ;;  %s4951_s30 = sphi %s5041_s30, %s6987_s30  }
   0x8   : > { %s35_s17 = sadd.s32 1, %s4967_s13  ;;  %s240_s18 = sadd.s32 1, %s4959_s11 }
   0x9   : > { %p37_p0 = scmp.ge.s32.totalorder %s35_s17, 2  ;;  %p250_p1 = scmp.ne.s32.totalorder %s4959_s11, %s4955_s10 }
   0xa   : > { %p251_p2 = scmp.eq.s32.totalorder %s4437_s15, 1  ;;  %p256_p3 = scmp.ne.s32.totalorder %s4955_s10, %s4951_s30 }
   0xb   : > { %s6993_s17 = smov (%p37_p0, %s35_s17), 0  ;;  %p257_p5 = scmp.eq.s32.totalorder %s4438_s16, 1 }
   0xc   : > { %p5081_p4 = por %p251_p2, %p250_p1  ;;  %s235_s20 = ssub.s32 %s4967_s13, %s6993_s17 }
   0xd   : > { %p4439_p6 = scmp.ge.s32.totalorder %s4971_s14, 1  ;;  %p238_p7 = scmp.eq.s32.totalorder %s235_s20, 0 }
   0xe   : > { %p5088_p8 = por %p257_p5, %p256_p3  ;;  %p264_p9 = scmp.lt.s32.totalorder %s4971_s14, 3 }
   0xf   : > { %s5094_s22 = scalar_select %p238_p7, %s4959_s11, %s240_s18  }
  0x10   : > { %p265_p10 = pnand %p4439_p6, %p264_p9  ;;  %p4764_p11 = scmp.eq.s32.totalorder %s4437_s15, 0 }
  0x11   : > { %s6848_s5 = sld [smem:[#allocation57_spill]]  ;;  %s4973_s26 = smov [#allocation2]  }
  0x12   : > { %p4756_p12 = pneg %p265_p10  ;;  %s289_s27 = sshll.u32 %s4973_s26, 4  ;;  %s290_s27 = int_to_ptr.vmem [resolvable:$true] %s289_s27 }
  0x13   : > { %s4974_s28 = smov 64   ;;  %s4975_s29 = smov 4  }
  0x14   : > { %p4757_p13 = pnand %p4764_p11, %p4756_p12  ;;  %327 = sbr.rel (%p265_p10) target bundleno = 2371 (0x943), region = 56 }
  0x17   : > { %s287_s25 = sshll.u32 %s6848_s5, 4  ;;  %s288_s25 = int_to_ptr.hbm [resolvable:$true] %s287_s25 }
  0x18   : > { %4759 = dma.hbm_to_vmem [thread:$0]  (!%p4757_p13), %s288_s25, 3584, %s290_s27, [#allocation3], %s4974_s28, %s4974_s28, %s4975_s29  }
  0x19   : > { %4942 = dma.done.wait (%p4764_p11), [#allocation3], 3584  }
  0x1a   : > { %4944 = vsyncadd (%p4764_p11), [#allocation3], 4294963712  ;;  %p369_p0 = scmp.lt.s32.totalorder %s4963_s12, 1  ;;  %v6774_v0 = vmov 0   ;;  %v467_v1 = vld [vmem:[%s6763_s2 + $0x10] sm:$0xff]  ;;  %v465_v2 = vld [vmem:[%s6763_s2] sm:$0xff] }
  0x1b   : > { %4833 = vset.pattern.permute.xlu0 %v6774_v0  ;;  %4834 = vset.pattern.permute.xlu1 %v6774_v0  ;;  %v468_v4 = vld [vmem:[%s6763_s2 + $0x18] sm:$0xff]  ;;  %v466_v5 = vld [vmem:[%s6763_s2 + $0x8] sm:$0xff]  ;;  %vm402_vm0 = vcmask 1042432   ;;  %v381_v6 = vld [vmem:[%s6762_s1] sm:$0xff]  ;;  %vm389_vm1 = vcmask 23552   ;;  %s4749_s25 = sshll.u32 %s4963_s12, 4 }
  0x1c   : > { %s370_s15 = scalar_select %p369_p0, %s4963_s12, 1  ;;  %4835 = vset.pattern.permute.xlu2 %v6774_v0  ;;  %481 = vperm.xlu0 %4833, %v467_v1   ;;  %v1737_v7 = vld [vmem:[%s6764_s3] sm:$0xff]  ;;  %v1738_v8 = vld [vmem:[%s6764_s3 + $0x8] sm:$0xff]  ;;  %v1784_v14 = vld [vmem:[%s6768_s7 + $0x38] sm:$0xff]  ;;  %v6784_v60 = vmov 683565275  }
  0x1d   : > { %471 = vperm.xlu1 %4834, %v465_v2   ;;  %vm1741_vm2 = vcmp.gt.f32.partialorder %v1737_v7, 0.0  ;;  %vm1742_vm3 = vcmp.gt.f32.partialorder %v1738_v8, 0.0  ;;  %v382_v13 = vld [vmem:[%s6762_s1 + $0x8] sm:$0xff]  ;;  %v1781_v15 = vld [vmem:[%s6768_s7 + $0x20] sm:$0xff]  ;;  %v5143_v16 = vpack.c.bf16 %v1784_v14, %v1784_v14  ;;  %v383_v18 = vld [vmem:[%s6762_s1 + $0x10] sm:$0xff]  ;;  %s4344_s28 = scalar_lea.hbm %s6770_s9, %s4749_s25 }
  0x1e   : > { %s4712_s16 = sshll.u32 %s370_s15, 3  ;;  %v1745_v11 = vsel %vm1741_vm2, 1, %v6774_v0  ;;  %v1746_v12 = vsel %vm1742_vm3, 1, %v6774_v0  ;;  %v5145_v17 = vpack.c.bf16 %v1781_v15, %v1781_v15  ;;  %v1779_v19 = vld [vmem:[%s6768_s7 + $0x10] sm:$0xff]  ;;  %v1780_v20 = vld [vmem:[%s6768_s7 + $0x18] sm:$0xff]  ;;  %v1778_v24 = vld [vmem:[%s6768_s7 + $0x8] sm:$0xff] }
  0x1f   : > { %s376_s23 = scalar_lea.vmem %s6761_s0, %s4712_s16  ;;  %6849 = vst [vmem:[#allocation8_spill] sm:$0xff] %v5143_v16  ;;  %v5160_v21 = vpack.c.bf16 %v1779_v19, %v1779_v19  ;;  %v5162_v22 = vpack.c.bf16 %v1780_v20, %v1780_v20  ;;  %v384_v23 = vld [vmem:[%s6762_s1 + $0x18] sm:$0xff]  ;;  %v5174_v25 = vpack.c.bf16 %v1778_v24, %v1778_v24  ;;  %v1739_v26 = vld [vmem:[%s6764_s3 + $0x10] sm:$0xff]  ;;  %v6817_v62 = vmov 2475754826   ;;  %s4348_s16 = sshll.u32 %s4344_s28, 4  ;;  %s4349_s16 = int_to_ptr.hbm [resolvable:$true] %s4348_s16 }
  0x20   : > { %v380_v3 = vld [vmem:[%s376_s23] sm:$0x77]  ;;  %6850 = vst [vmem:[#allocation9_spill] sm:$0xff] %v5145_v17  ;;  %vm1743_vm4 = vcmp.gt.f32.partialorder %v1739_v26, 0.0  ;;  %v1740_v28 = vld [vmem:[%s6764_s3 + $0x18] sm:$0xff]  ;;  %v1783_v30 = vld [vmem:[%s6768_s7 + $0x30] sm:$0xff] }
  0x21   : > { %386 = vst [vmem:[#allocation1] ss:$2 sm:$0xff] %v380_v3  ;;  %v1747_v27 = vsel %vm1743_vm4, 1, %v6774_v0  ;;  %vm1744_vm5 = vcmp.gt.f32.partialorder %v1740_v28, 0.0  ;;  %v5188_v31 = vpack.c.bf16 %v1783_v30, %v1783_v30  ;;  %v6804_v3 = vmov 2131351028  }
  0x22   : > { %6851 = vst [vmem:[#allocation10_spill] sm:$0xff] %v5160_v21  ;;  %1756 = vperm.xlu2 %4835, %v1747_v27   ;;  %v1748_v29 = vsel %vm1744_vm5, 1, %v6774_v0  ;;  %s365_s23 = sand.u32 1, %s4955_s10   ;;  %s4903_s12 = sshra.s32 %s4349_s16, 4  ;;  %s4904_s12 = int_to_ptr.hbm [resolvable:$true] %s4903_s12 }
  0x23   : > { %6852 = vst [vmem:[#allocation11_spill] sm:$0xff] %v5162_v22  ;;  %s4444_s5 = sshll.u32 %s365_s23, 4  ;;  %s4331_s18 = scalar_lea.sflag [#allocation4], %s365_s23 }
  0x24   : > { %486 = vperm.xlu0 %4833, %v468_v4   ;;  %6853 = vst [vmem:[#allocation12_spill] sm:$0xff] %v5174_v25  ;;  %s367_s29 = scalar_lea.vmem [#allocation5], %s4444_s5  ;;  %s4905_s20 = scalar_lea.hbm %s4904_s12, 16 }
  0x25   : > { %476 = vperm.xlu1 %4834, %v466_v5   ;;  %6854 = vst [vmem:[#allocation13_spill] sm:$0xff] %v5188_v31  ;;  %s4346_s15 = sshll.u32 %s367_s29, 4  ;;  %p4906_p1 = scmp.ne.s32.totalorder %s4904_s12, %s4905_s20  ;;  %s4347_s15 = int_to_ptr.vmem [resolvable:$true] %s4346_s15 }
  0x26   : > { %s4909_s5 = scalar_lea.hbm %s6770_s9, 32  ;;  %p4910_p5 = scmp.lt.s32.totalorder %s4904_s12, %s6770_s9 }
  0x27   : > { %p4907_p2 = pnand %p4906_p1, %p5081_p4  ;;  %p4911_p6 = scmp.lt.s32.totalorder %s4909_s5, %s4905_s20 }
  0x28   : > { %v387_v9 = vld.sshfl [vmem:[#allocation1] sm:$0xff pattern:$0x75316420]  ;;  %v388_v10 = vld.sshfl [vmem:[#allocation1 + $0x8] sm:$0xff pattern:$0x75316420] }
  0x29   : > { %4447 = vmatpush.msk.msra.mxu0 %vm402_vm0, %v387_v9  ;;  %4452 = vmatpush.msk.msra.mxu1 %vm402_vm0, %v388_v10  ;;  %v6780_v9 = vmov 920167782   ;;  %p4908_p3 = pneg %p4907_p2  ;;  %p4912_p7 = por %p4911_p6, %p4910_p5 }
  0x2a   : > { %4448 = vmatmul.msk.f32.vlgmr.msra.gmra.mxu0 %vm389_vm1, %v381_v6  ;;  %4453 = vmatmul.msk.f32.vlgmr.msra.gmra.mxu1 %vm389_vm1, %v381_v6  ;;  %v6776_v6 = vmov 2102212464  }
  0x2b   : > { %1759 = vperm.xlu2 %4835, %v1748_v29   ;;  %p4913_p9 = pnand %p4912_p7, %p4908_p3 }
  0x2c   : > { %1750 = vperm.xlu0 %4833, %v1745_v11  }
  0x2d   : > { %1753 = vperm.xlu1 %4834, %v1746_v12   ;;  %v6778_v12 = vmov 1326507024  }
  0x32   : > { %4449 = vmatmul.msk.f32.gmra.mxu0 %vm389_vm1, %v382_v13  ;;  %4454 = vmatmul.msk.f32.gmra.mxu1 %vm389_vm1, %v382_v13 }
  0x33   : > { %1956 = vperm.xlu2 %4835, %v5188_v31  }
  0x34   : > { %1965 = vperm.xlu0 %4833, %v5143_v16  }
  0x35   : > { %1938 = vperm.xlu1 %4834, %v5145_v17  }
  0x3a   : > { %4450 = vmatmul.msk.f32.gmra.mxu0 %vm389_vm1, %v383_v18  ;;  %4455 = vmatmul.msk.f32.gmra.mxu1 %vm389_vm1, %v383_v18 }
  0x3c   : > { %1920 = vperm.xlu0 %4833, %v5160_v21  }
  0x3d   : > { %1929 = vperm.xlu1 %4834, %v5162_v22  }
  0x42   : > { %4451 = vmatmul.msk.f32.gmra.mxu0 %vm389_vm1, %v384_v23  ;;  %4456 = vmatmul.msk.f32.gmra.mxu1 %vm389_vm1, %v384_v23 }
  0x44   : > { %1911 = vperm.xlu0 %4833, %v5174_v25  }
  0x8f   : > { %v472_v32 = vpop.permute.xlu1 %471 }
  0xa7   : > { %v5191_v33 = vpop.f32.mrf.mxu0  ;;  %v5193_v34 = vpop.f32.mrf.mxu1 }
  0xa8   : > { %6855 = vst [vmem:[#allocation14_spill] sm:$0xff] %v5191_v33  ;;  %v5196_v35 = vadd.f32 %v472_v32, %v5191_v33  ;;  %v5199_v36 = vadd.f32 %v472_v32, %v5193_v34 }
  0xa9   : > { %6856 = vst [vmem:[#allocation15_spill] sm:$0xff] %v5193_v34 }
  0xaa   : > { %6857 = vst [vmem:[#allocation16_spill] sm:$0xff] %v5196_v35  ;;  %v497_v37 = vand.u32 2147483647, %v5196_v35  ;;  %v500_v38 = vand.u32 2139095040, %v5196_v35  ;;  %v6773_v39 = vand.u32 2147483647, %v5199_v36 }
  0xab   : > { %6858 = vst [vmem:[#allocation17_spill] sm:$0xff] %v5199_v36  ;;  %v655_v40 = vand.u32 2139095040, %v5199_v36 }
  0xac   : > { %v501_v41 = vshrl.u32 %v500_v38, 23  ;;  %v504_v42 = vand.u32 8388607, %v497_v37  ;;  %v659_v46 = vand.u32 8388607, %v6773_v39 }
  0xad   : > { %v656_v43 = vshrl.u32 %v655_v40, 23 }
  0xae   : > { %v4457_v44 = vadd.s32 4294967169, %v501_v41  ;;  %v505_v45 = vor.u32 8388608, %v504_v42  ;;  %v660_v51 = vor.u32 8388608, %v659_v46 }
  0xaf   : > { %v4460_v47 = vadd.s32 4294967169, %v656_v43 }
  0xb0   : > { %v507_v48 = vadd.s32 1, %v4457_v44  ;;  %v5209_v50 = vshll.u32 %v505_v45, 8  ;;  %v5216_v58 = vshll.u32 %v660_v51, 8 }
  0xb1   : > { %v662_v49 = vadd.s32 1, %v4460_v47 }
  0xb2   : > { %vm508_vm6 = vcmp.gt.s32.totalorder %v507_v48, 0  ;;  %v5212_v56 = vand.u32 65535, %v5209_v50  ;;  %v547_v1 = vshrl.u32 %v5209_v50, 16 }
  0xb3   : > { %v509_v52 = vsel %vm508_vm6, %v507_v48, 0  ;;  %vm663_vm7 = vcmp.gt.s32.totalorder %v662_v49, 0 }
  0xb4   : > { %v511_v53 = vand.u32 31, %v509_v52  ;;  %v664_v54 = vsel %vm663_vm7, %v662_v49, 0  ;;  %v5218_v59 = vshrl.u32 %v509_v52, 5 }
  0xb5   : > { %v5214_v57 = vand.u32 31, %v664_v54 }
  0xb6   : > { %v512_v55 = vsub.s32 32, %v511_v53  ;;  %v514_v61 = vshll.u32 %v6784_v60, %v511_v53  ;;  %v517_v63 = vshll.u32 %v6817_v62, %v511_v53  ;;  %v520_v5 = vshll.u32 %v6804_v3, %v511_v53 }
  0xb7   : > { %v523_v8 = vshll.u32 %v6776_v6, %v511_v53  ;;  %v526_v11 = vshll.u32 %v6780_v9, %v511_v53  ;;  %v5232_v19 = vsub.s32 32, %v5214_v57  ;;  %vm529_vm8 = vcmp.lt.s32.totalorder %v5218_v59, 1 }
  0xb8   : > { %v515_v2 = vshrl.u32 %v6817_v62, %v512_v55  ;;  %v518_v4 = vshrl.u32 %v6804_v3, %v512_v55  ;;  %v521_v7 = vshrl.u32 %v6776_v6, %v512_v55  ;;  %v524_v10 = vshrl.u32 %v6780_v9, %v512_v55 }
  0xb9   : > { %v527_v13 = vshrl.u32 %v6778_v12, %v512_v55  ;;  %vm530_vm9 = vcmp.lt.s32.totalorder %v5218_v59, 2  ;;  %v513_v24 = vshrl.u32 %v6784_v60, %v512_v55  ;;  %vm532_vm10 = vcmp.lt.s32.totalorder %v5218_v59, 4 }
  0xba   : > { %v516_v14 = vor.u32 %v515_v2, %v514_v61  ;;  %v519_v15 = vor.u32 %v518_v4, %v517_v63  ;;  %v522_v18 = vor.u32 %v521_v7, %v520_v5  ;;  %v525_v20 = vor.u32 %v524_v10, %v523_v8 }
  0xbb   : > { %v528_v23 = vor.u32 %v527_v13, %v526_v11  ;;  %vm531_vm11 = vcmp.lt.s32.totalorder %v5218_v59, 3  ;;  %v669_v30 = vshll.u32 %v6784_v60, %v5214_v57  ;;  %v670_v41 = vshrl.u32 %v6817_v62, %v5232_v19 }
  0xbc   : > { %v537_v26 = vsel %vm529_vm8, %v516_v14, %v519_v15  ;;  %v541_v27 = vsel %vm529_vm8, %v519_v15, %v522_v18  ;;  %v538_v28 = vsel %vm532_vm10, %v525_v20, 920167782  ;;  %v534_v32 = vsel %vm532_vm10, %v522_v18, 2102212464 }
  0xbd   : > { %v542_v29 = vsel %vm532_vm10, %v528_v23, 1326507024  ;;  %v539_v38 = vsel %vm531_vm11, %v522_v18, %v538_v28  ;;  %v672_v44 = vshll.u32 %v6817_v62, %v5214_v57  ;;  %v673_v45 = vshrl.u32 %v6804_v3, %v5232_v19 }
  0xbe   : > { %v543_v40 = vsel %vm531_vm11, %v525_v20, %v542_v29  ;;  %v540_v42 = vsel %vm530_vm9, %v537_v26, %v539_v38  ;;  %v533_v51 = vsel %vm529_vm8, %v513_v24, %v516_v14  ;;  %v535_v52 = vsel %vm531_vm11, %v519_v15, %v534_v32 }
  0xbf   : > { %v544_v43 = vsel %vm530_vm9, %v541_v27, %v543_v40  ;;  %v570_v48 = vand.u32 65535, %v540_v42  ;;  %v571_v49 = vshrl.u32 %v540_v42, 16  ;;  %v5263_v53 = vshrl.u32 %v664_v54, 5 }
  0xc0   : > { %v548_v46 = vand.u32 65535, %v544_v43  ;;  %v549_v47 = vshrl.u32 %v544_v43, 16  ;;  %v5265_v55 = vor.u32 %v670_v41, %v669_v30  ;;  %v5268_v2 = vor.u32 %v673_v45, %v672_v44 }
  0xc1   : > { %v676_v4 = vshrl.u32 %v6776_v6, %v5232_v19  ;;  %v573_v7 = vmul.u32 %v571_v49, %v5212_v56  ;;  %v574_v8 = vmul.u32 %v570_v48, %v547_v1  ;;  %v675_v10 = vshll.u32 %v6804_v3, %v5214_v57 }
  0xc2   : > { %v551_v61 = vmul.u32 %v549_v47, %v5212_v56  ;;  %v552_v63 = vmul.u32 %v548_v46, %v547_v1  ;;  %v550_v5 = vmul.u32 %v548_v46, %v5212_v56  ;;  %v553_v54 = vmul.u32 %v549_v47, %v547_v1 }
  0xc3   : > { %v572_v13 = vmul.u32 %v570_v48, %v5212_v56  ;;  %v575_v14 = vmul.u32 %v571_v49, %v547_v1  ;;  %v576_v23 = vshll.u32 %v573_v7, 16  ;;  %v578_v26 = vshll.u32 %v574_v8, 16 }
  0xc4   : > { %v554_v11 = vshll.u32 %v551_v61, 16  ;;  %v555_v15 = vshrl.u32 %v551_v61, 16  ;;  %v556_v18 = vshll.u32 %v552_v63, 16  ;;  %v557_v20 = vshrl.u32 %v552_v63, 16 }
  0xc5   : > { %v5277_v27 = vor.u32 %v676_v4, %v675_v10  ;;  %vm580_vm13 = vc.u32 %v572_v13, %v576_v23  ;;  %v582_v29 = vadd.s32 %v576_v23, %v572_v13  ;;  %v679_v30 = vshrl.u32 %v6780_v9, %v5232_v19 }
  0xc6   : > { %vm558_vm12 = vc.u32 %v550_v5, %v554_v11  ;;  %v560_v24 = vadd.s32 %v554_v11, %v550_v5  ;;  %v581_v56 = vsel %vm580_vm13, 1, %v6774_v0  ;;  %v678_v1 = vshll.u32 %v6776_v6, %v5214_v57 }
  0xc7   : > { %v559_v28 = vsel %vm558_vm12, 1, %v6774_v0  ;;  %v583_v40 = vadd.s32 %v581_v56, %v575_v14  ;;  %vm584_vm15 = vc.u32 %v582_v29, %v578_v26  ;;  %v681_v41 = vshll.u32 %v6780_v9, %v5214_v57 }
  0xc8   : > { %v561_v32 = vadd.s32 %v559_v28, %v553_v54  ;;  %vm562_vm14 = vc.u32 %v560_v24, %v556_v18  ;;  %v585_v43 = vsel %vm584_vm15, 1, %v6774_v0  ;;  %v680_v44 = vor.u32 %v679_v30, %v678_v1 }
  0xc9   : > { %v563_v38 = vsel %vm562_vm14, 1, %v6774_v0  ;;  %v682_v45 = vshrl.u32 %v6778_v12, %v5232_v19  ;;  %v577_v46 = vshrl.u32 %v573_v7, 16  ;;  %v579_v47 = vshrl.u32 %v574_v8, 16 }
  0xca   : > { %v565_v42 = vadd.s32 %v563_v38, %v561_v32  ;;  %v5291_v48 = vadd.s32 %v582_v29, %v578_v26  ;;  %v587_v49 = vadd.s32 %v585_v43, %v583_v40  ;;  %vm684_vm0 = vcmp.lt.s32.totalorder %v5263_v53, 1 }
  0xcb   : > { %v683_v63 = vor.u32 %v682_v45, %v681_v41  ;;  %vm687_vm1 = vcmp.lt.s32.totalorder %v5263_v53, 4  ;;  %vm686_vm2 = vcmp.lt.s32.totalorder %v5263_v53, 3  ;;  %v692_v57 = vsel %vm684_vm0, %v5265_v55, %v5268_v2 }
  0xcc   : > { %v566_v61 = vadd.s32 %v565_v42, %v555_v15  ;;  %v588_v4 = vadd.s32 %v587_v49, %v577_v46  ;;  %v693_v5 = vsel %vm687_vm1, %v680_v44, 920167782  ;;  %vm685_vm3 = vcmp.lt.s32.totalorder %v5263_v53, 2 }
  0xcd   : > { %v694_v8 = vsel %vm686_vm2, %v5277_v27, %v693_v5  ;;  %v696_v10 = vsel %vm684_vm0, %v5268_v2, %v5277_v27  ;;  %v536_v54 = vsel %vm530_vm9, %v533_v51, %v535_v52  ;;  %v697_v14 = vsel %vm687_vm1, %v683_v63, 1326507024 }
  0xce   : > { %v5302_v7 = vadd.s32 %v566_v61, %v557_v20  ;;  %v589_v11 = vadd.s32 %v588_v4, %v579_v47  ;;  %v695_v13 = vsel %vm685_vm3, %v692_v57, %v694_v8  ;;  %v698_v15 = vsel %vm686_vm2, %v680_v44, %v697_v14 }
  0xcf   : > { %v701_v18 = vand.u32 65535, %v5216_v58  ;;  %v725_v20 = vand.u32 65535, %v695_v13  ;;  %v699_v59 = vsel %vm685_vm3, %v696_v10, %v698_v15  ;;  %v702_v51 = vshrl.u32 %v5216_v58, 16 }
  0xd0   : > { %vm592_vm4 = vc.u32 %v5302_v7, %v5291_v48  ;;  %v593_v23 = vadd.s32 1, %v589_v11  ;;  %v726_v52 = vshrl.u32 %v695_v13, 16  ;;  %v590_v24 = vmul.u32 %v5209_v50, %v536_v54 }
  0xd1   : > { %v703_v26 = vand.u32 65535, %v699_v59  ;;  %v704_v28 = vshrl.u32 %v699_v59, 16  ;;  %v729_v32 = vmul.u32 %v725_v20, %v702_v51  ;;  %v727_v40 = vmul.u32 %v725_v20, %v701_v18 }
  0xd2   : > { %v594_v29 = vsel %vm592_vm4, %v593_v23, %v589_v11  ;;  %v728_v30 = vmul.u32 %v726_v52, %v701_v18  ;;  %v730_v41 = vmul.u32 %v726_v52, %v702_v51  ;;  %v689_v10 = vsel %vm687_vm1, %v5277_v27, 2102212464 }
  0xd3   : > { %v595_v56 = vadd.s32 %v594_v29, %v590_v24  ;;  %v706_v1 = vmul.u32 %v704_v28, %v701_v18  ;;  %v707_v38 = vmul.u32 %v703_v26, %v702_v51  ;;  %v705_v44 = vmul.u32 %v703_v26, %v701_v18 }
  0xd4   : > { %v731_v42 = vshll.u32 %v728_v30, 16  ;;  %v708_v45 = vmul.u32 %v704_v28, %v702_v51  ;;  %v733_v49 = vshll.u32 %v729_v32, 16  ;;  %v668_v11 = vshrl.u32 %v6784_v60, %v5232_v19 }
  0xd5   : > { %v596_v43 = vadd.s32 536870912, %v595_v56  ;;  %v709_v46 = vshll.u32 %v706_v1, 16  ;;  %v711_v47 = vshll.u32 %v707_v38, 16  ;;  %v710_v18 = vshrl.u32 %v706_v1, 16 }
  0xd6   : > { %vm735_vm5 = vc.u32 %v727_v40, %v731_v42  ;;  %v737_v61 = vadd.s32 %v731_v42, %v727_v40  ;;  %v688_v59 = vsel %vm684_vm0, %v668_v11, %v5265_v55  ;;  %v690_v27 = vsel %vm686_vm2, %v5268_v2, %v689_v10  ;;  %v5351_v42 = vpop.f32.mrf.mxu0 }
  0xd7   : > { %v5327_v50 = vshrl.u32 %v596_v43, 30  ;;  %vm713_vm6 = vc.u32 %v705_v44, %v709_v46  ;;  %v715_v63 = vadd.s32 %v709_v46, %v705_v44  ;;  %v736_v4 = vsel %vm735_vm5, 1, %v6774_v0  ;;  %6859 = vst [vmem:[#allocation18_spill] sm:$0xff] %v5351_v42 }
  0xd8   : > { %v714_v57 = vsel %vm713_vm6, 1, %v6774_v0  ;;  %v738_v5 = vadd.s32 %v736_v4, %v730_v41  ;;  %vm739_vm7 = vc.u32 %v737_v61, %v733_v49  ;;  %v732_v51 = vshrl.u32 %v728_v30, 16 }
  0xd9   : > { %v598_v8 = vshll.u32 %v5327_v50, 30  ;;  %v716_v54 = vadd.s32 %v714_v57, %v708_v45  ;;  %vm717_vm8 = vc.u32 %v715_v63, %v711_v47  ;;  %v740_v14 = vsel %vm739_vm7, 1, %v6774_v0 }
  0xda   : > { %v718_v13 = vsel %vm717_vm8, 1, %v6774_v0  ;;  %v742_v23 = vadd.s32 %v740_v14, %v738_v5  ;;  %v712_v19 = vshrl.u32 %v707_v38, 16  ;;  %v734_v26 = vshrl.u32 %v729_v32, 16  ;;  %v477_v38 = vpop.permute.xlu1 %476  ;;  %v5365_v14 = vpop.f32.mrf.mxu1 }
  0xdb   : > { %v599_v15 = vsub.s32 %v595_v56, %v598_v8  ;;  %v720_v20 = vadd.s32 %v718_v13, %v716_v54  ;;  %v691_v40 = vsel %vm685_vm3, %v688_v59, %v690_v27  ;;  %v5349_v41 = vadd.s32 %v737_v61, %v733_v49  ;;  %6862 = vst [vmem:[#allocation21_spill] sm:$0xff] %v5365_v14 }
  0xdc   : > { %v743_v28 = vadd.s32 %v742_v23, %v732_v51  ;;  %v745_v32 = vmul.u32 %v5216_v58, %v691_v40  ;;  %v5357_v44 = vadd.f32 %v477_v38, %v5351_v42  ;;  %v591_v5 = vadd.s32 %v5291_v48, %v5302_v7 }
  0xdd   : > { %vm600_vm9 = vcmp.lt.s32.totalorder %v599_v15, 0  ;;  %v601_v52 = vsub.s32 0, %v599_v15  ;;  %v721_v24 = vadd.s32 %v720_v20, %v710_v18  ;;  %v1782_v18 = vld [vmem:[%s6768_s7 + $0x28] sm:$0xff]  ;;  %v5374_v48 = vadd.f32 %v477_v38, %v5365_v14 }
  0xde   : > { %v744_v55 = vadd.s32 %v743_v28, %v734_v26  ;;  %6860 = vst [vmem:[#allocation19_spill] sm:$0xff] %v5357_v44  ;;  %v810_v47 = vand.u32 2139095040, %v5357_v44  ;;  %v6772_v27 = vand.u32 2147483647, %v5357_v44  ;;  %v5376_v7 = vpack.c.bf16 %v1782_v18, %v1782_v18 }
  0xdf   : > { %v602_v29 = vsel %vm600_vm9, %v601_v52, %v599_v15  ;;  %v5345_v56 = vadd.s32 %v721_v24, %v712_v19  ;;  %6863 = vst [vmem:[#allocation22_spill] sm:$0xff] %v5374_v48  ;;  %v965_v24 = vand.u32 2139095040, %v5374_v48  ;;  %vm499_vm14 = vcmp.lt.s32.totalorder %v5196_v35, 0 }
  0xe0   : > { %v603_v1 = vclz %v602_v29  ;;  %v748_v30 = vadd.s32 1, %v744_v55  ;;  %v811_v4 = vshrl.u32 %v810_v47, 23  ;;  %6864 = vst [vmem:[#allocation23_spill] sm:$0xff] %v5376_v7  ;;  %1947 = vperm.xlu2 %4835, %v5376_v7   ;;  %v814_v19 = vand.u32 8388607, %v6772_v27 }
  0xe1   : > { %vm747_vm10 = vc.u32 %v5345_v56, %v5349_v41  ;;  %v966_v40 = vshrl.u32 %v965_v24, 23  ;;  %vm5404_vm15 = vcmp.le.f32.partialorder %v497_v37, 0.7853982  ;;  %v746_v37 = vadd.s32 %v5349_v41, %v5345_v56 }
  0xe2   : > { %v4458_v2 = vadd.s32 4294967294, %v603_v1  ;;  %v749_v43 = vsel %vm747_vm10, %v748_v30, %v744_v55  ;;  %v4463_v10 = vadd.s32 4294967169, %v811_v4  ;;  %v815_v1 = vor.u32 8388608, %v814_v19  ;;  %v5385_v55 = vpop.f32.mrf.mxu0  ;;  %v5400_v4 = vpop.f32.mrf.mxu1 }
  0xe3   : > { %v750_v45 = vadd.s32 %v749_v43, %v745_v32  ;;  %6865 = vst [vmem:[#allocation24_spill] sm:$0xff] %v5385_v55  ;;  %v621_v30 = vsub.s32 4, %v5327_v50  ;;  %v482_v32 = vpop.permute.xlu0 %481  ;;  %v6895_v14 = vmov 683565275  }
  0xe4   : > { %vm4459_vm11 = vcmp.lt.s32.totalorder %v4458_v2, 0  ;;  %v817_v23 = vadd.s32 1, %v4463_v10  ;;  %6869 = vst [vmem:[#allocation28_spill] sm:$0xff] %v5400_v4 }
  0xe5   : > { %v606_v53 = vsel %vm4459_vm11, 0, %v4458_v2  ;;  %v751_v49 = vadd.s32 536870912, %v750_v45 }
  0xe6   : > { %v611_v46 = vsub.s32 4294967266, %v606_v53  ;;  %v607_v63 = vsub.s32 32, %v606_v53  ;;  %v608_v11 = vshll.u32 %v599_v15, %v606_v53  ;;  %vm818_vm12 = vcmp.gt.s32.totalorder %v817_v23, 0 }
  0xe7   : > { %v5360_v57 = vshrl.u32 %v751_v49, 30  ;;  %v819_v28 = vsel %vm818_vm12, %v817_v23, 0  ;;  %v5389_v53 = vadd.f32 %v482_v32, %v5385_v55  ;;  %v5395_v49 = vsel %vm499_vm14, %v621_v30, %v5327_v50 }
  0xe8   : > { %v612_v61 = vadd.s32 127, %v611_v46  ;;  %v609_v8 = vshrl.u32 %v591_v5, %v607_v63  ;;  %v821_v38 = vand.u32 31, %v819_v28  ;;  %v4466_v46 = vadd.s32 4294967169, %v966_v40  ;;  %6867 = vst [vmem:[#allocation26_spill] sm:$0xff] %v5395_v49 }
  0xe9   : > { %6861 = vst [vmem:[#allocation20_spill] sm:$0xff] %v5360_v57  ;;  %v753_v54 = vshll.u32 %v5360_v57, 30  ;;  %v6771_v63 = vand.u32 2147483647, %v5374_v48  ;;  %v6870_v5 = vmov 0  ;;  %v5427_v23 = vshrl.u32 %v819_v28, 5 }
  0xea   : > { %v613_v58 = vshll.u32 %v612_v61, 23  ;;  %v610_v20 = vor.u32 %v609_v8, %v608_v11  ;;  %v5397_v61 = vsub.s32 32, %v821_v38  ;;  %v6871_v5 = vsel %vm5404_vm15, 4294967295, %v6870_v5  ;;  %v5613_v36 = vpop.f32.mrf.mxu0 }
  0xeb   : > { %v5370_v59 = vsub.s32 %v750_v45, %v753_v54  ;;  %v5392_v45 = vshll.u32 %v815_v1, 8  ;;  %6872 = vst [vmem:[#allocation29_spill] sm:$0xff] %v6871_v5  ;;  %v1120_v8 = vand.u32 2139095040, %v5389_v53  ;;  %v972_v11 = vadd.s32 1, %v4466_v46 }
  0xec   : > { %v614_v13 = vor.u32 4788187, %v613_v58  ;;  %v617_v15 = vcvt.s32.f32 %v610_v20  ;;  %6868 = vst [vmem:[#allocation27_spill] sm:$0xff] %v5397_v61  ;;  %v5425_v20 = vadd.f32 %v482_v32, %v5400_v4  ;;  %v833_v41 = vshll.u32 %v6776_v6, %v821_v38 }
  0xed   : > { %v756_v52 = vsub.s32 0, %v5370_v59  ;;  %vm755_vm13 = vcmp.lt.s32.totalorder %v5370_v59, 0  ;;  %6866 = vst [vmem:[#allocation25_spill] sm:$0xff] %v5392_v45  ;;  %v5418_v54 = vand.u32 65535, %v5392_v45  ;;  %v1121_v18 = vshrl.u32 %v1120_v8, 23 }
  0xee   : > { %v615_v51 = vand.u32 2147483647, %v614_v13  ;;  %v834_v13 = vshrl.u32 %v6780_v9, %v5397_v61  ;;  %v825_v24 = vshrl.u32 %v6817_v62, %v5397_v61  ;;  %v836_v28 = vshll.u32 %v6780_v9, %v821_v38  ;;  %6903 = vst [vmem:[#allocation52_spill] sm:$0xff] %v5613_v36 }
  0xef   : > { %v757_v29 = vsel %vm755_vm13, %v756_v52, %v5370_v59  ;;  %6874 = vst [vmem:[#allocation31_spill] sm:$0xff] %v5418_v54  ;;  %v969_v52 = vand.u32 8388607, %v6771_v63  ;;  %v4469_v19 = vadd.s32 4294967169, %v1121_v18  ;;  %vm973_vm1 = vcmp.gt.s32.totalorder %v972_v11, 0  ;;  %v1777_v63 = vld [vmem:[%s6768_s7] sm:$0xff] }
  0xf0   : > { %v618_v26 = vmul.f32 %v617_v15, %v615_v51  ;;  %v758_v43 = vclz %v757_v29  ;;  %v824_v51 = vshll.u32 %v6784_v60, %v821_v38  ;;  %v837_v15 = vshrl.u32 %v6778_v12, %v5397_v61 }
  0xf1   : > { %v831_v29 = vshrl.u32 %v6776_v6, %v5397_v61  ;;  %v835_v1 = vor.u32 %v834_v13, %v833_v41  ;;  %v1127_v40 = vadd.s32 1, %v4469_v19  ;;  %v827_v32 = vshll.u32 %v6817_v62, %v821_v38 }
  0xf2   : > { %v619_v2 = vxor.u32 2147483648, %v618_v26  ;;  %v4461_v58 = vadd.s32 4294967294, %v758_v43  ;;  %v830_v43 = vshll.u32 %v6804_v3, %v821_v38  ;;  %v838_v46 = vor.u32 %v837_v15, %v836_v28 }
  0xf3   : > { %v970_v8 = vor.u32 8388608, %v969_v52  ;;  %v974_v18 = vsel %vm973_vm1, %v972_v11, 0  ;;  %vm1128_vm2 = vcmp.gt.s32.totalorder %v1127_v40, 0  ;;  %v5453_v27 = vor.u32 %v825_v24, %v824_v51 }
  0xf4   : > { %v620_v47 = vsel %vm499_vm14, %v619_v2, %v618_v26  ;;  %vm4462_vm0 = vcmp.lt.s32.totalorder %v4461_v58, 0  ;;  %v828_v26 = vshrl.u32 %v6804_v3, %v5397_v61  ;;  %v1275_v2 = vand.u32 2139095040, %v5425_v20 }
  0xf5   : > { %v5412_v50 = vsel %vm5404_vm15, %v5196_v35, %v620_v47  ;;  %v761_v30 = vsel %vm4462_vm0, 0, %v4461_v58  ;;  %6876 = vst [vmem:[#allocation33_spill] sm:$0xff] %v5453_v27  ;;  %vm842_vm3 = vcmp.lt.s32.totalorder %v5427_v23, 4  ;;  %v1129_v58 = vsel %vm1128_vm2, %v1127_v40, 0 }
  0xf6   : > { %6873 = vst [vmem:[#allocation30_spill] sm:$0xff] %v5412_v50  ;;  %v5436_v56 = vmul.f32 %v5412_v50, %v5412_v50  ;;  %v5455_v13 = vor.u32 %v828_v26, %v827_v32  ;;  %v762_v41 = vsub.s32 32, %v761_v30  ;;  %v5458_v19 = vor.u32 %v831_v29, %v830_v43 }
  0xf7   : > { %v848_v38 = vsel %vm842_vm3, %v835_v1, 920167782  ;;  %v1276_v15 = vshrl.u32 %v1275_v2, 23  ;;  %v766_v11 = vsub.s32 4294967266, %v761_v30  ;;  %v5462_v52 = vand.u32 31, %v974_v18 }
  0xf8   : > { %6875 = vst [vmem:[#allocation32_spill] sm:$0xff] %v5436_v56  ;;  %v633_v47 = vmul.f32 -0.00019511016, %v5436_v56  ;;  %v1131_v28 = vand.u32 31, %v1129_v58  ;;  %v5464_v10 = vpack.c.bf16 %v1777_v63, %v1777_v63  ;;  %vm839_vm4 = vcmp.lt.s32.totalorder %v5427_v23, 1 }
  0xf9   : > { %6877 = vst [vmem:[#allocation34_spill] sm:$0xff] %v5455_v13  ;;  %v852_v24 = vsel %vm842_vm3, %v838_v46, 1326507024  ;;  %v5469_v26 = vshll.u32 %v970_v8, 8  ;;  %v626_v29 = vmul.f32 -0.001358992, %v5436_v56  ;;  %v5477_v40 = vsel %vm839_vm4, %v5453_v27, %v5455_v13 }
  0xfa   : > { %6878 = vst [vmem:[#allocation35_spill] sm:$0xff] %v5458_v19  ;;  %v634_v51 = vadd.f32 0.008332121, %v633_v47  ;;  %vm841_vm5 = vcmp.lt.s32.totalorder %v5427_v23, 3  ;;  %v5480_v63 = vshrl.u32 %v5392_v45, 16  ;;  %1902 = vperm.xlu2 %4835, %v5464_v10   ;;  %v764_v2 = vshrl.u32 %v746_v37, %v762_v41 }
  0xfb   : > { %6879 = vst [vmem:[#allocation36_spill] sm:$0xff] %v5464_v10  ;;  %v5486_v32 = vsel %vm841_vm5, %v5458_v19, %v848_v38  ;;  %v5492_v43 = vsel %vm839_vm4, %v5455_v13, %v5458_v19  ;;  %v4472_v46 = vadd.s32 4294967169, %v1276_v15  ;;  %v767_v47 = vadd.s32 127, %v766_v11 }
  0xfc   : > { %6880 = vst [vmem:[#allocation37_spill] sm:$0xff] %v5469_v26  ;;  %v5496_v8 = vsel %vm841_vm5, %v835_v1, %v852_v24  ;;  %v5499_v39 = vsub.s32 32, %v5462_v52  ;;  %v5501_v37 = vsub.s32 32, %v1131_v28  ;;  %v635_v41 = vmul.f32 %v634_v51, %v5436_v56 }
  0xfd   : > { %6881 = vst [vmem:[#allocation38_spill] sm:$0xff] %v5477_v40  ;;  %v763_v38 = vshll.u32 %v5370_v59, %v761_v30  ;;  %v5506_v0 = vand.u32 65535, %v5469_v26  ;;  %v5509_v6 = vshrl.u32 %v5469_v26, 16  ;;  %v5511_v15 = vadd.f32 0.041655596, %v626_v29 }
  0xfe   : > { %6882 = vst [vmem:[#allocation39_spill] sm:$0xff] %v5480_v63  ;;  %v5513_v11 = vshrl.u32 %v974_v18, 5  ;;  %v979_v1 = vshll.u32 %v6784_v60, %v5462_v52  ;;  %v982_v59 = vshll.u32 %v6817_v62, %v5462_v52  ;;  %v985_v30 = vshll.u32 %v6804_v3, %v5462_v52 }
  0xff   : > { %6883 = vst [vmem:[#allocation40_spill] sm:$0xff] %v5486_v32  ;;  %v5518_v12 = vor.u32 %v764_v2, %v763_v38  ;;  %v1282_v51 = vadd.s32 1, %v4472_v46  ;;  %v768_v9 = vshll.u32 %v767_v47, 23  ;;  %v980_v29 = vshrl.u32 %v6817_v62, %v5499_v39 }
 0x100   : > { %6884 = vst [vmem:[#allocation41_spill] sm:$0xff] %v5492_v43  ;;  %v6891_v18 = vmov 920167782   ;;  %v6892_v60 = vmov 1326507024   ;;  %v983_v2 = vshrl.u32 %v6804_v3, %v5499_v39  ;;  %v1135_v47 = vshrl.u32 %v6817_v62, %v5501_v37 }
 0x101   : > { %6885 = vst [vmem:[#allocation42_spill] sm:$0xff] %v5496_v8  ;;  %v1144_v22 = vshrl.u32 %v6891_v18, %v5501_v37  ;;  %v1147_v10 = vshrl.u32 %v6892_v60, %v5501_v37  ;;  %v5530_v24 = vadd.f32 -0.16666654, %v635_v41  ;;  %v6894_v38 = vmov 2102212464  }
 0x102   : > { %6886 = vst [vmem:[#allocation43_spill] sm:$0xff] %v5499_v39  ;;  %v986_v7 = vshrl.u32 %v6894_v38, %v5499_v39  ;;  %v1138_v21 = vshrl.u32 %v6804_v3, %v5501_v37  ;;  %v1143_v25 = vshll.u32 %v6894_v38, %v1131_v28  ;;  %v1146_v31 = vshll.u32 %v6891_v18, %v1131_v28 }
 0x103   : > { %6887 = vst [vmem:[#allocation44_spill] sm:$0xff] %v5506_v0  ;;  %v5544_v16 = vshrl.u32 %v1129_v58, 5  ;;  %v1141_v17 = vshrl.u32 %v6894_v38, %v5501_v37  ;;  %vm1283_vm6 = vcmp.gt.s32.totalorder %v1282_v51, 0  ;;  %v1134_v46 = vshll.u32 %v6895_v14, %v1131_v28 }
 0x104   : > { %6888 = vst [vmem:[#allocation45_spill] sm:$0xff] %v5509_v6  ;;  %v1137_v34 = vshll.u32 %v6817_v62, %v1131_v28  ;;  %v1145_v42 = vor.u32 %v1144_v22, %v1143_v25  ;;  %v1148_v33 = vor.u32 %v1147_v10, %v1146_v31  ;;  %v6896_v3 = vand.u32 2147483647, %v5389_v53 }
 0x105   : > { %6889 = vst [vmem:[#allocation46_spill] sm:$0xff] %v5511_v15  ;;  %v6897_v35 = vmov 2131351028   ;;  %v6898_v50 = vand.u32 2147483647, %v5425_v20  ;;  %v1284_v58 = vsel %vm1283_vm6, %v1282_v51, 0  ;;  %v5559_v49 = vshll.u32 %v6894_v38, %v5462_v52 }
 0x106   : > { %6890 = vst [vmem:[#allocation47_spill] sm:$0xff] %v5513_v11  ;;  %v1124_v48 = vand.u32 8388607, %v6896_v3  ;;  %v1140_v57 = vshll.u32 %v6897_v35, %v1131_v28  ;;  %v5555_v44 = vor.u32 4788187, %v768_v9  ;;  %v1136_v5 = vor.u32 %v1135_v47, %v1134_v46 }
 0x107   : > { %6893 = vst [vmem:[#allocation48_spill] sm:$0xff] %v5530_v24  ;;  %v1279_v41 = vand.u32 8388607, %v6898_v50  ;;  %v1139_v4 = vor.u32 %v1138_v21, %v1137_v34  ;;  %v5561_v62 = vor.u32 %v980_v29, %v979_v1  ;;  %v5563_v22 = vor.u32 %v983_v2, %v982_v59 }
 0x108   : > { %v1142_v25 = vor.u32 %v1141_v17, %v1140_v57  ;;  %vm1152_vm7 = vcmp.lt.s32.totalorder %v5544_v16, 4  ;;  %v5566_v31 = vor.u32 %v986_v7, %v985_v30  ;;  %v1286_v50 = vand.u32 31, %v1284_v58 }
 0x109   : > { %6899 = vst [vmem:[#allocation49_spill] sm:$0xff] %v5561_v62  ;;  %v1158_v3 = vsel %vm1152_vm7, %v1145_v42, 920167782  ;;  %v1162_v9 = vsel %vm1152_vm7, %v1148_v33, 1326507024  ;;  %v989_v10 = vshrl.u32 %v6891_v18, %v5499_v39  ;;  %v1125_v21 = vor.u32 8388608, %v1124_v48 }
 0x10a   : > { %6900 = vst [vmem:[#allocation50_spill] sm:$0xff] %v5563_v22  ;;  %vm1149_vm8 = vcmp.lt.s32.totalorder %v5544_v16, 1  ;;  %v1280_v34 = vor.u32 8388608, %v1279_v41  ;;  %vm1150_vm9 = vcmp.lt.s32.totalorder %v5544_v16, 2  ;;  %vm1151_vm10 = vcmp.lt.s32.totalorder %v5544_v16, 3 }
 0x10b   : > { %6901 = vst [vmem:[#allocation51_spill] sm:$0xff] %v5566_v31  ;;  %v1157_v17 = vsel %vm1149_vm8, %v1136_v5, %v1139_v4  ;;  %v5579_v57 = vsub.s32 32, %v1286_v50  ;;  %v1159_v33 = vsel %vm1151_vm10, %v1142_v25, %v1158_v3  ;;  %v1161_v7 = vsel %vm1149_vm8, %v1139_v4, %v1142_v25 }
 0x10c   : > { %v1163_v48 = vsel %vm1151_vm10, %v1145_v42, %v1162_v9  ;;  %v5587_v28 = vshrl.u32 %v1284_v58, 5  ;;  %v6902_v1 = vmov 2475754826   ;;  %v1295_v51 = vshll.u32 %v6897_v35, %v1286_v50 }
 0x10d   : > { %v1292_v59 = vshll.u32 %v6902_v1, %v1286_v50  ;;  %v1293_v30 = vshrl.u32 %v6897_v35, %v5579_v57  ;;  %v1298_v29 = vshll.u32 %v6894_v38, %v1286_v50  ;;  %v1296_v2 = vshrl.u32 %v6894_v38, %v5579_v57 }
 0x10e   : > { %v1299_v46 = vshrl.u32 %v6891_v18, %v5579_v57  ;;  %v1301_v47 = vshll.u32 %v6891_v18, %v1286_v50  ;;  %v1302_v42 = vshrl.u32 %v6892_v60, %v5579_v57  ;;  %v5603_v41 = vsel %vm1150_vm9, %v1161_v7, %v1163_v48 }
 0x10f   : > { %v5605_v58 = vshll.u32 %v1125_v21, 8  ;;  %v5607_v3 = vor.u32 %v1293_v30, %v1292_v59  ;;  %v5609_v9 = vshll.u32 %v1280_v34, 8  ;;  %v1133_v24 = vshrl.u32 %v6895_v14, %v5501_v37  ;;  %v487_v21 = vpop.permute.xlu0 %486  ;;  %v5638_v59 = vpop.f32.mrf.mxu1 }
 0x110   : > { %v1297_v15 = vor.u32 %v1296_v2, %v1295_v51  ;;  %v1300_v56 = vor.u32 %v1299_v46, %v1298_v29  ;;  %v1303_v26 = vor.u32 %v1302_v42, %v1301_v47  ;;  %v1154_v45 = vsel %vm1152_vm7, %v1142_v25, 2102212464  ;;  %6904 = vst [vmem:[#allocation53_spill] sm:$0xff] %v5638_v59 }
 0x111   : > { %v5619_v7 = vsel %vm1150_vm9, %v1157_v17, %v1159_v33  ;;  %vm1304_vm11 = vcmp.lt.s32.totalorder %v5587_v28, 1  ;;  %vm1307_vm12 = vcmp.lt.s32.totalorder %v5587_v28, 4  ;;  %v1169_v34 = vshrl.u32 %v5603_v41, 16 }
 0x112   : > { %vm1306_vm13 = vcmp.lt.s32.totalorder %v5587_v28, 3  ;;  %v1316_v37 = vsel %vm1304_vm11, %v5607_v3, %v1297_v15  ;;  %v1317_v25 = vsel %vm1307_vm12, %v1303_v26, 1326507024  ;;  %v1290_v17 = vshrl.u32 %v6902_v1, %v5579_v57 }
 0x113   : > { %vm1305_vm14 = vcmp.lt.s32.totalorder %v5587_v28, 2  ;;  %v1318_v33 = vsel %vm1306_vm13, %v1300_v56, %v1317_v25  ;;  %v5636_v48 = vadd.f32 %v487_v21, %v5613_v36  ;;  %v1153_v30 = vsel %vm1149_vm8, %v1133_v24, %v1136_v5 }
 0x114   : > { %v1155_v51 = vsel %vm1151_vm10, %v1139_v4, %v1154_v45  ;;  %v1166_v26 = vand.u32 65535, %v5605_v58  ;;  %v5647_v29 = vsel %vm1305_vm14, %v1316_v37, %v1318_v33  ;;  %v770_v2 = vand.u32 2147483647, %v5555_v44 }
 0x115   : > { %v5652_v46 = vshll.u32 %v6891_v18, %v5462_v52  ;;  %v1289_v47 = vshll.u32 %v6895_v14, %v1286_v50  ;;  %v1190_v45 = vand.u32 65535, %v5619_v7  ;;  %v1430_v4 = vand.u32 2139095040, %v5636_v48 }
 0x116   : > { %v5656_v5 = vmul.u32 %v1169_v34, %v1166_v26  ;;  %v5661_v24 = vadd.f32 %v487_v21, %v5638_v59  ;;  %v5665_v44 = vshrl.u32 %v6892_v60, %v5499_v39  ;;  %v5669_v52 = vsel %vm1150_vm9, %v1153_v30, %v1155_v51 }
 0x117   : > { %v1291_v50 = vor.u32 %v1290_v17, %v1289_v47  ;;  %v1321_v37 = vand.u32 65535, %v5609_v9  ;;  %v5673_v25 = vor.u32 %v989_v10, %v5559_v49  ;;  %v1168_v33 = vand.u32 65535, %v5603_v41 }
 0x118   : > { %6905 = vst [vmem:[#allocation54_spill] sm:$0xff] %v5661_v24  ;;  %v1191_v42 = vshrl.u32 %v5619_v7, 16  ;;  %v1313_v21 = vsel %vm1307_vm12, %v1300_v56, 920167782  ;;  %v6907_v59 = vcvt.s32.f32 %v5518_v12  ;;  %v1167_v16 = vshrl.u32 %v5605_v58, 16 }
 0x119   : > { %6906 = vst [vmem:[#allocation55_spill] sm:$0xff] %v5673_v25  ;;  %v6909_v17 = vshrl.u32 %v5647_v29, 16  ;;  %v1431_v51 = vshrl.u32 %v1430_v4, 23  ;;  %v1174_v49 = vshll.u32 %v5656_v5, 16  ;;  %v5689_v10 = vmul.u32 %v1190_v45, %v1166_v26 }
 0x11a   : > { %v5681_v39 = vmul.f32 %v6907_v59, %v770_v2  ;;  %v1585_v56 = vand.u32 2139095040, %v5661_v24  ;;  %v1312_v12 = vsel %vm1304_vm11, %v1291_v50, %v5607_v3  ;;  %v1314_v7 = vsel %vm1306_vm13, %v1297_v15, %v1313_v21 }
 0x11b   : > { %v5686_v30 = vmul.u32 %v6909_v17, %v1321_v37  ;;  %v1323_v59 = vand.u32 65535, %v5647_v29  ;;  %v4475_v2 = vadd.s32 4294967169, %v1431_v51  ;;  %v1170_v47 = vmul.u32 %v1168_v33, %v1166_v26 }
 0x11c   : > { %6908 = vst [vmem:[#allocation56_spill] sm:$0xff] %v5681_v39  ;;  %v5700_v4 = vmul.u32 %v1191_v42, %v1166_v26  ;;  %v1586_v6 = vshrl.u32 %v1585_v56, 23  ;;  %v5703_v0 = vmul.u32 %v1168_v33, %v1167_v16  ;;  %v5705_v41 = vmul.u32 %v1190_v45, %v1167_v16 }
 0x11d   : > { %v1329_v13 = vshll.u32 %v5686_v30, 16  ;;  %v1437_v19 = vadd.s32 1, %v4475_v2  ;;  %v1173_v27 = vmul.u32 %v1169_v34, %v1167_v16  ;;  %vm1178_vm0 = vc.u32 %v1170_v47, %v1174_v49 }
 0x11e   : > { %v1315_v21 = vsel %vm1305_vm14, %v1312_v12, %v1314_v7  ;;  %v4478_v61 = vadd.s32 4294967169, %v1586_v6  ;;  %v1309_v26 = vsel %vm1307_vm12, %v1297_v15, 2102212464  ;;  %v1322_v51 = vshrl.u32 %v5609_v9, 16 }
 0x11f   : > { %v1325_v17 = vmul.u32 %v1323_v59, %v1321_v37  ;;  %vm1438_vm1 = vcmp.gt.s32.totalorder %v1437_v19, 0  ;;  %v1288_v45 = vshrl.u32 %v6895_v14, %v5579_v57  ;;  %v6910_v33 = vand.u32 2147483647, %v5636_v48 }
 0x120   : > { %v1439_v2 = vsel %vm1438_vm1, %v1437_v19, 0  ;;  %v6911_v31 = vmov 0   ;;  %v1345_v6 = vand.u32 65535, %v1315_v21  ;;  %v1310_v7 = vsel %vm1306_vm13, %v5607_v3, %v1309_v26 }
 0x121   : > { %v1434_v56 = vand.u32 8388607, %v6910_v33  ;;  %v1179_v62 = vsel %vm1178_vm0, 1, %v6911_v31  ;;  %vm1333_vm2 = vc.u32 %v1325_v17, %v1329_v13  ;;  %v1441_v12 = vand.u32 31, %v1439_v2 }
 0x122   : > { %v1308_v15 = vsel %vm1304_vm11, %v1288_v45, %v1291_v50  ;;  %v1346_v22 = vshrl.u32 %v1315_v21, 16  ;;  %v1592_v57 = vadd.s32 1, %v4478_v61  ;;  %v1176_v39 = vshll.u32 %v5703_v0, 16 }
 0x123   : > { %v5725_v33 = vmul.u32 %v1191_v42, %v1167_v16  ;;  %v5727_v19 = vmul.u32 %v1323_v59, %v1322_v51  ;;  %v5729_v34 = vsub.s32 32, %v1441_v12  ;;  %v1180_v25 = vadd.s32 %v1174_v49, %v1170_v47 }
 0x124   : > { %v1334_v36 = vsel %vm1333_vm2, 1, %v6911_v31  ;;  %v1435_v40 = vor.u32 8388608, %v1434_v56  ;;  %v6912_v50 = vand.u32 2147483647, %v5661_v24  ;;  %v1181_v32 = vadd.s32 %v1179_v62, %v1173_v27 }
 0x125   : > { %v5736_v3 = vsel %vm1305_vm14, %v1308_v15, %v1310_v7  ;;  %v6913_v61 = vshrl.u32 %v5647_v29, 16  ;;  %v5740_v16 = vmul.u32 %v1345_v6, %v1321_v37  ;;  %v5742_v59 = vmul.u32 %v1346_v22, %v1321_v37 }
 0x126   : > { %v1589_v45 = vand.u32 8388607, %v6912_v50  ;;  %v5744_v21 = vmul.u32 %v1345_v6, %v1322_v51  ;;  %v5746_v49 = vmul.u32 %v1346_v22, %v1322_v51  ;;  %vm1593_vm6 = vcmp.gt.s32.totalorder %v1592_v57, 0 }
 0x127   : > { %v1328_v42 = vmul.u32 %v6913_v61, %v1322_v51  ;;  %v5749_v26 = vadd.s32 %v1329_v13, %v1325_v17  ;;  %v1454_v27 = vshrl.u32 %v6891_v18, %v5729_v34  ;;  %v1457_v28 = vshrl.u32 %v6892_v60, %v5729_v34 }
 0x128   : > { %v5757_v29 = vshll.u32 %v1435_v40, 8  ;;  %v1590_v37 = vor.u32 8388608, %v1589_v45  ;;  %vm1182_vm7 = vc.u32 %v1180_v25, %v1176_v39  ;;  %v1445_v22 = vshrl.u32 %v6902_v1, %v5729_v34 }
 0x129   : > { %v5751_v62 = vadd.s32 %v1334_v36, %v1328_v42  ;;  %v1448_v51 = vshrl.u32 %v6897_v35, %v5729_v34  ;;  %v1453_v13 = vshll.u32 %v6894_v38, %v1441_v12  ;;  %v1594_v36 = vsel %vm1593_vm6, %v1592_v57, 0 }
 0x12a   : > { %v5764_v17 = vshrl.u32 %v1439_v2, 5  ;;  %v1451_v56 = vshrl.u32 %v6894_v38, %v5729_v34  ;;  %v1456_v6 = vshll.u32 %v6891_v18, %v1441_v12  ;;  %v1175_v40 = vshrl.u32 %v5656_v5, 16 }
 0x12b   : > { %v1444_v39 = vshll.u32 %v6895_v14, %v1441_v12  ;;  %v1447_v25 = vshll.u32 %v6902_v1, %v1441_v12  ;;  %v1455_v15 = vor.u32 %v1454_v27, %v1453_v13  ;;  %v1183_v7 = vsel %vm1182_vm7, 1, %v6911_v31 }
 0x12c   : > { %v1450_v50 = vshll.u32 %v6897_v35, %v1441_v12  ;;  %v1458_v45 = vor.u32 %v1457_v28, %v1456_v6  ;;  %v5774_v57 = vand.u32 31, %v1594_v36  ;;  %v1177_v2 = vshrl.u32 %v5703_v0, 16 }
 0x12d   : > { %v5777_v61 = vor.u32 %v1445_v22, %v1444_v39  ;;  %v5779_v42 = vor.u32 %v1448_v51, %v1447_v25  ;;  %v1476_v5 = vand.u32 65535, %v5757_v29  ;;  %v1196_v47 = vshll.u32 %v5700_v4, 16 }
 0x12e   : > { %v5783_v24 = vor.u32 %v1451_v56, %v1450_v50  ;;  %vm1462_vm8 = vcmp.lt.s32.totalorder %v5764_v17, 4  ;;  %v5787_v27 = vshrl.u32 %v5757_v29, 16  ;;  %v1185_v12 = vadd.s32 %v1183_v7, %v1181_v32 }
 0x12f   : > { %vm1459_vm9 = vcmp.lt.s32.totalorder %v5764_v17, 1  ;;  %v1468_v0 = vsel %vm1462_vm8, %v1455_v15, 920167782  ;;  %v5792_v28 = vshll.u32 %v1590_v37, 8  ;;  %v1197_v22 = vshrl.u32 %v5700_v4, 16 }
 0x130   : > { %vm1461_vm10 = vcmp.lt.s32.totalorder %v5764_v17, 3  ;;  %v1472_v51 = vsel %vm1462_vm8, %v1458_v45, 1326507024  ;;  %v5798_v13 = vshrl.u32 %v1594_v36, 5  ;;  %v5801_v56 = vsub.s32 32, %v5774_v57 }
 0x131   : > { %v1467_v32 = vsel %vm1459_vm9, %v5777_v61, %v5779_v42  ;;  %v1198_v37 = vshll.u32 %v5705_v41, 16  ;;  %vm1200_vm11 = vc.u32 %v5689_v10, %v1196_v47  ;;  %v1202_v4 = vadd.s32 %v1196_v47, %v5689_v10 }
 0x132   : > { %v1469_v6 = vsel %vm1461_vm10, %v5783_v24, %v1468_v0  ;;  %v1471_v36 = vsel %vm1459_vm9, %v5779_v42, %v5783_v24  ;;  %v1186_v39 = vadd.s32 %v1185_v12, %v1175_v40  ;;  %v1201_v25 = vsel %vm1200_vm11, 1, %v6911_v31 }
 0x133   : > { %v1473_v7 = vsel %vm1461_vm10, %v1455_v15, %v1472_v51  ;;  %v1602_v50 = vshll.u32 %v6902_v1, %v5774_v57  ;;  %v1203_v10 = vadd.s32 %v1201_v25, %v5725_v33  ;;  %vm1204_vm12 = vc.u32 %v1202_v4, %v1198_v37 }
 0x134   : > { %v5825_v47 = vshrl.u32 %v6902_v1, %v5801_v56  ;;  %v5829_v45 = vshll.u32 %v6897_v35, %v5774_v57  ;;  %v5833_v40 = vshll.u32 %v6894_v38, %v5774_v57  ;;  %v1205_v15 = vsel %vm1204_vm12, 1, %v6911_v31 }
 0x135   : > { %v1603_v12 = vshrl.u32 %v6897_v35, %v5801_v56  ;;  %v5840_v33 = vshrl.u32 %v6894_v38, %v5801_v56  ;;  %v1207_v0 = vadd.s32 %v1205_v15, %v1203_v10  ;;  %vm1460_vm13 = vcmp.lt.s32.totalorder %v5764_v17, 2 }
 0x136   : > { %v5845_v1 = vshrl.u32 %v6892_v60, %v5801_v56  ;;  %v5847_v51 = vadd.s32 %v1186_v39, %v1177_v2  ;;  %v1470_v25 = vsel %vm1460_vm13, %v1467_v32, %v1469_v6  ;;  %v1474_v63 = vsel %vm1460_vm13, %v1471_v36, %v1473_v7 }
 0x137   : > { %v1199_v35 = vshrl.u32 %v5705_v41, 16  ;;  %v1208_v55 = vadd.s32 %v1207_v0, %v1197_v22  ;;  %v1478_v38 = vand.u32 65535, %v1474_v63  ;;  %v1479_v54 = vshrl.u32 %v1474_v63, 16 }
 0x138   : > { %v1611_v10 = vshll.u32 %v6891_v18, %v5774_v57  ;;  %v5856_v15 = vadd.s32 %v1202_v4, %v1198_v37  ;;  %v1500_v60 = vand.u32 65535, %v1470_v25  ;;  %v1501_v11 = vshrl.u32 %v1470_v25, 16 }
 0x139   : > { %v1609_v2 = vshrl.u32 %v6891_v18, %v5801_v56  ;;  %v1209_v39 = vadd.s32 %v1208_v55, %v1199_v35  ;;  %v1481_v32 = vmul.u32 %v1479_v54, %v1476_v5  ;;  %v1482_v6 = vmul.u32 %v1478_v38, %v5787_v27 }
 0x13a   : > { %v5861_v36 = vor.u32 %v1603_v12, %v1602_v50  ;;  %v1613_v41 = vor.u32 %v5845_v1, %v1611_v10  ;;  %vm1212_vm14 = vc.u32 %v5847_v51, %v5856_v15  ;;  %v1503_v63 = vmul.u32 %v1501_v11, %v1476_v5 }
 0x13b   : > { %v1213_v22 = vadd.s32 1, %v1209_v39  ;;  %v1480_v37 = vmul.u32 %v1478_v38, %v1476_v5  ;;  %v1484_v4 = vshll.u32 %v1481_v32, 16  ;;  %v1504_v7 = vmul.u32 %v1500_v60, %v5787_v27 }
 0x13c   : > { %v1443_v18 = vshrl.u32 %v6895_v14, %v5729_v34  ;;  %v1483_v55 = vmul.u32 %v1479_v54, %v5787_v27  ;;  %v1502_v0 = vmul.u32 %v1500_v60, %v1476_v5  ;;  %v1506_v25 = vshll.u32 %v1503_v63, 16 }
 0x13d   : > { %v1214_v50 = vsel %vm1212_vm14, %v1213_v22, %v1209_v39  ;;  %v1486_v12 = vshll.u32 %v1482_v6, 16  ;;  %vm1488_vm0 = vc.u32 %v1480_v37, %v1484_v4  ;;  %v1490_v1 = vadd.s32 %v1484_v4, %v1480_v37 }
 0x13e   : > { %v6914_v35 = vmul.u32 %v5605_v58, %v5669_v52  ;;  %v1464_v38 = vsel %vm1462_vm8, %v5783_v24, 2102212464  ;;  %v1489_v43 = vsel %vm1488_vm0, 1, %v6911_v31  ;;  %v1505_v34 = vmul.u32 %v1501_v11, %v5787_v27 }
 0x13f   : > { %v1491_v8 = vadd.s32 %v1489_v43, %v1483_v55  ;;  %vm1492_vm1 = vc.u32 %v1490_v1, %v1486_v12  ;;  %v1508_v54 = vshll.u32 %v1504_v7, 16  ;;  %vm1510_vm2 = vc.u32 %v1502_v0, %v1506_v25 }
 0x140   : > { %v1215_v10 = vadd.s32 %v1214_v50, %v6914_v35  ;;  %v1493_v60 = vsel %vm1492_vm1, 1, %v6911_v31  ;;  %v1511_v39 = vsel %vm1510_vm2, 1, %v6911_v31  ;;  %v1512_v22 = vadd.s32 %v1506_v25, %v1502_v0 }
 0x141   : > { %v1485_v58 = vshrl.u32 %v1481_v32, 16  ;;  %v1495_v52 = vadd.s32 %v1493_v60, %v1491_v8  ;;  %v1513_v37 = vadd.s32 %v1511_v39, %v1505_v34  ;;  %v6915_v4 = vshll.u32 %v5727_v19, 16 }
 0x142   : > { %v1216_v5 = vadd.s32 536870912, %v1215_v10  ;;  %v1463_v43 = vsel %vm1459_vm9, %v1443_v18, %v5777_v61  ;;  %v1487_v11 = vshrl.u32 %v1482_v6, 16  ;;  %vm1514_vm7 = vc.u32 %v1512_v22, %v1508_v54 }
 0x143   : > { %vm1337_vm6 = vc.u32 %v5749_v26, %v6915_v4  ;;  %v1496_v27 = vadd.s32 %v1495_v52, %v1485_v58  ;;  %v1515_v55 = vsel %vm1514_vm7, 1, %v6911_v31  ;;  %v1351_v8 = vshll.u32 %v5742_v59, 16 }
 0x144   : > { %v5883_v24 = vshrl.u32 %v1216_v5, 30  ;;  %v1338_v0 = vsel %vm1337_vm6, 1, %v6911_v31  ;;  %v1465_v26 = vsel %vm1461_vm10, %v5779_v42, %v1464_v38  ;;  %v1507_v25 = vshrl.u32 %v1503_v63, 16 }
 0x145   : > { %v1517_v50 = vadd.s32 %v1515_v55, %v1513_v37  ;;  %v5897_v61 = vor.u32 %v5840_v33, %v5829_v45  ;;  %vm1617_vm8 = vcmp.lt.s32.totalorder %v5798_v13, 4  ;;  %v5900_v6 = vadd.s32 %v1496_v27, %v1487_v11 }
 0x146   : > { %v1218_v32 = vshll.u32 %v5883_v24, 30  ;;  %v1509_v18 = vshrl.u32 %v1504_v7, 16  ;;  %v1340_v35 = vadd.s32 %v1338_v0, %v5751_v62  ;;  %vm1355_vm9 = vc.u32 %v5740_v16, %v1351_v8 }
 0x147   : > { %v1518_v1 = vadd.s32 %v1517_v50, %v1507_v25  ;;  %v5905_v34 = vor.u32 %v1609_v2, %v5833_v40  ;;  %v1627_v42 = vsel %vm1617_vm8, %v1613_v41, 1326507024  ;;  %v1466_v45 = vsel %vm1460_vm13, %v1463_v43, %v1465_v26 }
 0x148   : > { %v1219_v12 = vsub.s32 %v1215_v10, %v1218_v32  ;;  %v5911_v33 = vadd.s32 %v1512_v22, %v1508_v54  ;;  %v1330_v10 = vshrl.u32 %v5686_v30, 16  ;;  %vm1119_vm11 = vcmp.lt.s32.totalorder %v5389_v53, 0 }
 0x149   : > { %v1519_v7 = vadd.s32 %v1518_v1, %v1509_v18  ;;  %v1353_v62 = vshll.u32 %v5744_v21, 16  ;;  %v1356_v40 = vsel %vm1355_vm9, 1, %v6911_v31  ;;  %v1357_v2 = vadd.s32 %v1351_v8, %v5740_v16 }
 0x14a   : > { %vm1220_vm10 = vcmp.lt.s32.totalorder %v1219_v12, 0  ;;  %v1221_v63 = vsub.s32 0, %v1219_v12  ;;  %vm1522_vm12 = vc.u32 %v5900_v6, %v5911_v33  ;;  %v1341_v38 = vadd.s32 %v1340_v35, %v1330_v10 }
 0x14b   : > { %v1523_v41 = vadd.s32 1, %v1519_v7  ;;  %v1358_v54 = vadd.s32 %v1356_v40, %v5746_v49  ;;  %vm1614_vm13 = vcmp.lt.s32.totalorder %v5798_v13, 1  ;;  %v1520_v30 = vmul.u32 %v5757_v29, %v1466_v45 }
 0x14c   : > { %v1222_v17 = vsel %vm1220_vm10, %v1221_v63, %v1219_v12  ;;  %vm1359_vm14 = vc.u32 %v1357_v2, %v1353_v62  ;;  %vm1616_vm0 = vcmp.lt.s32.totalorder %v5798_v13, 3  ;;  %v1626_v60 = vsel %vm1614_vm13, %v5861_v36, %v5897_v61 }
 0x14d   : > { %v1223_v5 = vclz %v1222_v17  ;;  %v1524_v39 = vsel %vm1522_vm12, %v1523_v41, %v1519_v7  ;;  %v1332_v16 = vshrl.u32 %v5727_v19, 16  ;;  %v1628_v49 = vsel %vm1616_vm0, %v5905_v34, %v1627_v42 }
 0x14e   : > { %v1525_v58 = vadd.s32 %v1524_v39, %v1520_v30  ;;  %v1360_v52 = vsel %vm1359_vm14, 1, %v6911_v31  ;;  %v1241_v29 = vsub.s32 4, %v5883_v24  ;;  %v1352_v4 = vshrl.u32 %v5742_v59, 16 }
 0x14f   : > { %v4470_v22 = vadd.s32 4294967294, %v1223_v5  ;;  %v1342_v37 = vadd.s32 %v1341_v38, %v1332_v16  ;;  %v1362_v43 = vadd.s32 %v1360_v52, %v1358_v54  ;;  %v1354_v27 = vshrl.u32 %v5744_v21, 16 }
 0x150   : > { %v1526_v11 = vadd.s32 536870912, %v1525_v58  ;;  %vm1615_vm2 = vcmp.lt.s32.totalorder %v5798_v13, 2  ;;  %v1361_v55 = vadd.s32 %v1357_v2, %v1353_v62  ;;  %v1211_v32 = vadd.s32 %v5856_v15, %v5847_v51 }
 0x151   : > { %vm4471_vm1 = vcmp.lt.s32.totalorder %v4470_v22, 0  ;;  %v1363_v0 = vadd.s32 %v1362_v43, %v1352_v4  ;;  %v5939_v8 = vsel %vm1615_vm2, %v1626_v60, %v1628_v49  ;;  %v1242_v21 = vsel %vm1119_vm11, %v1241_v29, %v5883_v24 }
 0x152   : > { %v1226_v19 = vsel %vm4471_vm1, 0, %v4470_v22  ;;  %v5943_v59 = vshrl.u32 %v1526_v11, 30  ;;  %vm1367_vm6 = vc.u32 %v1342_v37, %v1361_v55  ;;  %v1634_v18 = vshrl.u32 %v5939_v8, 16 }
 0x153   : > { %v1227_v26 = vsub.s32 32, %v1226_v19  ;;  %v1231_v25 = vsub.s32 4294967266, %v1226_v19  ;;  %v1364_v50 = vadd.s32 %v1363_v0, %v1354_v27  ;;  %v1228_v1 = vshll.u32 %v1219_v12, %v1226_v19 }
 0x154   : > { %v1528_v45 = vshll.u32 %v5943_v59, 30  ;;  %v1599_v51 = vshll.u32 %v6895_v14, %v5774_v57  ;;  %v5953_v15 = vand.u32 65535, %v5792_v28  ;;  %v6916_v63 = vand.u32 2147483647, %v5389_v53 }
 0x155   : > { %v1229_v35 = vshrl.u32 %v1211_v32, %v1227_v26  ;;  %v1232_v42 = vadd.s32 127, %v1231_v25  ;;  %v1368_v24 = vadd.s32 1, %v1364_v50  ;;  %v1365_v2 = vmul.u32 %v5609_v9, %v5736_v3 }
 0x156   : > { %vm5957_vm7 = vcmp.le.f32.partialorder %v6916_v63, 0.7853982  ;;  %v1529_v40 = vsub.s32 %v1525_v58, %v1528_v45  ;;  %v1601_v57 = vor.u32 %v5825_v47, %v1599_v51  ;;  %v5970_v41 = vmul.u32 %v1634_v18, %v5953_v15 }
 0x157   : > { %v1230_v10 = vor.u32 %v1229_v35, %v1228_v1  ;;  %v1233_v62 = vshll.u32 %v1232_v42, 23  ;;  %v1244_v12 = vsel %vm5957_vm7, 0, %v1242_v21  ;;  %v1369_v17 = vsel %vm1367_vm6, %v1368_v24, %v1364_v50 }
 0x158   : > { %v993_v38 = vor.u32 %v5665_v44, %v5652_v46  ;;  %vm1530_vm9 = vcmp.lt.s32.totalorder %v1529_v40, 0  ;;  %v1531_v5 = vsub.s32 0, %v1529_v40  ;;  %v1623_v30 = vsel %vm1617_vm8, %v5905_v34, 920167782  ;;  %v6939_v44 = vld [vmem:[#allocation27_spill] sm:$0xff] }
 0x159   : > { %v1234_v54 = vor.u32 4788187, %v1233_v62  ;;  %v1261_v9 = vadd.s32 3, %v1244_v12  ;;  %v1370_v3 = vadd.s32 %v1369_v17, %v1365_v2  ;;  %v1633_v47 = vand.u32 65535, %v5939_v8 }
 0x15a   : > { %v5979_v60 = vshrl.u32 %v5792_v28, 16  ;;  %v1237_v16 = vcvt.s32.f32 %v1230_v10  ;;  %v1532_v49 = vsel %vm1530_vm9, %v1531_v5, %v1529_v40  ;;  %v1622_v22 = vsel %vm1614_vm13, %v1601_v57, %v5861_v36 }
 0x15b   : > { %v1235_v39 = vand.u32 2147483647, %v1234_v54  ;;  %v1533_v58 = vclz %v1532_v49  ;;  %v1371_v52 = vadd.s32 536870912, %v1370_v3  ;;  %v1639_v29 = vshll.u32 %v5970_v41, 16 }
 0x15c   : > { %v1624_v34 = vsel %vm1616_vm0, %v5897_v61, %v1623_v30  ;;  %v1521_v43 = vadd.s32 %v5911_v33, %v5900_v6  ;;  %v1598_v11 = vshrl.u32 %v6895_v14, %v5801_v56  ;;  %v5992_v27 = vand.u32 3, %v1261_v9 }
 0x15d   : > { %v1238_v4 = vmul.f32 %v1237_v16, %v1235_v39  ;;  %v4476_v19 = vadd.s32 4294967294, %v1533_v58  ;;  %v5994_v0 = vadd.s32 %v1361_v55, %v1342_v37  ;;  %v1635_v32 = vmul.u32 %v1633_v47, %v5953_v15 }
 0x15e   : > { %v5997_v25 = vshrl.u32 %v1371_v52, 30  ;;  %v6001_v21 = vsel %vm1614_vm13, %v1598_v11, %v1601_v57  ;;  %v6004_v50 = vmul.u32 %v1633_v47, %v5979_v60  ;;  %v1619_v56 = vsel %vm1617_vm8, %v5897_v61, 2102212464 }
 0x15f   : > { %v1239_v26 = vxor.u32 2147483648, %v1238_v4  ;;  %vm4477_vm10 = vcmp.lt.s32.totalorder %v4476_v19, 0  ;;  %v1625_v6 = vsel %vm1615_vm2, %v1622_v22, %v1624_v34  ;;  %vm1643_vm12 = vc.u32 %v1635_v32, %v1639_v29 }
 0x160   : > { %vm1429_vm14 = vcmp.lt.s32.totalorder %v5636_v48, 0  ;;  %v1536_v37 = vsel %vm4477_vm10, 0, %v4476_v19  ;;  %v1551_v55 = vsub.s32 4, %v5943_v59  ;;  %v1373_v1 = vshll.u32 %v5997_v25, 30 }
 0x161   : > { %v1240_v33 = vsel %vm1119_vm11, %v1239_v26, %v1238_v4  ;;  %v1537_v61 = vsub.s32 32, %v1536_v37  ;;  %v1541_v42 = vsub.s32 4294967266, %v1536_v37  ;;  %v1645_v45 = vadd.s32 %v1639_v29, %v1635_v32 }
 0x162   : > { %v6019_v35 = vsel %vm5957_vm7, %v5389_v53, %v1240_v33  ;;  %v6023_v63 = vsub.s32 %v1370_v3, %v1373_v1  ;;  %v1641_v24 = vshll.u32 %v6004_v50, 16  ;;  %v1644_v10 = vsel %vm1643_vm12, 1, %v6911_v31 }
 0x163   : > { %v1245_v51 = vmul.f32 %v6019_v35, %v6019_v35  ;;  %v1538_v62 = vshll.u32 %v1529_v40, %v1536_v37  ;;  %v1539_v12 = vshrl.u32 %v1521_v43, %v1537_v61  ;;  %v1542_v2 = vadd.s32 127, %v1541_v42 }
 0x164   : > { %v1656_v57 = vshrl.u32 %v1625_v6, 16  ;;  %vm1375_vm8 = vcmp.lt.s32.totalorder %v6023_v63, 0  ;;  %v1376_v54 = vsub.s32 0, %v6023_v63  ;;  %v1638_v9 = vmul.u32 %v1634_v18, %v5979_v60 }
 0x165   : > { %v1246_v17 = vmul.f32 -0.001358992, %v1245_v51  ;;  %v1253_v7 = vmul.f32 -0.00019511016, %v1245_v51  ;;  %v1540_v5 = vor.u32 %v1539_v12, %v1538_v62  ;;  %v1543_v30 = vshll.u32 %v1542_v2, 23 }
 0x166   : > { %vm1647_vm11 = vc.u32 %v1645_v45, %v1641_v24  ;;  %v1377_v40 = vsel %vm1375_vm8, %v1376_v54, %v6023_v63  ;;  %v1655_v39 = vand.u32 65535, %v1625_v6  ;;  %v6919_v16 = vand.u32 2147483647, %v5636_v48 }
 0x167   : > { %v1247_v3 = vadd.f32 0.041655596, %v1246_v17  ;;  %v1254_v47 = vadd.f32 0.008332121, %v1253_v7  ;;  %v1544_v22 = vor.u32 4788187, %v1543_v30  ;;  %v1378_v58 = vclz %v1377_v40 }
 0x168   : > { %vm6035_vm13 = vcmp.le.f32.partialorder %v6919_v16, 0.7853982  ;;  %v1646_v52 = vadd.s32 %v1644_v10, %v1638_v9  ;;  %v6040_v29 = vmul.u32 %v1656_v57, %v5953_v15  ;;  %v1620_v34 = vsel %vm1616_vm0, %v5861_v36, %v1619_v56 }
 0x169   : > { %v1248_v8 = vmul.f32 %v1247_v3, %v1245_v51  ;;  %v1255_v18 = vmul.f32 %v1254_v47, %v1245_v51  ;;  %v1648_v4 = vsel %vm1647_vm11, 1, %v6911_v31  ;;  %v1545_v43 = vand.u32 2147483647, %v1544_v22  ;;  %v6076_v3 = vpop.permute.xlu2 %1756 }
 0x16a   : > { %v1547_v11 = vcvt.s32.f32 %v1540_v5  ;;  %v1552_v19 = vsel %vm1429_vm14, %v1551_v55, %v5943_v59  ;;  %v4473_v32 = vadd.s32 4294967294, %v1378_v58  ;;  %v1640_v33 = vshrl.u32 %v5970_v41, 16 }
 0x16b   : > { %v1249_v26 = vadd.f32 -0.4999988, %v1248_v8  ;;  %v1256_v6 = vadd.f32 -0.16666654, %v1255_v18  ;;  %v6051_v37 = vmul.u32 %v1655_v39, %v5979_v60  ;;  %v1650_v61 = vadd.s32 %v1648_v4, %v1646_v52 }
 0x16c   : > { %v1548_v1 = vmul.f32 %v1547_v11, %v1545_v43  ;;  %vm4474_vm1 = vcmp.lt.s32.totalorder %v4473_v32, 0  ;;  %v1661_v36 = vshll.u32 %v6040_v29, 16  ;;  %v1657_v24 = vmul.u32 %v1655_v39, %v5953_v15 }
 0x16d   : > { %v1250_v56 = vmul.f32 %v1249_v26, %v1245_v51  ;;  %v1257_v42 = vmul.f32 %v1256_v6, %v1245_v51  ;;  %v1381_v45 = vsel %vm4474_vm1, 0, %v4473_v32  ;;  %v1660_v62 = vmul.u32 %v1656_v57, %v5979_v60 }
 0x16e   : > { %v1549_v10 = vxor.u32 2147483648, %v1548_v1  ;;  %v1382_v59 = vsub.s32 32, %v1381_v45  ;;  %v1386_v55 = vsub.s32 4294967266, %v1381_v45  ;;  %vm1264_vm0 = vcmp.eq.s32.totalorder %v5992_v27, 0 }
 0x16f   : > { %v1258_v12 = vadd.f32 1.0, %v1257_v42  ;;  %v1383_v41 = vshll.u32 %v6023_v63, %v1381_v45  ;;  %v1663_v2 = vshll.u32 %v6051_v37, 16  ;;  %vm1665_vm6 = vc.u32 %v1657_v24, %v1661_v36 }
 0x170   : > { %vm1267_vm7 = vcmp.eq.s32.totalorder %v5992_v27, 2  ;;  %v1550_v51 = vsel %vm1429_vm14, %v1549_v10, %v1548_v1  ;;  %v1384_v15 = vshrl.u32 %v5994_v0, %v1382_v59  ;;  %v1387_v17 = vadd.s32 127, %v1386_v55 }
 0x171   : > { %v1666_v7 = vsel %vm1665_vm6, 1, %v6911_v31  ;;  %v1251_v54 = vadd.f32 1.0, %v1250_v56  ;;  %v1259_v60 = vmul.f32 %v1258_v12, %v6019_v35  ;;  %v6068_v63 = vsel %vm6035_vm13, %v5636_v48, %v1550_v51  ;;  %v6925_v12 = vld [vmem:[#allocation42_spill] sm:$0xff] }
 0x172   : > { %v1667_v57 = vadd.s32 %v1661_v36, %v1657_v24  ;;  %vm1263_vm9 = vcmp.lt.s32.totalorder %v5992_v27, 2  ;;  %v1554_v5 = vsel %vm6035_vm13, 0, %v1552_v19  ;;  %v1555_v0 = vmul.f32 %v6068_v63, %v6068_v63 }
 0x173   : > { %v1385_v30 = vor.u32 %v1384_v15, %v1383_v41  ;;  %v1388_v9 = vshll.u32 %v1387_v17, 23  ;;  %vm1274_vm10 = vcmp.lt.s32.totalorder %v5425_v20, 0  ;;  %v1265_v35 = vxor.u32 2147483648, %v1259_v60  ;;  %v6926_v41 = vld [vmem:[#allocation41_spill] sm:$0xff]  ;;  %v6112_v17 = vpop.permute.xlu2 %1759 }
 0x174   : > { %v1651_v47 = vadd.s32 %v1650_v61, %v1640_v33  ;;  %v1668_v40 = vadd.s32 %v1666_v7, %v1660_v62  ;;  %vm1669_vm12 = vc.u32 %v1667_v57, %v1663_v2  ;;  %v1556_v39 = vmul.f32 -0.001358992, %v1555_v0 }
 0x175   : > { %v1563_v16 = vmul.f32 -0.00019511016, %v1555_v0  ;;  %v6922_v22 = vand.u32 2147483647, %v5425_v20  ;;  %v1389_v58 = vor.u32 4788187, %v1388_v9  ;;  %v1621_v52 = vsel %vm1615_vm2, %v6001_v21, %v1620_v34 }
 0x176   : > { %v1268_v8 = vxor.u32 2147483648, %v1251_v54  ;;  %v1571_v18 = vadd.s32 3, %v1554_v5  ;;  %v1642_v4 = vshrl.u32 %v6004_v50, 16  ;;  %v1670_v43 = vsel %vm1669_vm12, 1, %v6911_v31 }
 0x177   : > { %vm6080_vm14 = vcmp.le.f32.partialorder %v6922_v22, 0.7853982  ;;  %v1557_v11 = vadd.f32 0.041655596, %v1556_v39  ;;  %v1564_v19 = vadd.f32 0.008332121, %v1563_v16  ;;  %v1392_v26 = vcvt.s32.f32 %v1385_v30 }
 0x178   : > { %v1390_v32 = vand.u32 2147483647, %v1389_v58  ;;  %vm1763_vm8 = vcmp.eq.s32.totalorder %v6076_v3, 1  ;;  %v1396_v6 = vsub.s32 4, %v5997_v25  ;;  %v6091_v33 = vadd.s32 %v1651_v47, %v1642_v4  ;;  %v6928_v16 = vld [vmem:[#allocation31_spill] sm:$0xff]  ;;  %v6962_v3 = vld [vmem:[#allocation26_spill] sm:$0xff] }
 0x179   : > { %v1662_v1 = vshrl.u32 %v6040_v29, 16  ;;  %v1672_v13 = vadd.s32 %v1670_v43, %v1668_v40  ;;  %v1266_v21 = vsel %vm1264_vm0, %v1251_v54, %v1265_v35  ;;  %v1558_v34 = vmul.f32 %v1557_v11, %v1555_v0  ;;  %v6927_v35 = vld [vmem:[#allocation47_spill] sm:$0xff] }
 0x17a   : > { %v1565_v50 = vmul.f32 %v1564_v19, %v1555_v0  ;;  %v1393_v61 = vmul.f32 %v1392_v26, %v1390_v32  ;;  %v1269_v36 = vsel %vm1267_vm7, %v1268_v8, %v1259_v60  ;;  %v1664_v56 = vshrl.u32 %v6051_v37, 16  ;;  %v6929_v8 = vld [vmem:[#allocation24_spill] sm:$0xff] }
 0x17b   : > { %v6099_v42 = vadd.s32 %v1667_v57, %v1663_v2  ;;  %v1673_v45 = vadd.s32 %v1672_v13, %v1662_v1  ;;  %v1559_v24 = vadd.f32 -0.4999988, %v1558_v34  ;;  %vm840_vm2 = vcmp.lt.s32.totalorder %v5427_v23, 2  ;;  %v6931_v1 = vld [vmem:[#allocation40_spill] sm:$0xff]  ;;  %v6932_v13 = vld [vmem:[#allocation38_spill] sm:$0xff] }
 0x17c   : > { %v1566_v10 = vadd.f32 -0.16666654, %v1565_v50  ;;  %v1394_v59 = vxor.u32 2147483648, %v1393_v61  ;;  %v1270_v29 = vsel %vm1263_vm9, %v1266_v21, %v1269_v36  ;;  %v1572_v55 = vand.u32 3, %v1571_v18 }
 0x17d   : > { %v1674_v62 = vadd.s32 %v1673_v45, %v1664_v56  ;;  %v854_v51 = vsel %vm840_vm2, %v6926_v41, %v6925_v12  ;;  %v1560_v15 = vmul.f32 %v1559_v24, %v1555_v0  ;;  %vm1677_vm11 = vc.u32 %v6091_v33, %v6099_v42  ;;  %v6933_v24 = vld [vmem:[#allocation52_spill] sm:$0xff] }
 0x17e   : > { %v1567_v37 = vmul.f32 %v1566_v10, %v1555_v0  ;;  %v1395_v2 = vsel %vm1274_vm10, %v1394_v59, %v1393_v61  ;;  %vm1260_vm13 = vweird.f32 %v5389_v53  ;;  %v1397_v27 = vsel %vm1274_vm10, %v1396_v6, %v5997_v25 }
 0x17f   : > { %v6121_v7 = vsel %vm6080_vm14, %v5425_v20, %v1395_v2  ;;  %v1678_v54 = vadd.s32 1, %v1674_v62  ;;  %vm1764_vm1 = vcmp.eq.s32.totalorder %v6112_v17, 1  ;;  %v1561_v60 = vadd.f32 1.0, %v1560_v15 }
 0x180   : > { %v1568_v57 = vadd.f32 1.0, %v1567_v37  ;;  %v858_v5 = vand.u32 65535, %v854_v51  ;;  %v859_v0 = vshrl.u32 %v854_v51, 16  ;;  %v1271_v30 = vsel %vm1260_vm13, nan, %v1270_v29 }
 0x181   : > { %v6126_v53 = vmul.f32 %v6121_v7, %v6121_v7  ;;  %v1675_v9 = vmul.u32 %v5792_v28, %v1621_v52  ;;  %v1679_v25 = vsel %vm1677_vm11, %v1678_v54, %v1674_v62  ;;  %vm997_vm0 = vcmp.lt.s32.totalorder %v6927_v35, 4  ;;  %v6930_v52 = vld [vmem:[#allocation39_spill] sm:$0xff] }
 0x182   : > { %v1569_v47 = vmul.f32 %v1568_v57, %v6068_v63  ;;  %vm1570_vm6 = vweird.f32 %v5636_v48  ;;  %vm1573_vm7 = vcmp.lt.s32.totalorder %v1572_v55, 2  ;;  %v1578_v40 = vxor.u32 2147483648, %v1561_v60  ;;  %v6934_v48 = vld [vmem:[#allocation55_spill] sm:$0xff]  ;;  %v6937_v57 = vld [vmem:[#allocation49_spill] sm:$0xff] }
 0x183   : > { %vm994_vm9 = vcmp.lt.s32.totalorder %v6927_v35, 1  ;;  %vm1574_vm10 = vcmp.eq.s32.totalorder %v1572_v55, 0  ;;  %vm1577_vm12 = vcmp.eq.s32.totalorder %v1572_v55, 2  ;;  %v1680_v39 = vadd.s32 %v1679_v25, %v1675_v9 }
 0x184   : > { %v6134_v22 = vmul.u32 %v859_v0, %v6928_v16  ;;  %v1575_v58 = vxor.u32 2147483648, %v1569_v47  ;;  %v1769_v28 = vsel %vm1763_vm8, %v6929_v8, %v1271_v30  ;;  %v1399_v63 = vsel %vm6080_vm14, 0, %v1397_v27  ;;  %v6935_v27 = vld [vmem:[#allocation56_spill] sm:$0xff] }
 0x185   : > { %v6142_v18 = vmul.u32 %v858_v5, %v6930_v52  ;;  %vm996_vm11 = vcmp.lt.s32.totalorder %v6927_v35, 3  ;;  %v1401_v4 = vmul.f32 -0.001358992, %v6126_v53  ;;  %v1681_v43 = vadd.s32 536870912, %v1680_v39 }
 0x186   : > { %v860_v11 = vmul.u32 %v858_v5, %v6928_v16  ;;  %v864_v19 = vshll.u32 %v6134_v22, 16  ;;  %v1576_v32 = vsel %vm1574_vm10, %v1561_v60, %v1575_v58  ;;  %v1579_v26 = vsel %vm1577_vm12, %v1578_v40, %v1569_v47  ;;  %v6936_v60 = vld [vmem:[#allocation50_spill] sm:$0xff] }
 0x187   : > { %v1408_v6 = vmul.f32 -0.00019511016, %v6126_v53  ;;  %v850_v49 = vsel %vm840_vm2, %v6932_v13, %v6931_v1  ;;  %v1580_v21 = vsel %vm1573_vm7, %v1576_v32, %v1579_v26  ;;  %v6154_v34 = vshrl.u32 %v1681_v43, 30  ;;  %v6941_v13 = vld [vmem:[#allocation35_spill] sm:$0xff] }
 0x188   : > { %vm868_vm14 = vc.u32 %v860_v11, %v864_v19  ;;  %v870_v50 = vadd.s32 %v864_v19, %v860_v11  ;;  %v1581_v61 = vsel %vm1570_vm6, nan, %v1580_v21  ;;  %v863_v36 = vmul.u32 %v859_v0, %v6930_v52  ;;  %v6938_v0 = vld [vmem:[#allocation51_spill] sm:$0xff] }
 0x189   : > { %v866_v56 = vshll.u32 %v6142_v18, 16  ;;  %v869_v45 = vsel %vm868_vm14, 1, %v6911_v31  ;;  %v1771_v10 = vsel %vm1764_vm1, %v6933_v24, %v1581_v61  ;;  %v1402_v59 = vadd.f32 0.041655596, %v1401_v4 }
 0x18a   : > { %v1683_v29 = vshll.u32 %v6154_v34, 30  ;;  %v881_v55 = vshrl.u32 %v850_v49, 16  ;;  %v6165_v62 = vpack.c.bf16 %v1771_v10, %v1769_v28  ;;  %v1409_v12 = vadd.f32 0.008332121, %v1408_v6  ;;  %v6940_v6 = vld [vmem:[#allocation33_spill] sm:$0xff] }
 0x18b   : > { %v871_v41 = vadd.s32 %v869_v45, %v863_v36  ;;  %vm872_vm13 = vc.u32 %v870_v50, %v866_v56  ;;  %v1003_v51 = vsel %vm997_vm0, %v6934_v48, 920167782  ;;  %v880_v2 = vand.u32 65535, %v850_v49  ;;  %v6942_v50 = vld [vmem:[#allocation54_spill] sm:$0xff] }
 0x18c   : > { %v6170_v15 = vsub.s32 %v1680_v39, %v1683_v29  ;;  %v873_v37 = vsel %vm872_vm13, 1, %v6911_v31  ;;  %v774_v54 = vxor.u32 2147483648, %v6935_v27  ;;  %v1002_v5 = vsel %vm994_vm9, %v6937_v57, %v6936_v60  ;;  %1840 = vmatpush.bf16.msra.mxu2 %v6165_v62 }
 0x18d   : > { %v1006_v30 = vsel %vm994_vm9, %v6936_v60, %v6938_v0  ;;  %v1416_v9 = vadd.s32 3, %v1399_v63  ;;  %v1007_v25 = vsel %vm997_vm0, %v993_v38, 1326507024  ;;  %v883_v40 = vmul.u32 %v881_v55, %v6928_v16 }
 0x18e   : > { %vm1685_vm6 = vcmp.lt.s32.totalorder %v6170_v15, 0  ;;  %v1686_v47 = vsub.s32 0, %v6170_v15  ;;  %v1004_v39 = vsel %vm996_vm11, %v6938_v0, %v1003_v51  ;;  %v1403_v58 = vmul.f32 %v1402_v59, %v6126_v53 }
 0x18f   : > { %v1410_v8 = vmul.f32 %v1409_v12, %v6126_v53  ;;  %v875_v28 = vadd.s32 %v873_v37, %v871_v41  ;;  %v823_v38 = vshrl.u32 %v6895_v14, %v6939_v44  ;;  %v884_v63 = vmul.u32 %v880_v2, %v6930_v52 }
 0x190   : > { %v1687_v46 = vsel %vm1685_vm6, %v1686_v47, %v6170_v15  ;;  %v886_v4 = vshll.u32 %v883_v40, 16  ;;  %v1008_v43 = vsel %vm996_vm11, %v6934_v48, %v1007_v25  ;;  %v6203_v11 = vand.u32 3, %v1416_v9 }
 0x191   : > { %v1688_v19 = vclz %v1687_v46  ;;  %v865_v32 = vshrl.u32 %v6134_v22, 16  ;;  %v1676_v26 = vadd.s32 %v6099_v42, %v6091_v33  ;;  %v843_v1 = vsel %vm839_vm4, %v823_v38, %v6940_v6  ;;  %v6943_v42 = vld [vmem:[#allocation34_spill] sm:$0xff] }
 0x192   : > { %v844_v49 = vsel %vm842_vm3, %v6941_v13, 2102212464  ;;  %v882_v21 = vmul.u32 %v880_v2, %v6928_v16  ;;  %vm1584_vm7 = vcmp.lt.s32.totalorder %v6942_v50, 0  ;;  %v1404_v61 = vadd.f32 -0.4999988, %v1403_v58 }
 0x193   : > { %v1411_v36 = vadd.f32 -0.16666654, %v1410_v8  ;;  %v4479_v56 = vadd.s32 4294967294, %v1688_v19  ;;  %v876_v45 = vadd.s32 %v875_v28, %v865_v32  ;;  %v885_v22 = vmul.u32 %v881_v55, %v6930_v52 }
 0x194   : > { %v888_v24 = vshll.u32 %v884_v63, 16  ;;  %vm890_vm10 = vc.u32 %v882_v21, %v886_v4  ;;  %v892_v33 = vadd.s32 %v886_v4, %v882_v21  ;;  %v845_v10 = vsel %vm841_vm5, %v6943_v42, %v844_v49  ;;  %v6948_v21 = vld [vmem:[#allocation45_spill] sm:$0xff] }
 0x195   : > { %vm4480_vm12 = vcmp.lt.s32.totalorder %v4479_v56, 0  ;;  %v867_v59 = vshrl.u32 %v6142_v18, 16  ;;  %v891_v16 = vsel %vm890_vm10, 1, %v6911_v31  ;;  %v1706_v12 = vsub.s32 4, %v6154_v34 }
 0x196   : > { %v1691_v29 = vsel %vm4480_vm12, 0, %v4479_v56  ;;  %v893_v41 = vadd.s32 %v891_v16, %v885_v22  ;;  %vm894_vm3 = vc.u32 %v892_v33, %v888_v24  ;;  %v1405_v48 = vmul.f32 %v1404_v61, %v6126_v53 }
 0x197   : > { %v6944_v52 = vand.u32 2147483647, %v6942_v50  ;;  %v1692_v51 = vsub.s32 32, %v1691_v29  ;;  %v1696_v37 = vsub.s32 4294967266, %v1691_v29  ;;  %v895_v2 = vsel %vm894_vm3, 1, %v6911_v31 }
 0x198   : > { %v1412_v18 = vmul.f32 %v1411_v36, %v6126_v53  ;;  %v6232_v9 = vadd.s32 %v876_v45, %v867_v59  ;;  %v887_v25 = vshrl.u32 %v883_v40, 16  ;;  %v897_v47 = vadd.s32 %v895_v2, %v893_v41 }
 0x199   : > { %vm6226_vm4 = vcmp.le.f32.partialorder %v6944_v52, 0.7853982  ;;  %v1693_v58 = vshll.u32 %v6170_v15, %v1691_v29  ;;  %v1694_v8 = vshrl.u32 %v1676_v26, %v1692_v51  ;;  %v1697_v28 = vadd.s32 127, %v1696_v37 }
 0x19a   : > { %vm995_vm5 = vcmp.lt.s32.totalorder %v6927_v35, 2  ;;  %v846_v46 = vsel %vm840_vm2, %v843_v1, %v845_v10  ;;  %v889_v44 = vshrl.u32 %v884_v63, 16  ;;  %v898_v38 = vadd.s32 %v897_v47, %v887_v25 }
 0x19b   : > { %v1009_v4 = vsel %vm995_vm5, %v1006_v30, %v1008_v43  ;;  %v1695_v19 = vor.u32 %v1694_v8, %v1693_v58  ;;  %v1698_v53 = vshll.u32 %v1697_v28, 23  ;;  %v6240_v32 = vadd.s32 %v892_v33, %v888_v24  ;;  %v6947_v43 = vld [vmem:[#allocation44_spill] sm:$0xff] }
 0x19c   : > { %v1005_v40 = vsel %vm995_vm5, %v1002_v5, %v1004_v39  ;;  %v1707_v15 = vsel %vm1584_vm7, %v1706_v12, %v6154_v34  ;;  %v899_v26 = vadd.s32 %v898_v38, %v889_v44  ;;  %v1013_v6 = vand.u32 65535, %v1009_v4  ;;  %v6949_v34 = vld [vmem:[#allocation25_spill] sm:$0xff] }
 0x19d   : > { %v1014_v23 = vshrl.u32 %v1009_v4, 16  ;;  %v6247_v1 = vadd.f32 1.0, %v1405_v48  ;;  %v1413_v63 = vadd.f32 1.0, %v1412_v18  ;;  %v1699_v13 = vor.u32 4788187, %v1698_v53 }
 0x19e   : > { %vm902_vm2 = vc.u32 %v6232_v9, %v6240_v32  ;;  %v903_v30 = vadd.s32 1, %v899_v26  ;;  %v6253_v61 = vmul.u32 %v1013_v6, %v6948_v21  ;;  %v1035_v5 = vand.u32 65535, %v1005_v40 }
 0x19f   : > { %v1016_v49 = vmul.u32 %v1014_v23, %v6947_v43  ;;  %v1700_v39 = vand.u32 2147483647, %v1699_v13  ;;  %v1702_v36 = vcvt.s32.f32 %v1695_v19  ;;  %v900_v56 = vmul.u32 %v6949_v34, %v846_v46 }
 0x1a0   : > { %v1036_v45 = vshrl.u32 %v1005_v40, 16  ;;  %v1709_v22 = vsel %vm6226_vm4, 0, %v1707_v15  ;;  %v904_v24 = vsel %vm902_vm2, %v903_v30, %v899_v26  ;;  %v1015_v33 = vmul.u32 %v1013_v6, %v6947_v43 }
 0x1a1   : > { %v1019_v42 = vshll.u32 %v1016_v49, 16  ;;  %v1703_v10 = vmul.f32 %v1702_v36, %v1700_v39  ;;  %v905_v59 = vadd.s32 %v904_v24, %v900_v56  ;;  %v1018_v16 = vmul.u32 %v1014_v23, %v6948_v21 }
 0x1a2   : > { %v1038_v29 = vmul.u32 %v1036_v45, %v6947_v43  ;;  %v1021_v12 = vshll.u32 %v6253_v61, 16  ;;  %v1039_v48 = vmul.u32 %v1035_v5, %v6948_v21  ;;  %v1037_v25 = vmul.u32 %v1035_v5, %v6947_v43 }
 0x1a3   : > { %vm1023_vm14 = vc.u32 %v1015_v33, %v1019_v42  ;;  %v1025_v41 = vadd.s32 %v1019_v42, %v1015_v33  ;;  %v1704_v52 = vxor.u32 2147483648, %v1703_v10  ;;  %v906_v51 = vadd.s32 536870912, %v905_v59 }
 0x1a4   : > { %v1024_v37 = vsel %vm1023_vm14, 1, %v6911_v31  ;;  %v1041_v2 = vshll.u32 %v1038_v29, 16  ;;  %v1040_v47 = vmul.u32 %v1036_v45, %v6948_v21  ;;  %v1043_v46 = vshll.u32 %v1039_v48, 16  ;;  %v6950_v21 = vld [vmem:[#allocation43_spill] sm:$0xff] }
 0x1a5   : > { %v1026_v18 = vadd.s32 %v1024_v37, %v1018_v16  ;;  %vm1027_vm13 = vc.u32 %v1025_v41, %v1021_v12  ;;  %v1705_v58 = vsel %vm1584_vm7, %v1704_v52, %v1703_v10  ;;  %v6268_v8 = vshrl.u32 %v906_v51, 30 }
 0x1a6   : > { %v1028_v28 = vsel %vm1027_vm13, 1, %v6911_v31  ;;  %v6274_v44 = vsel %vm6226_vm4, %v6942_v50, %v1705_v58  ;;  %vm1045_vm6 = vc.u32 %v1037_v25, %v1041_v2  ;;  %v1047_v4 = vadd.s32 %v1041_v2, %v1037_v25  ;;  %v6951_v25 = vld [vmem:[#allocation17_spill] sm:$0xff] }
 0x1a7   : > { %v1030_v38 = vadd.s32 %v1028_v28, %v1026_v18  ;;  %v1710_v19 = vmul.f32 %v6274_v44, %v6274_v44  ;;  %v1726_v53 = vadd.s32 3, %v1709_v22  ;;  %v908_v40 = vshll.u32 %v6268_v8, 30 }
 0x1a8   : > { %v1046_v15 = vsel %vm1045_vm6, 1, %v6911_v31  ;;  %v1414_v26 = vmul.f32 %v1413_v63, %v6121_v7  ;;  %v1020_v6 = vshrl.u32 %v1016_v49, 16  ;;  %vm1049_vm7 = vc.u32 %v1047_v4, %v1043_v46 }
 0x1a9   : > { %v1048_v23 = vadd.s32 %v1046_v15, %v1040_v47  ;;  %v1423_v55 = vxor.u32 2147483648, %v6247_v1  ;;  %v1711_v13 = vmul.f32 -0.001358992, %v1710_v19  ;;  %v1718_v30 = vmul.f32 -0.00019511016, %v1710_v19 }
 0x1aa   : > { %v909_v43 = vsub.s32 %v905_v59, %v908_v40  ;;  %v978_v5 = vshrl.u32 %v6895_v14, %v6950_v21  ;;  %v999_v39 = vsel %vm997_vm0, %v6938_v0, 2102212464  ;;  %v1031_v36 = vadd.s32 %v1030_v38, %v1020_v6 }
 0x1ab   : > { %v1050_v34 = vsel %vm1049_vm7, 1, %v6911_v31  ;;  %v1712_v56 = vadd.f32 0.041655596, %v1711_v13  ;;  %v1719_v7 = vadd.f32 0.008332121, %v1718_v30  ;;  %vm1418_vm12 = vcmp.lt.s32.totalorder %v6203_v11, 2 }
 0x1ac   : > { %vm910_vm10 = vcmp.lt.s32.totalorder %v909_v43, 0  ;;  %v911_v63 = vsub.s32 0, %v909_v43  ;;  %v1420_v49 = vxor.u32 2147483648, %v1414_v26  ;;  %v1022_v45 = vshrl.u32 %v6253_v61, 16 }
 0x1ad   : > { %v1042_v22 = vshrl.u32 %v1038_v29, 16  ;;  %v1052_v24 = vadd.s32 %v1050_v34, %v1048_v23  ;;  %v1713_v33 = vmul.f32 %v1712_v56, %v1710_v19  ;;  %v1720_v14 = vmul.f32 %v1719_v7, %v1710_v19 }
 0x1ae   : > { %v912_v42 = vsel %vm910_vm10, %v911_v63, %v909_v43  ;;  %v998_v0 = vsel %vm994_vm9, %v978_v5, %v6937_v57  ;;  %v1000_v59 = vsel %vm996_vm11, %v6936_v60, %v999_v39  ;;  %v6296_v16 = vadd.s32 %v1031_v36, %v1022_v45  ;;  %v6953_v36 = vld [vmem:[#allocation32_spill] sm:$0xff] }
 0x1af   : > { %v913_v10 = vclz %v912_v42  ;;  %v1053_v12 = vadd.s32 %v1052_v24, %v1042_v22  ;;  %vm1419_vm0 = vcmp.eq.s32.totalorder %v6203_v11, 0  ;;  %v1714_v61 = vadd.f32 -0.4999988, %v1713_v33  ;;  %v6956_v24 = vld [vmem:[#allocation28_spill] sm:$0xff] }
 0x1b0   : > { %v1721_v29 = vadd.f32 -0.16666654, %v1720_v14  ;;  %v1044_v41 = vshrl.u32 %v1039_v48, 16  ;;  %vm1422_vm3 = vcmp.eq.s32.totalorder %v6203_v11, 2  ;;  %v1727_v52 = vand.u32 3, %v1726_v53  ;;  %v6952_v53 = vld [vmem:[#allocation37_spill] sm:$0xff] }
 0x1b1   : > { %v4464_v51 = vadd.s32 4294967294, %v913_v10  ;;  %v6300_v37 = vadd.s32 %v1047_v4, %v1043_v46  ;;  %v1715_v57 = vmul.f32 %v1714_v61, %v1710_v19  ;;  %v1001_v18 = vsel %vm995_vm5, %v998_v0, %v1000_v59  ;;  %v6954_v11 = vld [vmem:[#allocation46_spill] sm:$0xff]  ;;  %v6957_v14 = vld [vmem:[#allocation53_spill] sm:$0xff] }
 0x1b2   : > { %v1722_v2 = vmul.f32 %v1721_v29, %v1710_v19  ;;  %v1054_v60 = vadd.s32 %v1053_v12, %v1044_v41  ;;  %vm654_vm9 = vcmp.lt.s32.totalorder %v6951_v25, 0  ;;  %v1421_v47 = vsel %vm1419_vm0, %v6247_v1, %v1420_v49 }
 0x1b3   : > { %v1424_v58 = vsel %vm1422_vm3, %v1423_v55, %v1414_v26  ;;  %vm4465_vm11 = vcmp.lt.s32.totalorder %v4464_v51, 0  ;;  %vm1057_vm4 = vc.u32 %v6296_v16, %v6300_v37  ;;  %v1716_v48 = vadd.f32 1.0, %v1715_v57 }
 0x1b4   : > { %v1723_v28 = vadd.f32 1.0, %v1722_v2  ;;  %v916_v38 = vsel %vm4465_vm11, 0, %v4464_v51  ;;  %v1058_v46 = vadd.s32 1, %v1054_v60  ;;  %v901_v4 = vadd.s32 %v6240_v32, %v6232_v9 }
 0x1b5   : > { %v917_v19 = vsub.s32 32, %v916_v38  ;;  %v921_v35 = vsub.s32 4294967266, %v916_v38  ;;  %v1055_v40 = vmul.u32 %v6952_v53, %v1001_v18  ;;  %v1425_v15 = vsel %vm1418_vm12, %v1421_v47, %v1424_v58  ;;  %v6964_v47 = vld [vmem:[#allocation19_spill] sm:$0xff] }
 0x1b6   : > { %v1724_v1 = vmul.f32 %v1723_v28, %v6274_v44  ;;  %v1733_v26 = vxor.u32 2147483648, %v1716_v48  ;;  %v1059_v6 = vsel %vm1057_vm4, %v1058_v46, %v1054_v60  ;;  %v918_v23 = vshll.u32 %v909_v43, %v916_v38 }
 0x1b7   : > { %v919_v55 = vshrl.u32 %v901_v4, %v917_v19  ;;  %v922_v13 = vadd.s32 127, %v921_v35  ;;  %v1060_v30 = vadd.s32 %v1059_v6, %v1055_v40  ;;  %vm1415_vm5 = vweird.f32 %v5425_v20  ;;  %v6955_v20 = vld [vmem:[#allocation48_spill] sm:$0xff]  ;;  %v6968_v40 = vld [vmem:[#allocation30_spill] sm:$0xff] }
 0x1b8   : > { %vm1729_vm2 = vcmp.eq.s32.totalorder %v1727_v52, 0  ;;  %v1730_v21 = vxor.u32 2147483648, %v1724_v1  ;;  %vm1732_vm14 = vcmp.eq.s32.totalorder %v1727_v52, 2  ;;  %v1426_v9 = vsel %vm1415_vm5, nan, %v1425_v15 }
 0x1b9   : > { %v920_v32 = vor.u32 %v919_v55, %v918_v23  ;;  %v923_v5 = vshll.u32 %v922_v13, 23  ;;  %v1061_v39 = vadd.s32 536870912, %v1060_v30  ;;  %v628_v34 = vmul.f32 %v6954_v11, %v6953_v36 }
 0x1ba   : > { %vm1728_vm13 = vcmp.lt.s32.totalorder %v1727_v52, 2  ;;  %v1731_v44 = vsel %vm1729_vm2, %v1716_v48, %v1730_v21  ;;  %v1734_v56 = vsel %vm1732_vm14, %v1733_v26, %v1724_v1  ;;  %vm1725_vm6 = vweird.f32 %v6942_v50 }
 0x1bb   : > { %v1735_v43 = vsel %vm1728_vm13, %v1731_v44, %v1734_v56  ;;  %v924_v7 = vor.u32 4788187, %v923_v5  ;;  %v6318_v63 = vshrl.u32 %v1061_v39, 30  ;;  %v637_v49 = vmul.f32 %v6955_v20, %v6953_v36 }
 0x1bc   : > { %v775_v45 = vsel %vm654_vm9, %v774_v54, %v6935_v27  ;;  %v1736_v22 = vsel %vm1725_vm6, nan, %v1735_v43  ;;  %v1770_v33 = vsel %vm1763_vm8, %v6956_v24, %v1426_v9  ;;  %v927_v0 = vcvt.s32.f32 %v920_v32 }
 0x1bd   : > { %v1772_v50 = vsel %vm1764_vm1, %v6957_v14, %v1736_v22  ;;  %v925_v42 = vand.u32 2147483647, %v924_v7  ;;  %v1063_v10 = vshll.u32 %v6318_v63, 30  ;;  %v6958_v59 = vand.u32 2147483647, %v6951_v25 }
 0x1be   : > { %v6340_v27 = vpack.c.bf16 %v1772_v50, %v1770_v33  ;;  %v6963_v61 = vsel %vm5404_vm15, 0, %v6962_v3  ;;  %v629_v51 = vadd.f32 -0.4999988, %v628_v34  ;;  %v638_v57 = vadd.f32 1.0, %v637_v49 }
 0x1bf   : > { %vm6336_vm7 = vcmp.le.f32.partialorder %v6958_v59, 0.7853982  ;;  %v641_v29 = vadd.s32 3, %v6963_v61  ;;  %v928_v41 = vmul.f32 %v927_v0, %v925_v42  ;;  %v1064_v52 = vsub.s32 %v1060_v30, %v1063_v10  ;;  %v6969_v61 = vld [vmem:[#allocation20_spill] sm:$0xff] }
 0x1c0   : > { %v6349_v17 = vsel %vm6336_vm7, %v6951_v25, %v775_v45  ;;  %1869 = vmatpush.bf16.msra.mxu3 %v6340_v27  ;;  %vm809_vm15 = vcmp.lt.s32.totalorder %v6964_v47, 0  ;;  %v6965_v48 = vand.u32 2147483647, %v6964_v47  ;;  %v630_v4 = vmul.f32 %v629_v51, %v6953_v36 }
 0x1c1   : > { %v929_v2 = vxor.u32 2147483648, %v928_v41  ;;  %vm1065_vm8 = vcmp.lt.s32.totalorder %v1064_v52, 0  ;;  %v1066_v18 = vsub.s32 0, %v1064_v52  ;;  %v6354_v60 = vmul.f32 %v6349_v17, %v6349_v17 }
 0x1c2   : > { %v642_v58 = vand.u32 3, %v641_v29  ;;  %vm6359_vm1 = vcmp.le.f32.partialorder %v6965_v48, 0.7853982  ;;  %v931_v19 = vsub.s32 4, %v6268_v8  ;;  %v639_v15 = vmul.f32 %v638_v57, %v6968_v40  ;;  %v6383_v48 = vpop.permute.xlu0 %1750 }
 0x1c3   : > { %v930_v38 = vsel %vm809_vm15, %v929_v2, %v928_v41  ;;  %v1067_v46 = vsel %vm1065_vm8, %v1066_v18, %v1064_v52  ;;  %v788_v26 = vmul.f32 -0.00019511016, %v6354_v60  ;;  %v631_v13 = vadd.f32 1.0, %v630_v4 }
 0x1c4   : > { %v933_v35 = vsel %vm6359_vm1, %v6964_v47, %v930_v38  ;;  %v1068_v53 = vclz %v1067_v46  ;;  %vm644_vm10 = vcmp.eq.s32.totalorder %v642_v58, 0  ;;  %v932_v30 = vsel %vm809_vm15, %v931_v19, %v6268_v8  ;;  %v6386_v38 = vpop.permute.xlu1 %1753 }
 0x1c5   : > { %v935_v1 = vmul.f32 %v933_v35, %v933_v35  ;;  %v645_v21 = vxor.u32 2147483648, %v639_v15  ;;  %v789_v39 = vadd.f32 0.008332121, %v788_v26  ;;  %v1056_v36 = vadd.s32 %v6300_v37, %v6296_v16 }
 0x1c6   : > { %v4467_v6 = vadd.s32 4294967294, %v1068_v53  ;;  %v781_v44 = vmul.f32 -0.001358992, %v6354_v60  ;;  %v934_v56 = vsel %vm6359_vm1, 0, %v932_v30  ;;  %v648_v20 = vxor.u32 2147483648, %v631_v13 }
 0x1c7   : > { %v936_v23 = vmul.f32 -0.001358992, %v935_v1  ;;  %v943_v55 = vmul.f32 -0.00019511016, %v935_v1  ;;  %v646_v22 = vsel %vm644_vm10, %v631_v13, %v645_v21  ;;  %v790_v14 = vmul.f32 %v789_v39, %v6354_v60 }
 0x1c8   : > { %vm4468_vm12 = vcmp.lt.s32.totalorder %v4467_v6, 0  ;;  %v951_v16 = vadd.s32 3, %v934_v56  ;;  %vm647_vm0 = vcmp.eq.s32.totalorder %v642_v58, 2  ;;  %v782_v42 = vadd.f32 0.041655596, %v781_v44  ;;  %v6976_v44 = vld [vmem:[#allocation18_spill] sm:$0xff] }
 0x1c9   : > { %v937_v9 = vadd.f32 0.041655596, %v936_v23  ;;  %v944_v32 = vadd.f32 0.008332121, %v943_v55  ;;  %v1071_v5 = vsel %vm4468_vm12, 0, %v4467_v6  ;;  %vm643_vm3 = vcmp.lt.s32.totalorder %v642_v58, 2 }
 0x1ca   : > { %v1072_v11 = vsub.s32 32, %v1071_v5  ;;  %v1076_v34 = vsub.s32 4294967266, %v1071_v5  ;;  %v1073_v8 = vshll.u32 %v1064_v52, %v1071_v5  ;;  %v649_v59 = vsel %vm647_vm0, %v648_v20, %v639_v15  ;;  %v6970_v58 = vld [vmem:[#allocation16_spill] sm:$0xff]  ;;  %v6971_v15 = vld [vmem:[#allocation22_spill] sm:$0xff] }
 0x1cb   : > { %v938_v43 = vmul.f32 %v937_v9, %v935_v1  ;;  %v945_v7 = vmul.f32 %v944_v32, %v935_v1  ;;  %v650_v3 = vsel %vm643_vm3, %v646_v22, %v649_v59  ;;  %v776_v29 = vsub.s32 4, %v6969_v61 }
 0x1cc   : > { %v1074_v49 = vshrl.u32 %v1056_v36, %v1072_v11  ;;  %v1077_v45 = vadd.s32 127, %v1076_v34  ;;  %v791_v51 = vadd.f32 -0.16666654, %v790_v14  ;;  %v952_v57 = vand.u32 3, %v951_v16  ;;  %v6975_v36 = vld [vmem:[#allocation14_spill] sm:$0xff] }
 0x1cd   : > { %v939_v24 = vadd.f32 -0.4999988, %v938_v43  ;;  %v946_v33 = vadd.f32 -0.16666654, %v945_v7  ;;  %v783_v28 = vmul.f32 %v782_v42, %v6354_v60  ;;  %vm1761_vm11 = vcmp.eq.s32.totalorder %v6383_v48, 1  ;;  %v4716_v48 = vld [vmem:[%s6765_s4 + $0x18] sm:$0xff] }
 0x1ce   : > { %v1075_v37 = vor.u32 %v1074_v49, %v1073_v8  ;;  %v1078_v50 = vshll.u32 %v1077_v45, 23  ;;  %vm640_vm4 = vweird.f32 %v6970_v58  ;;  %vm1762_vm5 = vcmp.eq.s32.totalorder %v6386_v38, 1  ;;  %v4713_v49 = vld [vmem:[%s6765_s4] sm:$0xff] }
 0x1cf   : > { %v940_v0 = vmul.f32 %v939_v24, %v935_v1  ;;  %v947_v10 = vmul.f32 %v946_v33, %v935_v1  ;;  %v651_v53 = vsel %vm640_vm4, nan, %v650_v3  ;;  %v777_v40 = vsel %vm654_vm9, %v776_v29, %v6969_v61 }
 0x1d0   : > { %v1079_v54 = vor.u32 4788187, %v1078_v50  ;;  %v1082_v18 = vcvt.s32.f32 %v1075_v37  ;;  %vm964_vm2 = vcmp.lt.s32.totalorder %v6971_v15, 0  ;;  %v792_v26 = vmul.f32 %v791_v51, %v6354_v60 }
 0x1d1   : > { %v941_v41 = vadd.f32 1.0, %v940_v0  ;;  %v948_v52 = vadd.f32 1.0, %v947_v10  ;;  %vm954_vm14 = vcmp.eq.s32.totalorder %v952_v57, 0  ;;  %vm957_vm13 = vcmp.eq.s32.totalorder %v952_v57, 2 }
 0x1d2   : > { %v1080_v2 = vand.u32 2147483647, %v1079_v54  ;;  %v784_v6 = vadd.f32 -0.4999988, %v783_v28  ;;  %vm953_vm6 = vcmp.lt.s32.totalorder %v952_v57, 2  ;;  %vm950_vm8 = vweird.f32 %v6964_v47 }
 0x1d3   : > { %v949_v46 = vmul.f32 %v948_v52, %v933_v35  ;;  %v958_v4 = vxor.u32 2147483648, %v941_v41  ;;  %v6972_v30 = vand.u32 2147483647, %v6971_v15  ;;  %v779_v32 = vsel %vm6336_vm7, 0, %v777_v40 }
 0x1d4   : > { %v1083_v19 = vmul.f32 %v1082_v18, %v1080_v2  ;;  %v1086_v39 = vsub.s32 4, %v6318_v63  ;;  %v1765_v11 = vsel %vm1761_vm11, %v6975_v36, %v651_v53  ;;  %v793_v34 = vadd.f32 1.0, %v792_v26  ;;  %v1957_v36 = vpop.permute.xlu2 %1956 }
 0x1d5   : > { %v955_v1 = vxor.u32 2147483648, %v949_v46  ;;  %v959_v55 = vsel %vm957_vm13, %v958_v4, %v949_v46  ;;  %vm6399_vm15 = vcmp.le.f32.partialorder %v6972_v30, 0.7853982  ;;  %v785_v12 = vmul.f32 %v784_v6, %v6354_v60 }
 0x1d6   : > { %v1084_v35 = vxor.u32 2147483648, %v1083_v19  ;;  %v796_v45 = vadd.s32 3, %v779_v32  ;;  %v1087_v22 = vsel %vm964_vm2, %v1086_v39, %v6318_v63  ;;  %vm1821_vm9 = vcmask 261120  }
 0x1d7   : > { %v956_v23 = vsel %vm954_vm14, %v941_v41, %v955_v1  ;;  %v794_v24 = vmul.f32 %v793_v34, %v6349_v17  ;;  %v786_v16 = vadd.f32 1.0, %v785_v12  ;;  %v1089_v60 = vsel %vm6399_vm15, 0, %v1087_v22  ;;  %v6977_v1 = vld [vmem:[#allocation15_spill] sm:$0xff] }
 0x1d8   : > { %v960_v13 = vsel %vm953_vm6, %v956_v23, %v959_v55  ;;  %v1085_v9 = vsel %vm964_vm2, %v1084_v35, %v1083_v19  ;;  %v797_v42 = vand.u32 3, %v796_v45  ;;  %v1106_v54 = vadd.s32 3, %v1089_v60  ;;  %v4714_v19 = vld [vmem:[%s6765_s4 + $0x8] sm:$0xff]  ;;  %v6978_v35 = vld [vmem:[#allocation21_spill] sm:$0xff] }
 0x1d9   : > { %v961_v5 = vsel %vm950_vm8, nan, %v960_v13  ;;  %v1088_v47 = vsel %vm6399_vm15, %v6971_v15, %v1085_v9  ;;  %v800_v0 = vxor.u32 2147483648, %v794_v24  ;;  %v803_v3 = vxor.u32 2147483648, %v786_v16 }
 0x1da   : > { %v1767_v56 = vsel %vm1762_vm5, %v6976_v44, %v961_v5  ;;  %v1090_v43 = vmul.f32 %v1088_v47, %v1088_v47  ;;  %vm799_vm7 = vcmp.eq.s32.totalorder %v797_v42, 0  ;;  %vm802_vm1 = vcmp.eq.s32.totalorder %v797_v42, 2 }
 0x1db   : > { %v6417_v7 = vpack.c.bf16 %v1767_v56, %v1765_v11  ;;  %v801_v17 = vsel %vm799_vm7, %v786_v16, %v800_v0  ;;  %v1107_v52 = vand.u32 3, %v1106_v54  ;;  %vm798_vm10 = vcmp.lt.s32.totalorder %v797_v42, 2 }
 0x1dc   : > { %v1091_v20 = vmul.f32 -0.001358992, %v1090_v43  ;;  %v1098_v8 = vmul.f32 -0.00019511016, %v1090_v43  ;;  %v804_v51 = vsel %vm802_vm1, %v803_v3, %v794_v24  ;;  %vm795_vm12 = vweird.f32 %v6951_v25 }
 0x1dd   : > { %1841 = vmatpush.bf16.msra.mxu2 %v6417_v7  ;;  %v805_v18 = vsel %vm798_vm10, %v801_v17, %v804_v51  ;;  %vm1109_vm0 = vcmp.eq.s32.totalorder %v1107_v52, 0  ;;  %vm1112_vm3 = vcmp.eq.s32.totalorder %v1107_v52, 2  ;;  %vm1108_vm4 = vcmp.lt.s32.totalorder %v1107_v52, 2 }
 0x1de   : > { %v1092_v33 = vadd.f32 0.041655596, %v1091_v20  ;;  %v1099_v14 = vadd.f32 0.008332121, %v1098_v8  ;;  %v806_v46 = vsel %vm795_vm12, nan, %v805_v18  ;;  %vm1105_vm2 = vweird.f32 %v6971_v15  ;;  %v4715_v15 = vld [vmem:[%s6765_s4 + $0x10] sm:$0xff]  ;;  %v1948_v20 = vpop.permute.xlu2 %1947 }
 0x1df   : > { %v1766_v26 = vsel %vm1761_vm11, %v6977_v1, %v806_v46  ;;  %v4983_v44 = vmov 839922192   ;;  %vm2128_vm11 = vcmask 523264  }
 0x1e0   : > { %v1093_v37 = vmul.f32 %v1092_v33, %v1090_v43  ;;  %v1100_v50 = vmul.f32 %v1099_v14, %v1090_v43  ;;  %4497 = vmatmul.msk.bf16.vlgmr.msra.gmra.mxu2 %vm1821_vm9, %v4713_v49  ;;  %v1906_v56 = vunpack.c.l.s4 %v4983_v44 }
 0x1e2   : > { %v1094_v10 = vadd.f32 -0.4999988, %v1093_v37  ;;  %v1101_v59 = vadd.f32 -0.16666654, %v1100_v50 }
 0x1e4   : > { %v1095_v63 = vmul.f32 %v1094_v10, %v1090_v43  ;;  %v1102_v61 = vmul.f32 %v1101_v59, %v1090_v43  ;;  %v1939_v43 = vpop.permute.xlu1 %1938 }
 0x1e6   : > { %v1096_v29 = vadd.f32 1.0, %v1095_v63  ;;  %v1103_v41 = vadd.f32 1.0, %v1102_v61  ;;  %v1903_v61 = vpop.permute.xlu2 %1902 }
 0x1e8   : > { %v1104_v57 = vmul.f32 %v1103_v41, %v1088_v47  ;;  %v1113_v2 = vxor.u32 2147483648, %v1096_v29  ;;  %v1966_v47 = vpop.permute.xlu0 %1965 }
 0x1ea   : > { %v1110_v28 = vxor.u32 2147483648, %v1104_v57  ;;  %v1114_v58 = vsel %vm1112_vm3, %v1113_v2, %v1104_v57 }
 0x1ec   : > { %v1111_v4 = vsel %vm1109_vm0, %v1096_v29, %v1110_v28  ;;  %v1930_v14 = vpop.permute.xlu1 %1929 }
 0x1ed   : > { %v1115_v53 = vsel %vm1108_vm4, %v1111_v4, %v1114_v58 }
 0x1ee   : > { %v1116_v40 = vsel %vm1105_vm2, nan, %v1115_v53 }
 0x1ef   : > { %v1768_v25 = vsel %vm1762_vm5, %v6978_v35, %v1116_v40 }
 0x1f0   : > { %v6442_v6 = vpack.c.bf16 %v1768_v25, %v1766_v26  ;;  %4498 = vmatmul.msk.bf16.gmra.mxu2 %vm1821_vm9, %v4714_v19  ;;  %v1921_v12 = vpop.permute.xlu0 %1920 }
 0x1f2   : > { %1870 = vmatpush.bf16.msra.mxu3 %v6442_v6 }
 0x1f5   : > { %4501 = vmatmul.msk.bf16.vlgmr.msra.gmra.mxu3 %vm1821_vm9, %v4713_v49  ;;  %v6460_v49 = vunpack.c.0.s8 %v1906_v56 }
 0x1f7   : > { %v1971_v22 = vperm.slane %v1966_v47, %v6460_v49  ;;  %v1926_v24 = vperm.slane %v1921_v12, %v6460_v49  ;;  %v1962_v33 = vperm.slane %v1957_v36, %v6460_v49  ;;  %v1944_v60 = vperm.slane %v1939_v43, %v6460_v49  ;;  %v6979_v43 = vld [vmem:[#allocation9_spill] sm:$0xff] }
 0x1f8   : > { %v1912_v10 = vpop.permute.xlu0 %1911  ;;  %v1953_v59 = vperm.slane %v1948_v20, %v6460_v49  ;;  %v1935_v3 = vperm.slane %v1930_v14, %v6460_v49  ;;  %v1908_v58 = vperm.slane %v1903_v61, %v6460_v49 }
 0x1f9   : > { %v1995_v42 = vunpack.c.l.bf16 %v1971_v22  ;;  %v1990_v0 = vunpack.c.l.bf16 %v1926_v24  ;;  %v1994_v63 = vunpack.c.l.bf16 %v1962_v33  ;;  %v1992_v2 = vunpack.c.l.bf16 %v1944_v60  ;;  %v6980_v22 = vld [vmem:[#allocation8_spill] sm:$0xff]  ;;  %v6981_v24 = vld [vmem:[#allocation13_spill] sm:$0xff] }
 0x1fa   : > { %v1917_v18 = vperm.slane %v1912_v10, %v6460_v49  ;;  %v1993_v4 = vunpack.c.l.bf16 %v1953_v59  ;;  %v1991_v40 = vunpack.c.l.bf16 %v1935_v3 }
 0x1fc   : > { %v1989_v12 = vunpack.c.l.bf16 %v1917_v18 }
 0x200   : > { %4499 = vmatmul.msk.bf16.gmra.mxu2 %vm1821_vm9, %v4715_v15 }
 0x205   : > { %4502 = vmatmul.msk.bf16.gmra.mxu3 %vm1821_vm9, %v4714_v19 }
 0x210   : > { %4500 = vmatmul.msk.bf16.gmra.mxu2 %vm1821_vm9, %v4716_v48 }
 0x215   : > { %4503 = vmatmul.msk.bf16.gmra.mxu3 %vm1821_vm9, %v4715_v15 }
 0x225   : > { %4504 = vmatmul.msk.bf16.gmra.mxu3 %vm1821_vm9, %v4716_v48 }
 0x263   : > { %v1843_v38 = vpop.f32.mrf.mxu2 }
 0x26b   : > { %v1845_v23 = vpop.f32.mrf.mxu2 }
 0x273   : > { %v1848_v30 = vpop.f32.mrf.mxu2 }
 0x278   : > { %v1872_v55 = vpop.f32.mrf.mxu3 }
 0x279   : > { %v6458_v13 = vpack.c.bf16 %v1872_v55, %v1843_v38 }
 0x27b   : > { %v1850_v9 = vpop.f32.mrf.mxu2  ;;  %v1972_v15 = vunpack.c.l.bf16 %v6458_v13  ;;  %v1973_v47 = vunpack.c.h.bf16 %v6458_v13 }
 0x280   : > { %v1874_v21 = vpop.f32.mrf.mxu3 }
 0x281   : > { %v1893_v1 = vpack.c.bf16 %v1874_v21, %v1845_v23 }
 0x283   : > { %v1853_v39 = vpop.f32.mrf.mxu2  ;;  %v1974_v23 = vunpack.c.l.bf16 %v1893_v1  ;;  %v1975_v21 = vunpack.c.h.bf16 %v1893_v1 }
 0x285   : > { %v1999_v3 = vadd.f32 %v1989_v12, %v1975_v21 }
 0x288   : > { %v1877_v32 = vpop.f32.mrf.mxu3 }
 0x289   : > { %v1894_v17 = vpack.c.bf16 %v1877_v32, %v1848_v30 }
 0x28b   : > { %v1855_v34 = vpop.f32.mrf.mxu2  ;;  %v1976_v48 = vunpack.c.l.bf16 %v1894_v17  ;;  %v1977_v30 = vunpack.c.h.bf16 %v1894_v17 }
 0x28d   : > { %v2000_v33 = vadd.f32 %v1990_v0, %v1976_v48  ;;  %v2001_v14 = vadd.f32 %v1990_v0, %v1977_v30 }
 0x290   : > { %v1879_v5 = vpop.f32.mrf.mxu3 }
 0x291   : > { %v1895_v29 = vpack.c.bf16 %v1879_v5, %v1850_v9 }
 0x293   : > { %v1858_v45 = vpop.f32.mrf.mxu2  ;;  %v1978_v26 = vunpack.c.l.bf16 %v1895_v29  ;;  %v1979_v35 = vunpack.c.h.bf16 %v1895_v29 }
 0x295   : > { %v2002_v44 = vadd.f32 %v1991_v40, %v1978_v26  ;;  %v2003_v56 = vadd.f32 %v1991_v40, %v1979_v35  ;;  %v6983_v26 = vld [vmem:[#allocation10_spill] sm:$0xff]  ;;  %v6984_v35 = vld [vmem:[#allocation23_spill] sm:$0xff] }
 0x298   : > { %v1882_v11 = vpop.f32.mrf.mxu3 }
 0x299   : > { %v1896_v37 = vpack.c.bf16 %v1882_v11, %v1853_v39  ;;  %v1988_v39 = vunpack.c.l.bf16 %v1908_v58  ;;  %v6982_v58 = vld [vmem:[#allocation12_spill] sm:$0xff] }
 0x29b   : > { %v1980_v28 = vunpack.c.l.bf16 %v1896_v37  ;;  %v1981_v46 = vunpack.c.h.bf16 %v1896_v37  ;;  %v1860_v25 = vpop.f32.mrf.mxu2  ;;  %v1996_v13 = vadd.f32 %v1988_v39, %v1972_v15  ;;  %v1997_v59 = vadd.f32 %v1988_v39, %v1973_v47 }
 0x29d   : > { %v2004_v9 = vadd.f32 %v1992_v2, %v1980_v28  ;;  %v2005_v32 = vadd.f32 %v1992_v2, %v1981_v46  ;;  %v2012_v0 = vpack.c.bf16 %v1997_v59, %v1996_v13 }
 0x2a0   : > { %v1884_v8 = vpop.f32.mrf.mxu3 }
 0x2a1   : > { %v1897_v16 = vpack.c.bf16 %v1884_v8, %v1855_v34  ;;  %v4984_v34 = vmov 1  }
 0x2a2   : > { %4838 = vset.pattern.permute.xlu0 %v4984_v34  ;;  %4837 = vset.pattern.permute.xlu2 %v4984_v34 }
 0x2a3   : > { %v1982_v41 = vunpack.c.l.bf16 %v1897_v16  ;;  %v1983_v52 = vunpack.c.h.bf16 %v1897_v16  ;;  %2240 = vperm.xlu0 %4838, %v6979_v43   ;;  %4836 = vset.pattern.permute.xlu1 %v4984_v34  ;;  %v2016_v16 = vpack.c.bf16 %v2005_v32, %v2004_v9 }
 0x2a4   : > { %2264 = vperm.xlu2 %4837, %v6980_v22   ;;  %2256 = vperm.xlu1 %4836, %v6981_v24  }
 0x2a5   : > { %v2006_v38 = vadd.f32 %v1993_v4, %v1982_v41  ;;  %v2007_v55 = vadd.f32 %v1993_v4, %v1983_v52  ;;  %v2014_v41 = vpack.c.bf16 %v2001_v14, %v2000_v33  ;;  %v2028_v52 = vunpack.c.l.bf16 %v2016_v16 }
 0x2a7   : > { %v2024_v48 = vunpack.c.l.bf16 %v2014_v41 }
 0x2a8   : > { %v1887_v50 = vpop.f32.mrf.mxu3 }
 0x2a9   : > { %v1898_v54 = vpack.c.bf16 %v1887_v50, %v1858_v45  ;;  %v2017_v45 = vpack.c.bf16 %v2007_v55, %v2006_v38  ;;  %v2025_v38 = vunpack.c.h.bf16 %v2014_v41 }
 0x2ab   : > { %v1984_v51 = vunpack.c.l.bf16 %v1898_v54  ;;  %v1985_v57 = vunpack.c.h.bf16 %v1898_v54  ;;  %v1998_v54 = vadd.f32 %v1989_v12, %v1974_v23  ;;  %v2030_v17 = vunpack.c.l.bf16 %v2017_v45  ;;  %2216 = vperm.xlu0 %4838, %v6982_v58  }
 0x2ac   : > { %v2031_v29 = vunpack.c.h.bf16 %v2017_v45  ;;  %2224 = vperm.xlu2 %4837, %v6983_v26   ;;  %2248 = vperm.xlu1 %4836, %v6984_v35   ;;  %v2041_v45 = vmul.f32 0.010009766, %v2025_v38 }
 0x2ad   : > { %v2008_v19 = vadd.f32 %v1994_v63, %v1984_v51  ;;  %v2009_v53 = vadd.f32 %v1994_v63, %v1985_v57  ;;  %v2015_v63 = vpack.c.bf16 %v2003_v56, %v2002_v44  ;;  %v2029_v51 = vunpack.c.h.bf16 %v2016_v16 }
 0x2ae   : > { %v2046_v40 = vmul.f32 0.010009766, %v2030_v17  ;;  %v2047_v1 = vmul.f32 0.010009766, %v2031_v29  ;;  %v2020_v44 = vunpack.c.l.bf16 %v2012_v0  ;;  %v2021_v56 = vunpack.c.h.bf16 %v2012_v0  ;;  %v4719_v0 = vld [vmem:[#allocation2 + $0x10] sm:$0xff] }
 0x2af   : > { %v2018_v36 = vpack.c.bf16 %v2009_v53, %v2008_v19  ;;  %v2026_v46 = vunpack.c.l.bf16 %v2015_v63  ;;  %v2027_v4 = vunpack.c.h.bf16 %v2015_v63  ;;  %v2045_v15 = vmul.f32 0.010009766, %v2029_v51 }
 0x2b0   : > { %v1889_v5 = vpop.f32.mrf.mxu3  ;;  %v2086_v23 = vmax.f32 %v2030_v17, %v2046_v40  ;;  %v2087_v21 = vmax.f32 %v2031_v29, %v2047_v1  ;;  %v2037_v63 = vmul.f32 0.010009766, %v2021_v56 }
 0x2b1   : > { %v1899_v11 = vpack.c.bf16 %v1889_v5, %v1860_v25  ;;  %v2032_v50 = vunpack.c.l.bf16 %v2018_v36  ;;  %v2033_v10 = vunpack.c.h.bf16 %v2018_v36  ;;  %v2044_v25 = vmul.f32 0.010009766, %v2028_v52 }
 0x2b2   : > { %v2042_v5 = vmul.f32 0.010009766, %v2026_v46  ;;  %v2043_v39 = vmul.f32 0.010009766, %v2027_v4 }
 0x2b3   : > { %v1986_v20 = vunpack.c.l.bf16 %v1899_v11  ;;  %v1987_v8 = vunpack.c.h.bf16 %v1899_v11  ;;  %v2048_v2 = vmul.f32 0.010009766, %v2032_v50  ;;  %v2049_v28 = vmul.f32 0.010009766, %v2033_v10 }
 0x2b4   : > { %v2084_v12 = vmax.f32 %v2028_v52, %v2044_v25  ;;  %v2082_v13 = vmax.f32 %v2026_v46, %v2042_v5  ;;  %v4720_v46 = vld [vmem:[#allocation2 + $0x18] sm:$0xff] }
 0x2b5   : > { %v2010_v60 = vadd.f32 %v1995_v42, %v1986_v20  ;;  %v2011_v37 = vadd.f32 %v1995_v42, %v1987_v8  ;;  %v2013_v42 = vpack.c.bf16 %v1999_v3, %v1998_v54  ;;  %v2088_v55 = vmax.f32 %v2032_v50, %v2048_v2  ;;  %v6985_v50 = vld [vmem:[#allocation36_spill] sm:$0xff] }
 0x2b6   : > { %v2089_v9 = vmax.f32 %v2033_v10, %v2049_v28  ;;  %v2085_v20 = vmax.f32 %v2029_v51, %v2045_v15  ;;  %v2040_v8 = vmul.f32 0.010009766, %v2024_v48  ;;  %v2096_v14 = vpack.c.bf16 %v2086_v23, %v2084_v12  ;;  %2208 = vperm.xlu2 %4837, %v6985_v50   ;;  %v6986_v10 = vld [vmem:[#allocation11_spill] sm:$0xff]  ;;  %v4718_v28 = vld [vmem:[#allocation2 + $0x8] sm:$0xff] }
 0x2b7   : > { %v2019_v61 = vpack.c.bf16 %v2011_v37, %v2010_v60  ;;  %v2022_v47 = vunpack.c.l.bf16 %v2013_v42  ;;  %v2023_v36 = vunpack.c.h.bf16 %v2013_v42  ;;  %v2083_v60 = vmax.f32 %v2027_v4, %v2043_v39  ;;  %2232 = vperm.xlu1 %4836, %v6986_v10  }
 0x2b8   : > { %v2097_v16 = vpack.c.bf16 %v2087_v21, %v2085_v20  ;;  %v2080_v59 = vmax.f32 %v2024_v48, %v2040_v8  ;;  %v2081_v54 = vmax.f32 %v2025_v38, %v2041_v45  ;;  %v2036_v3 = vmul.f32 0.010009766, %v2020_v44 }
 0x2b9   : > { %v2034_v57 = vunpack.c.l.bf16 %v2019_v61  ;;  %v2035_v18 = vunpack.c.h.bf16 %v2019_v61  ;;  %v2038_v33 = vmul.f32 0.010009766, %v2022_v47  ;;  %v2039_v37 = vmul.f32 0.010009766, %v2023_v36 }
 0x2ba   : > { %v2094_v61 = vpack.c.bf16 %v2082_v13, %v2080_v59  ;;  %v2095_v17 = vpack.c.bf16 %v2083_v60, %v2081_v54  ;;  %v2076_v52 = vmax.f32 %v2020_v44, %v2036_v3  ;;  %v2077_v51 = vmax.f32 %v2021_v56, %v2037_v63 }
 0x2bb   : > { %v2050_v19 = vmul.f32 0.010009766, %v2034_v57  ;;  %v2051_v53 = vmul.f32 0.010009766, %v2035_v18  ;;  %v2078_v29 = vmax.f32 %v2022_v47, %v2038_v33  ;;  %v2079_v41 = vmax.f32 %v2023_v36, %v2039_v37 }
 0x2bd   : > { %v2090_v30 = vmax.f32 %v2034_v57, %v2050_v19  ;;  %v2091_v32 = vmax.f32 %v2035_v18, %v2051_v53  ;;  %v2092_v57 = vpack.c.bf16 %v2078_v29, %v2076_v52  ;;  %v2093_v2 = vpack.c.bf16 %v2079_v41, %v2077_v51  ;;  %v4717_v18 = vld [vmem:[#allocation2] sm:$0xff] }
 0x2bf   : > { %v2098_v11 = vpack.c.bf16 %v2090_v30, %v2088_v55  ;;  %v2099_v34 = vpack.c.bf16 %v2091_v32, %v2089_v9 }
 0x2c1   : > { %2145 = vmatpush.bf16.msrb.mxu0 %v2098_v11  ;;  %2174 = vmatpush.bf16.msrb.mxu1 %v2099_v34 }
 0x2c5   : > { %2146 = vmatpush.bf16.msrb.mxu0 %v2096_v14  ;;  %2175 = vmatpush.bf16.msrb.mxu1 %v2097_v16 }
 0x2c9   : > { %2147 = vmatpush.bf16.msrb.mxu0 %v2094_v61  ;;  %2176 = vmatpush.bf16.msrb.mxu1 %v2095_v17 }
 0x2cd   : > { %2148 = vmatpush.bf16.msrb.mxu0 %v2092_v57  ;;  %2177 = vmatpush.bf16.msrb.mxu1 %v2093_v2 }
 0x2d0   : > { %4521 = vmatmul.msk.bf16.vlgmr.msrb.gmra.mxu0 %vm2128_vm11, %v4717_v18  ;;  %4525 = vmatmul.msk.bf16.vlgmr.msrb.gmra.mxu1 %vm2128_vm11, %v4717_v18 }
 0x2e0   : > { %4522 = vmatmul.msk.bf16.gmra.mxu0 %vm2128_vm11, %v4718_v28  ;;  %4526 = vmatmul.msk.bf16.gmra.mxu1 %vm2128_vm11, %v4718_v28 }
 0x2f0   : > { %4523 = vmatmul.msk.bf16.gmra.mxu0 %vm2128_vm11, %v4719_v0  ;;  %4527 = vmatmul.msk.bf16.gmra.mxu1 %vm2128_vm11, %v4719_v0 }
 0x2fe   : > { %v6490_v38 = vpop.permute.xlu2 %2264 }
 0x2ff   : > { %v2270_v13 = vperm.slane %v6490_v38, %v6460_v49 }
 0x300   : > { %4524 = vmatmul.msk.bf16.gmra.mxu0 %vm2128_vm11, %v4720_v46  ;;  %4528 = vmatmul.msk.bf16.gmra.mxu1 %vm2128_vm11, %v4720_v46 }
 0x306   : > { %v2225_v32 = vpop.permute.xlu2 %2224 }
 0x307   : > { %v2230_v56 = vperm.slane %v2225_v32, %v6460_v49 }
 0x309   : > { %v2289_v41 = vunpack.c.l.bf16 %v2230_v56 }
 0x310   : > { %v2209_v34 = vpop.permute.xlu2 %2208 }
 0x311   : > { %v2214_v33 = vperm.slane %v2209_v34, %v6460_v49  ;;  %v4985_v34 = vmov 2  }
 0x312   : > { %4841 = vset.pattern.permute.xlu0 %v4985_v34  ;;  %4840 = vset.pattern.permute.xlu2 %v4985_v34 }
 0x313   : > { %v2287_v2 = vunpack.c.l.bf16 %v2214_v33  ;;  %2539 = vperm.xlu0 %4841, %v6979_v43   ;;  %4839 = vset.pattern.permute.xlu1 %v4985_v34 }
 0x314   : > { %2563 = vperm.xlu2 %4840, %v6980_v22   ;;  %2555 = vperm.xlu1 %4839, %v6981_v24  }
 0x315   : > { %v2241_v39 = vpop.permute.xlu0 %2240 }
 0x316   : > { %v2257_v55 = vpop.permute.xlu1 %2256  ;;  %v2246_v12 = vperm.slane %v2241_v39, %v6460_v49 }
 0x317   : > { %v2262_v11 = vperm.slane %v2257_v55, %v6460_v49 }
 0x318   : > { %v2291_v52 = vunpack.c.l.bf16 %v2246_v12 }
 0x319   : > { %v2293_v14 = vunpack.c.l.bf16 %v2262_v11 }
 0x31b   : > { %2515 = vperm.xlu0 %4841, %v6982_v58  }
 0x31c   : > { %2523 = vperm.xlu2 %4840, %v6983_v26   ;;  %2547 = vperm.xlu1 %4839, %v6984_v35  }
 0x31d   : > { %v2217_v60 = vpop.permute.xlu0 %2216 }
 0x31e   : > { %v2249_v5 = vpop.permute.xlu1 %2248  ;;  %v2222_v18 = vperm.slane %v2217_v60, %v6460_v49 }
 0x31f   : > { %v2254_v23 = vperm.slane %v2249_v5, %v6460_v49 }
 0x321   : > { %v2292_v37 = vunpack.c.l.bf16 %v2254_v23 }
 0x324   : > { %2507 = vperm.xlu2 %4840, %v6985_v50   ;;  %2531 = vperm.xlu1 %4839, %v6986_v10  }
 0x329   : > { %v2233_v21 = vpop.permute.xlu1 %2232 }
 0x32a   : > { %v2238_v54 = vperm.slane %v2233_v21, %v6460_v49 }
 0x34d   : > { %v2150_v4 = vpop.f32.mrf.mxu0  ;;  %v2179_v42 = vpop.f32.mrf.mxu1 }
 0x34e   : > { %v6488_v19 = vpack.c.bf16 %v2179_v42, %v2150_v4  ;;  %v2290_v4 = vunpack.c.l.bf16 %v2238_v54 }
 0x350   : > { %v2272_v39 = vunpack.c.h.bf16 %v6488_v19 }
 0x355   : > { %v2152_v53 = vpop.f32.mrf.mxu0  ;;  %v2181_v40 = vpop.f32.mrf.mxu1 }
 0x356   : > { %v2200_v46 = vpack.c.bf16 %v2181_v40, %v2152_v53 }
 0x358   : > { %v2273_v53 = vunpack.c.l.bf16 %v2200_v46  ;;  %v2274_v40 = vunpack.c.h.bf16 %v2200_v46 }
 0x35d   : > { %v2155_v1 = vpop.f32.mrf.mxu0  ;;  %v2184_v25 = vpop.f32.mrf.mxu1 }
 0x35e   : > { %v2201_v59 = vpack.c.bf16 %v2184_v25, %v2155_v1  ;;  %v2271_v25 = vunpack.c.l.bf16 %v6488_v19 }
 0x360   : > { %v2276_v55 = vunpack.c.h.bf16 %v2201_v59  ;;  %v2295_v19 = vadd.f32 %v2287_v2, %v2271_v25 }
 0x365   : > { %v2157_v15 = vpop.f32.mrf.mxu0  ;;  %v2186_v48 = vpop.f32.mrf.mxu1 }
 0x366   : > { %v2202_v3 = vpack.c.bf16 %v2186_v48, %v2157_v15  ;;  %v2275_v15 = vunpack.c.l.bf16 %v2201_v59  ;;  %v2296_v59 = vadd.f32 %v2287_v2, %v2272_v39 }
 0x368   : > { %v2277_v42 = vunpack.c.l.bf16 %v2202_v3  ;;  %v2278_v1 = vunpack.c.h.bf16 %v2202_v3 }
 0x36a   : > { %v2301_v23 = vadd.f32 %v2290_v4, %v2277_v42  ;;  %v2302_v21 = vadd.f32 %v2290_v4, %v2278_v1 }
 0x36d   : > { %v2160_v30 = vpop.f32.mrf.mxu0  ;;  %v2189_v9 = vpop.f32.mrf.mxu1 }
 0x36e   : > { %v2203_v20 = vpack.c.bf16 %v2189_v9, %v2160_v30 }
 0x370   : > { %v2279_v51 = vunpack.c.l.bf16 %v2203_v20  ;;  %v2280_v57 = vunpack.c.h.bf16 %v2203_v20 }
 0x372   : > { %v2303_v30 = vadd.f32 %v2291_v52, %v2279_v51  ;;  %v2304_v9 = vadd.f32 %v2291_v52, %v2280_v57 }
 0x374   : > { %v2315_v33 = vpack.c.bf16 %v2304_v9, %v2303_v30 }
 0x375   : > { %v2162_v47 = vpop.f32.mrf.mxu0  ;;  %v2191_v36 = vpop.f32.mrf.mxu1 }
 0x376   : > { %v2204_v44 = vpack.c.bf16 %v2191_v36, %v2162_v47  ;;  %v2288_v47 = vunpack.c.l.bf16 %v2222_v18  ;;  %v2327_v52 = vunpack.c.l.bf16 %v2315_v33  ;;  %v2328_v51 = vunpack.c.h.bf16 %v2315_v33 }
 0x378   : > { %v2281_v63 = vunpack.c.l.bf16 %v2204_v44  ;;  %v2282_v61 = vunpack.c.h.bf16 %v2204_v44  ;;  %v2294_v44 = vunpack.c.l.bf16 %v2270_v13  ;;  %v2297_v54 = vadd.f32 %v2288_v47, %v2273_v53 }
 0x379   : > { %v2298_v3 = vadd.f32 %v2288_v47, %v2274_v40 }
 0x37a   : > { %v2305_v48 = vadd.f32 %v2292_v37, %v2281_v63  ;;  %v2306_v38 = vadd.f32 %v2292_v37, %v2282_v61  ;;  %v2314_v63 = vpack.c.bf16 %v2302_v21, %v2301_v23 }
 0x37b   : > { %v2312_v42 = vpack.c.bf16 %v2298_v3, %v2297_v54 }
 0x37c   : > { %v2316_v20 = vpack.c.bf16 %v2306_v38, %v2305_v48  ;;  %v2325_v46 = vunpack.c.l.bf16 %v2314_v63  ;;  %v2326_v4 = vunpack.c.h.bf16 %v2314_v63  ;;  %v2343_v48 = vmul.f32 0.010009766, %v2327_v52 }
 0x37d   : > { %v2165_v8 = vpop.f32.mrf.mxu0  ;;  %v2194_v45 = vpop.f32.mrf.mxu1  ;;  %v2344_v38 = vmul.f32 0.010009766, %v2328_v51  ;;  %v2322_v34 = vunpack.c.h.bf16 %v2312_v42 }
 0x37e   : > { %v2205_v16 = vpack.c.bf16 %v2194_v45, %v2165_v8  ;;  %v2299_v8 = vadd.f32 %v2289_v41, %v2275_v15  ;;  %v2300_v45 = vadd.f32 %v2289_v41, %v2276_v55  ;;  %v2329_v61 = vunpack.c.l.bf16 %v2316_v20 }
 0x37f   : > { %v2311_v41 = vpack.c.bf16 %v2296_v59, %v2295_v19  ;;  %v2341_v47 = vmul.f32 0.010009766, %v2325_v46 }
 0x380   : > { %v2283_v17 = vunpack.c.l.bf16 %v2205_v16  ;;  %v2284_v29 = vunpack.c.h.bf16 %v2205_v16  ;;  %v2345_v25 = vmul.f32 0.010009766, %v2329_v61 }
 0x382   : > { %v2307_v28 = vadd.f32 %v2293_v14, %v2283_v17  ;;  %v2308_v0 = vadd.f32 %v2293_v14, %v2284_v29  ;;  %v2330_v17 = vunpack.c.h.bf16 %v2316_v20  ;;  %v2313_v29 = vpack.c.bf16 %v2300_v45, %v2299_v8 }
 0x383   : > { %v2385_v23 = vmax.f32 %v2329_v61, %v2345_v25  ;;  %v2384_v20 = vmax.f32 %v2328_v51, %v2344_v38  ;;  %v2381_v45 = vmax.f32 %v2325_v46, %v2341_v47  ;;  %v4724_v46 = vld [vmem:[#allocation2 + $0x38] sm:$0xff] }
 0x384   : > { %v2317_v36 = vpack.c.bf16 %v2308_v0, %v2307_v28  ;;  %v2346_v15 = vmul.f32 0.010009766, %v2330_v17  ;;  %v2323_v55 = vunpack.c.l.bf16 %v2313_v29  ;;  %v2324_v30 = vunpack.c.h.bf16 %v2313_v29 }
 0x385   : > { %v2167_v32 = vpop.f32.mrf.mxu0  ;;  %v2196_v5 = vpop.f32.mrf.mxu1 }
 0x386   : > { %v2206_v11 = vpack.c.bf16 %v2196_v5, %v2167_v32  ;;  %v2331_v60 = vunpack.c.l.bf16 %v2317_v36  ;;  %v2332_v37 = vunpack.c.h.bf16 %v2317_v36  ;;  %v2342_v36 = vmul.f32 0.010009766, %v2326_v4  ;;  %v2540_v47 = vpop.permute.xlu0 %2539 }
 0x387   : > { %v2386_v21 = vmax.f32 %v2330_v17, %v2346_v15  ;;  %v2339_v19 = vmul.f32 0.010009766, %v2323_v55  ;;  %v2340_v8 = vmul.f32 0.010009766, %v2324_v30 }
 0x388   : > { %v2285_v56 = vunpack.c.l.bf16 %v2206_v11  ;;  %v2286_v12 = vunpack.c.h.bf16 %v2206_v11  ;;  %v2347_v18 = vmul.f32 0.010009766, %v2331_v60  ;;  %v2348_v0 = vmul.f32 0.010009766, %v2332_v37 }
 0x389   : > { %v2321_v11 = vunpack.c.l.bf16 %v2312_v42  ;;  %v2379_v59 = vmax.f32 %v2323_v55, %v2339_v19  ;;  %v2380_v54 = vmax.f32 %v2324_v30, %v2340_v8  ;;  %v2564_v30 = vpop.permute.xlu2 %2563  ;;  %v2545_v19 = vperm.slane %v2540_v47, %v6460_v49 }
 0x38a   : > { %v2309_v14 = vadd.f32 %v2294_v44, %v2285_v56  ;;  %v2310_v16 = vadd.f32 %v2294_v44, %v2286_v12  ;;  %v2387_v9 = vmax.f32 %v2331_v60, %v2347_v18  ;;  %v2388_v5 = vmax.f32 %v2332_v37, %v2348_v0  ;;  %v4722_v0 = vld [vmem:[#allocation2 + $0x28] sm:$0xff] }
 0x38b   : > { %v2319_v44 = vunpack.c.l.bf16 %v2311_v41  ;;  %v2320_v56 = vunpack.c.h.bf16 %v2311_v41  ;;  %v2383_v12 = vmax.f32 %v2327_v52, %v2343_v48  ;;  %v2337_v33 = vmul.f32 0.010009766, %v2321_v11  ;;  %v4723_v41 = vld [vmem:[#allocation2 + $0x30] sm:$0xff] }
 0x38c   : > { %v2318_v13 = vpack.c.bf16 %v2310_v16, %v2309_v14  ;;  %v2396_v16 = vpack.c.bf16 %v2386_v21, %v2384_v20  ;;  %v2382_v60 = vmax.f32 %v2326_v4, %v2342_v36  ;;  %v2338_v37 = vmul.f32 0.010009766, %v2322_v34 }
 0x38d   : > { %v2395_v14 = vpack.c.bf16 %v2385_v23, %v2383_v12  ;;  %v2335_v3 = vmul.f32 0.010009766, %v2319_v44  ;;  %v2336_v63 = vmul.f32 0.010009766, %v2320_v56  ;;  %v2377_v17 = vmax.f32 %v2321_v11, %v2337_v33 }
 0x38e   : > { %v2333_v57 = vunpack.c.l.bf16 %v2318_v13  ;;  %v2334_v28 = vunpack.c.h.bf16 %v2318_v13  ;;  %v2393_v13 = vpack.c.bf16 %v2381_v45, %v2379_v59  ;;  %v2394_v61 = vpack.c.bf16 %v2382_v60, %v2380_v54 }
 0x38f   : > { %v2378_v29 = vmax.f32 %v2322_v34, %v2338_v37  ;;  %v2375_v52 = vmax.f32 %v2319_v44, %v2335_v3  ;;  %v2376_v51 = vmax.f32 %v2320_v56, %v2336_v63  ;;  %v2516_v44 = vpop.permute.xlu0 %2515 }
 0x390   : > { %v2349_v2 = vmul.f32 0.010009766, %v2333_v57  ;;  %v2350_v1 = vmul.f32 0.010009766, %v2334_v28  ;;  %v2521_v59 = vperm.slane %v2516_v44, %v6460_v49 }
 0x391   : > { %v2392_v18 = vpack.c.bf16 %v2378_v29, %v2376_v51 }
 0x392   : > { %v2389_v32 = vmax.f32 %v2333_v57, %v2349_v2  ;;  %v2390_v39 = vmax.f32 %v2334_v28, %v2350_v1  ;;  %v2391_v57 = vpack.c.bf16 %v2377_v17, %v2375_v52  ;;  %v4721_v28 = vld [vmem:[#allocation2 + $0x20] sm:$0xff]  ;;  %v2590_v52 = vunpack.c.l.bf16 %v2545_v19 }
 0x394   : > { %v2397_v53 = vpack.c.bf16 %v2389_v32, %v2387_v9  ;;  %v2398_v40 = vpack.c.bf16 %v2390_v39, %v2388_v5  ;;  %v2556_v9 = vpop.permute.xlu1 %2555  ;;  %v2524_v39 = vpop.permute.xlu2 %2523 }
 0x396   : > { %2444 = vmatpush.bf16.msrb.mxu2 %v2397_v53  ;;  %2473 = vmatpush.bf16.msrb.mxu3 %v2398_v40  ;;  %v2569_v53 = vperm.slane %v2564_v30, %v6460_v49  ;;  %v2561_v40 = vperm.slane %v2556_v9, %v6460_v49 }
 0x398   : > { %v2593_v20 = vunpack.c.l.bf16 %v2569_v53  ;;  %v2592_v60 = vunpack.c.l.bf16 %v2561_v40 }
 0x39a   : > { %2445 = vmatpush.bf16.msrb.mxu2 %v2395_v14  ;;  %2474 = vmatpush.bf16.msrb.mxu3 %v2396_v16  ;;  %v2529_v14 = vperm.slane %v2524_v39, %v6460_v49 }
 0x39c   : > { %v2548_v36 = vpop.permute.xlu1 %2547  ;;  %v2508_v23 = vpop.permute.xlu2 %2507 }
 0x39d   : > { %v2553_v21 = vperm.slane %v2548_v36, %v6460_v49  ;;  %v2513_v16 = vperm.slane %v2508_v23, %v6460_v49 }
 0x39e   : > { %2446 = vmatpush.bf16.msrb.mxu2 %v2393_v13  ;;  %2475 = vmatpush.bf16.msrb.mxu3 %v2394_v61 }
 0x39f   : > { %v2591_v54 = vunpack.c.l.bf16 %v2553_v21 }
 0x3a2   : > { %2447 = vmatpush.bf16.msrb.mxu2 %v2391_v57  ;;  %2476 = vmatpush.bf16.msrb.mxu3 %v2392_v18 }
 0x3a4   : > { %v2532_v56 = vpop.permute.xlu1 %2531 }
 0x3a5   : > { %4545 = vmatmul.msk.bf16.vlgmr.msrb.gmra.mxu2 %vm2128_vm11, %v4721_v28  ;;  %4549 = vmatmul.msk.bf16.vlgmr.msrb.gmra.mxu3 %vm2128_vm11, %v4721_v28  ;;  %v2537_v3 = vperm.slane %v2532_v56, %v6460_v49  ;;  %v2588_v28 = vunpack.c.l.bf16 %v2529_v14 }
 0x3b5   : > { %4546 = vmatmul.msk.bf16.gmra.mxu2 %vm2128_vm11, %v4722_v0  ;;  %4550 = vmatmul.msk.bf16.gmra.mxu3 %vm2128_vm11, %v4722_v0 }
 0x3c5   : > { %4547 = vmatmul.msk.bf16.gmra.mxu2 %vm2128_vm11, %v4723_v41  ;;  %4551 = vmatmul.msk.bf16.gmra.mxu3 %vm2128_vm11, %v4723_v41 }
 0x3d5   : > { %4548 = vmatmul.msk.bf16.gmra.mxu2 %vm2128_vm11, %v4724_v46  ;;  %4552 = vmatmul.msk.bf16.gmra.mxu3 %vm2128_vm11, %v4724_v46 }
 0x428   : > { %v2449_v4 = vpop.f32.mrf.mxu2  ;;  %v2478_v42 = vpop.f32.mrf.mxu3 }
 0x429   : > { %v6519_v2 = vpack.c.bf16 %v2478_v42, %v2449_v4  ;;  %v2586_v4 = vunpack.c.l.bf16 %v2513_v16  ;;  %v2589_v42 = vunpack.c.l.bf16 %v2537_v3 }
 0x430   : > { %v2451_v1 = vpop.f32.mrf.mxu2  ;;  %v2480_v25 = vpop.f32.mrf.mxu3 }
 0x431   : > { %v2499_v0 = vpack.c.bf16 %v2480_v25, %v2451_v1 }
 0x433   : > { %v2572_v1 = vunpack.c.l.bf16 %v2499_v0  ;;  %v2573_v40 = vunpack.c.h.bf16 %v2499_v0 }
 0x438   : > { %v2454_v15 = vpop.f32.mrf.mxu2  ;;  %v2483_v48 = vpop.f32.mrf.mxu3 }
 0x439   : > { %v2500_v51 = vpack.c.bf16 %v2483_v48, %v2454_v15 }
 0x43b   : > { %v2574_v39 = vunpack.c.l.bf16 %v2500_v51  ;;  %v2575_v47 = vunpack.c.h.bf16 %v2500_v51 }
 0x440   : > { %v2456_v38 = vpop.f32.mrf.mxu2  ;;  %v2485_v55 = vpop.f32.mrf.mxu3 }
 0x441   : > { %v2501_v63 = vpack.c.bf16 %v2485_v55, %v2456_v38 }
 0x443   : > { %v2576_v30 = vunpack.c.l.bf16 %v2501_v63  ;;  %v2577_v9 = vunpack.c.h.bf16 %v2501_v63 }
 0x445   : > { %v2600_v23 = vadd.f32 %v2589_v42, %v2576_v30  ;;  %v2601_v21 = vadd.f32 %v2589_v42, %v2577_v9 }
 0x447   : > { %v2613_v63 = vpack.c.bf16 %v2601_v21, %v2600_v23 }
 0x448   : > { %v2459_v32 = vpop.f32.mrf.mxu2  ;;  %v2488_v5 = vpop.f32.mrf.mxu3 }
 0x449   : > { %v2502_v8 = vpack.c.bf16 %v2488_v5, %v2459_v32  ;;  %v2570_v32 = vunpack.c.l.bf16 %v6519_v2  ;;  %v2587_v5 = vunpack.c.l.bf16 %v2521_v59  ;;  %v2625_v42 = vunpack.c.h.bf16 %v2613_v63 }
 0x44b   : > { %v2578_v57 = vunpack.c.l.bf16 %v2502_v8  ;;  %v2579_v18 = vunpack.c.h.bf16 %v2502_v8  ;;  %v2594_v44 = vadd.f32 %v2586_v4, %v2570_v32  ;;  %v4986_v8 = vmov 3  }
 0x44c   : > { %4844 = vset.pattern.permute.xlu0 %v4986_v8  ;;  %4843 = vset.pattern.permute.xlu2 %v4986_v8  ;;  %v2597_v3 = vadd.f32 %v2587_v5, %v2573_v40 }
 0x44d   : > { %v2602_v36 = vadd.f32 %v2590_v52, %v2578_v57  ;;  %2838 = vperm.xlu0 %4844, %v6979_v43   ;;  %4842 = vset.pattern.permute.xlu1 %v4986_v8 }
 0x44e   : > { %2862 = vperm.xlu2 %4843, %v6980_v22   ;;  %2854 = vperm.xlu1 %4842, %v6981_v24  }
 0x450   : > { %v2461_v11 = vpop.f32.mrf.mxu2  ;;  %v2490_v34 = vpop.f32.mrf.mxu3 }
 0x451   : > { %v2503_v12 = vpack.c.bf16 %v2490_v34, %v2461_v11  ;;  %v2603_v11 = vadd.f32 %v2590_v52, %v2579_v18  ;;  %v2571_v34 = vunpack.c.h.bf16 %v6519_v2 }
 0x453   : > { %v2580_v13 = vunpack.c.l.bf16 %v2503_v12  ;;  %v2581_v61 = vunpack.c.h.bf16 %v2503_v12  ;;  %v2614_v14 = vpack.c.bf16 %v2603_v11, %v2602_v36  ;;  %v2595_v59 = vadd.f32 %v2586_v4, %v2571_v34 }
 0x454   : > { %v2641_v34 = vmul.f32 0.010009766, %v2625_v42 }
 0x455   : > { %v2604_v38 = vadd.f32 %v2591_v54, %v2580_v13  ;;  %v2605_v55 = vadd.f32 %v2591_v54, %v2581_v61  ;;  %v2596_v54 = vadd.f32 %v2587_v5, %v2572_v1  ;;  %v2626_v52 = vunpack.c.l.bf16 %v2614_v14  ;;  %2814 = vperm.xlu0 %4844, %v6982_v58  }
 0x456   : > { %v2627_v51 = vunpack.c.h.bf16 %v2614_v14  ;;  %2822 = vperm.xlu2 %4843, %v6983_v26   ;;  %2846 = vperm.xlu1 %4842, %v6984_v35  }
 0x457   : > { %v2615_v56 = vpack.c.bf16 %v2605_v55, %v2604_v38  ;;  %v2642_v5 = vmul.f32 0.010009766, %v2626_v52 }
 0x458   : > { %v2464_v45 = vpop.f32.mrf.mxu2  ;;  %v2493_v33 = vpop.f32.mrf.mxu3  ;;  %v2643_v38 = vmul.f32 0.010009766, %v2627_v51 }
 0x459   : > { %v2504_v37 = vpack.c.bf16 %v2493_v33, %v2464_v45  ;;  %v2598_v45 = vadd.f32 %v2588_v28, %v2574_v39  ;;  %v2599_v33 = vadd.f32 %v2588_v28, %v2575_v47  ;;  %v2628_v61 = vunpack.c.l.bf16 %v2615_v56 }
 0x45b   : > { %v2582_v17 = vunpack.c.l.bf16 %v2504_v37  ;;  %v2583_v29 = vunpack.c.h.bf16 %v2504_v37  ;;  %v2644_v9 = vmul.f32 0.010009766, %v2628_v61 }
 0x45d   : > { %v2606_v41 = vadd.f32 %v2592_v60, %v2582_v17  ;;  %v2607_v46 = vadd.f32 %v2592_v60, %v2583_v29  ;;  %v2629_v17 = vunpack.c.h.bf16 %v2615_v56  ;;  %v2612_v29 = vpack.c.bf16 %v2599_v33, %v2598_v45 }
 0x45e   : > { %v2684_v23 = vmax.f32 %v2628_v61, %v2644_v9  ;;  %2806 = vperm.xlu2 %4843, %v6985_v50   ;;  %2830 = vperm.xlu1 %4842, %v6986_v10  }
 0x45f   : > { %v2616_v25 = vpack.c.bf16 %v2607_v46, %v2606_v41  ;;  %v2610_v41 = vpack.c.bf16 %v2595_v59, %v2594_v44  ;;  %v2624_v46 = vunpack.c.l.bf16 %v2613_v63  ;;  %v2645_v32 = vmul.f32 0.010009766, %v2629_v17 }
 0x460   : > { %v2466_v15 = vpop.f32.mrf.mxu2  ;;  %v2495_v48 = vpop.f32.mrf.mxu3  ;;  %v2622_v55 = vunpack.c.l.bf16 %v2612_v29  ;;  %v2623_v39 = vunpack.c.h.bf16 %v2612_v29 }
 0x461   : > { %v2505_v53 = vpack.c.bf16 %v2495_v48, %v2466_v15  ;;  %v2630_v2 = vunpack.c.l.bf16 %v2616_v25  ;;  %v2631_v16 = vunpack.c.h.bf16 %v2616_v25  ;;  %v2640_v48 = vmul.f32 0.010009766, %v2624_v46 }
 0x462   : > { %v2685_v21 = vmax.f32 %v2629_v17, %v2645_v32  ;;  %v2618_v44 = vunpack.c.l.bf16 %v2610_v41  ;;  %v2619_v56 = vunpack.c.h.bf16 %v2610_v41  ;;  %v2638_v8 = vmul.f32 0.010009766, %v2622_v55  ;;  %v4727_v41 = vld [vmem:[#allocation2 + $0x50] sm:$0xff] }
 0x463   : > { %v2584_v12 = vunpack.c.l.bf16 %v2505_v53  ;;  %v2585_v19 = vunpack.c.h.bf16 %v2505_v53  ;;  %v2646_v57 = vmul.f32 0.010009766, %v2630_v2  ;;  %v2647_v18 = vmul.f32 0.010009766, %v2631_v16 }
 0x464   : > { %v2639_v45 = vmul.f32 0.010009766, %v2623_v39  ;;  %v2678_v59 = vmax.f32 %v2622_v55, %v2638_v8  ;;  %v2635_v63 = vmul.f32 0.010009766, %v2619_v56 }
 0x465   : > { %v2608_v60 = vadd.f32 %v2593_v20, %v2584_v12  ;;  %v2609_v37 = vadd.f32 %v2593_v20, %v2585_v19  ;;  %v2611_v20 = vpack.c.bf16 %v2597_v3, %v2596_v54  ;;  %v2686_v47 = vmax.f32 %v2630_v2, %v2646_v57 }
 0x466   : > { %v2687_v11 = vmax.f32 %v2631_v16, %v2647_v18  ;;  %v2682_v12 = vmax.f32 %v2626_v52, %v2642_v5  ;;  %v2683_v19 = vmax.f32 %v2627_v51, %v2643_v38  ;;  %v2679_v54 = vmax.f32 %v2623_v39, %v2639_v45 }
 0x467   : > { %v2617_v13 = vpack.c.bf16 %v2609_v37, %v2608_v60  ;;  %v2620_v1 = vunpack.c.l.bf16 %v2611_v20  ;;  %v2621_v25 = vunpack.c.h.bf16 %v2611_v20  ;;  %v2680_v60 = vmax.f32 %v2624_v46, %v2640_v48 }
 0x468   : > { %v2694_v2 = vpack.c.bf16 %v2684_v23, %v2682_v12  ;;  %v2695_v16 = vpack.c.bf16 %v2685_v21, %v2683_v19  ;;  %v2681_v37 = vmax.f32 %v2625_v42, %v2641_v34  ;;  %v2634_v3 = vmul.f32 0.010009766, %v2618_v44 }
 0x469   : > { %v2632_v28 = vunpack.c.l.bf16 %v2617_v13  ;;  %v2633_v0 = vunpack.c.h.bf16 %v2617_v13  ;;  %v2636_v33 = vmul.f32 0.010009766, %v2620_v1  ;;  %v2637_v14 = vmul.f32 0.010009766, %v2621_v25 }
 0x46a   : > { %v2692_v13 = vpack.c.bf16 %v2680_v60, %v2678_v59  ;;  %v2693_v61 = vpack.c.bf16 %v2681_v37, %v2679_v54  ;;  %v2674_v52 = vmax.f32 %v2618_v44, %v2634_v3  ;;  %v2675_v51 = vmax.f32 %v2619_v56, %v2635_v63 }
 0x46b   : > { %v2648_v4 = vmul.f32 0.010009766, %v2632_v28  ;;  %v2649_v30 = vmul.f32 0.010009766, %v2633_v0  ;;  %v2676_v17 = vmax.f32 %v2620_v1, %v2636_v33  ;;  %v2677_v29 = vmax.f32 %v2621_v25, %v2637_v14 }
 0x46d   : > { %v2688_v36 = vmax.f32 %v2632_v28, %v2648_v4  ;;  %v2689_v15 = vmax.f32 %v2633_v0, %v2649_v30  ;;  %v2690_v57 = vpack.c.bf16 %v2676_v17, %v2674_v52  ;;  %v2691_v18 = vpack.c.bf16 %v2677_v29, %v2675_v51  ;;  %v4725_v28 = vld [vmem:[#allocation2 + $0x40] sm:$0xff]  ;;  %v4726_v0 = vld [vmem:[#allocation2 + $0x48] sm:$0xff] }
 0x46f   : > { %v2696_v53 = vpack.c.bf16 %v2688_v36, %v2686_v47  ;;  %v2697_v40 = vpack.c.bf16 %v2689_v15, %v2687_v11 }
 0x471   : > { %2743 = vmatpush.bf16.msra.mxu0 %v2696_v53  ;;  %2772 = vmatpush.bf16.msra.mxu1 %v2697_v40 }
 0x475   : > { %2744 = vmatpush.bf16.msra.mxu0 %v2694_v2  ;;  %2773 = vmatpush.bf16.msra.mxu1 %v2695_v16 }
 0x479   : > { %2745 = vmatpush.bf16.msra.mxu0 %v2692_v13  ;;  %2774 = vmatpush.bf16.msra.mxu1 %v2693_v61 }
 0x47d   : > { %2746 = vmatpush.bf16.msra.mxu0 %v2690_v57  ;;  %2775 = vmatpush.bf16.msra.mxu1 %v2691_v18 }
 0x480   : > { %4569 = vmatmul.msk.bf16.vlgmr.msra.gmra.mxu0 %vm2128_vm11, %v4725_v28  ;;  %4573 = vmatmul.msk.bf16.vlgmr.msra.gmra.mxu1 %vm2128_vm11, %v4725_v28 }
 0x481   : > { %3352 = vmatpush.bf16.msrb.mxu0 %v6165_v62  ;;  %3381 = vmatpush.bf16.msrb.mxu1 %v6340_v27  ;;  %v4728_v62 = vld [vmem:[#allocation2 + $0x58] sm:$0xff] }
 0x485   : > { %3353 = vmatpush.bf16.msrb.mxu0 %v6417_v7  ;;  %3382 = vmatpush.bf16.msrb.mxu1 %v6442_v6 }
 0x490   : > { %4570 = vmatmul.msk.bf16.gmra.mxu0 %vm2128_vm11, %v4726_v0  ;;  %4574 = vmatmul.msk.bf16.gmra.mxu1 %vm2128_vm11, %v4726_v0 }
 0x4a0   : > { %4571 = vmatmul.msk.bf16.gmra.mxu0 %vm2128_vm11, %v4727_v41  ;;  %4575 = vmatmul.msk.bf16.gmra.mxu1 %vm2128_vm11, %v4727_v41 }
 0x4a8   : > { %v6553_v32 = vpop.permute.xlu2 %2862 }
 0x4a9   : > { %v2868_v12 = vperm.slane %v6553_v32, %v6460_v49 }
 0x4b0   : > { %4572 = vmatmul.msk.bf16.gmra.mxu0 %vm2128_vm11, %v4728_v62  ;;  %4576 = vmatmul.msk.bf16.gmra.mxu1 %vm2128_vm11, %v4728_v62  ;;  %v2823_v39 = vpop.permute.xlu2 %2822 }
 0x4b1   : > { %v2828_v40 = vperm.slane %v2823_v39, %v6460_v49 }
 0x4b3   : > { %v2887_v63 = vunpack.c.l.bf16 %v2828_v40 }
 0x4b8   : > { %v2807_v34 = vpop.permute.xlu2 %2806 }
 0x4b9   : > { %v2812_v19 = vperm.slane %v2807_v34, %v6460_v49 }
 0x4bb   : > { %v2885_v29 = vunpack.c.l.bf16 %v2812_v19 }
 0x4bf   : > { %v2839_v36 = vpop.permute.xlu0 %2838 }
 0x4c0   : > { %v2855_v5 = vpop.permute.xlu1 %2854  ;;  %v2844_v23 = vperm.slane %v2839_v36, %v6460_v49  ;;  %v4987_v36 = vmov 4  }
 0x4c1   : > { %v2860_v48 = vperm.slane %v2855_v5, %v6460_v49  ;;  %4847 = vset.pattern.permute.xlu0 %v4987_v36  ;;  %4846 = vset.pattern.permute.xlu2 %v4987_v36 }
 0x4c2   : > { %v2889_v13 = vunpack.c.l.bf16 %v2844_v23  ;;  %3137 = vperm.xlu0 %4847, %v6979_v43   ;;  %4845 = vset.pattern.permute.xlu1 %v4987_v36 }
 0x4c3   : > { %v2891_v8 = vunpack.c.l.bf16 %v2860_v48  ;;  %v2892_v48 = vunpack.c.l.bf16 %v2868_v12  ;;  %3161 = vperm.xlu2 %4846, %v6980_v22   ;;  %3153 = vperm.xlu1 %4845, %v6981_v24  }
 0x4c7   : > { %v2815_v33 = vpop.permute.xlu0 %2814 }
 0x4c8   : > { %v2847_v47 = vpop.permute.xlu1 %2846  ;;  %v2820_v52 = vperm.slane %v2815_v33, %v6460_v49 }
 0x4c9   : > { %v2852_v1 = vperm.slane %v2847_v47, %v6460_v49 }
 0x4ca   : > { %3113 = vperm.xlu0 %4847, %v6982_v58  }
 0x4cb   : > { %v2890_v14 = vunpack.c.l.bf16 %v2852_v1  ;;  %3121 = vperm.xlu2 %4846, %v6983_v26   ;;  %3145 = vperm.xlu1 %4845, %v6984_v35  }
 0x4d0   : > { %v2831_v25 = vpop.permute.xlu1 %2830 }
 0x4d1   : > { %v2836_v16 = vperm.slane %v2831_v25, %v6460_v49 }
 0x4d3   : > { %v2888_v28 = vunpack.c.l.bf16 %v2836_v16  ;;  %3105 = vperm.xlu2 %4846, %v6985_v50   ;;  %3129 = vperm.xlu1 %4845, %v6986_v10  }
 0x4fd   : > { %v2748_v27 = vpop.f32.mrf.mxu0  ;;  %v2777_v20 = vpop.f32.mrf.mxu1 }
 0x4fe   : > { %v6551_v7 = vpack.c.bf16 %v2777_v20, %v2748_v27 }
 0x500   : > { %v2869_v62 = vunpack.c.l.bf16 %v6551_v7 }
 0x505   : > { %v2750_v6 = vpop.f32.mrf.mxu0  ;;  %v2779_v46 = vpop.f32.mrf.mxu1 }
 0x506   : > { %v2798_v18 = vpack.c.bf16 %v2779_v46, %v2750_v6 }
 0x508   : > { %v2871_v6 = vunpack.c.l.bf16 %v2798_v18  ;;  %v2872_v46 = vunpack.c.h.bf16 %v2798_v18 }
 0x50d   : > { %v2753_v42 = vpop.f32.mrf.mxu0  ;;  %v2782_v4 = vpop.f32.mrf.mxu1 }
 0x50e   : > { %v2799_v2 = vpack.c.bf16 %v2782_v4, %v2753_v42 }
 0x510   : > { %v2873_v27 = vunpack.c.l.bf16 %v2799_v2  ;;  %v2874_v4 = vunpack.c.h.bf16 %v2799_v2 }
 0x512   : > { %v2898_v40 = vadd.f32 %v2887_v63, %v2874_v4 }
 0x515   : > { %v2755_v30 = vpop.f32.mrf.mxu0  ;;  %v2784_v9 = vpop.f32.mrf.mxu1 }
 0x516   : > { %v2800_v60 = vpack.c.bf16 %v2784_v9, %v2755_v30 }
 0x518   : > { %v2875_v0 = vunpack.c.l.bf16 %v2800_v60  ;;  %v2876_v41 = vunpack.c.h.bf16 %v2800_v60 }
 0x51d   : > { %v2758_v38 = vpop.f32.mrf.mxu0  ;;  %v2787_v55 = vpop.f32.mrf.mxu1 }
 0x51e   : > { %v2801_v21 = vpack.c.bf16 %v2787_v55, %v2758_v38  ;;  %v2870_v38 = vunpack.c.h.bf16 %v6551_v7  ;;  %v2886_v55 = vunpack.c.l.bf16 %v2820_v52  ;;  %v2893_v7 = vadd.f32 %v2885_v29, %v2869_v62 }
 0x520   : > { %v2877_v61 = vunpack.c.l.bf16 %v2801_v21  ;;  %v2878_v17 = vunpack.c.h.bf16 %v2801_v21  ;;  %v2896_v33 = vadd.f32 %v2886_v55, %v2872_v46 }
 0x522   : > { %v2901_v30 = vadd.f32 %v2889_v13, %v2877_v61  ;;  %v2902_v9 = vadd.f32 %v2889_v13, %v2878_v17 }
 0x524   : > { %v2913_v23 = vpack.c.bf16 %v2902_v9, %v2901_v30 }
 0x525   : > { %v2760_v11 = vpop.f32.mrf.mxu0  ;;  %v2789_v15 = vpop.f32.mrf.mxu1 }
 0x526   : > { %v2802_v53 = vpack.c.bf16 %v2789_v15, %v2760_v11  ;;  %v2899_v11 = vadd.f32 %v2888_v28, %v2875_v0  ;;  %v2900_v15 = vadd.f32 %v2888_v28, %v2876_v41 }
 0x528   : > { %v2879_v37 = vunpack.c.l.bf16 %v2802_v53  ;;  %v2880_v59 = vunpack.c.h.bf16 %v2802_v53  ;;  %v2897_v53 = vadd.f32 %v2887_v63, %v2873_v27 }
 0x52a   : > { %v2903_v20 = vadd.f32 %v2890_v14, %v2879_v37  ;;  %v2904_v42 = vadd.f32 %v2890_v14, %v2880_v59  ;;  %v2912_v14 = vpack.c.bf16 %v2900_v15, %v2899_v11  ;;  %v2911_v60 = vpack.c.bf16 %v2898_v40, %v2897_v53 }
 0x52b   : > { %v2925_v37 = vunpack.c.l.bf16 %v2913_v23  ;;  %v2926_v59 = vunpack.c.h.bf16 %v2913_v23 }
 0x52c   : > { %v2914_v34 = vpack.c.bf16 %v2904_v42, %v2903_v20  ;;  %v2923_v52 = vunpack.c.l.bf16 %v2912_v14  ;;  %v2921_v62 = vunpack.c.l.bf16 %v2911_v60  ;;  %v2922_v27 = vunpack.c.h.bf16 %v2911_v60 }
 0x52d   : > { %v2763_v44 = vpop.f32.mrf.mxu0  ;;  %v2792_v56 = vpop.f32.mrf.mxu1  ;;  %v2941_v0 = vmul.f32 0.010009766, %v2925_v37  ;;  %v2942_v41 = vmul.f32 0.010009766, %v2926_v59 }
 0x52e   : > { %v2803_v45 = vpack.c.bf16 %v2792_v56, %v2763_v44  ;;  %v2927_v2 = vunpack.c.l.bf16 %v2914_v34  ;;  %v2928_v16 = vunpack.c.h.bf16 %v2914_v34  ;;  %v2939_v9 = vmul.f32 0.010009766, %v2923_v52 }
 0x52f   : > { %v2981_v11 = vmax.f32 %v2925_v37, %v2941_v0  ;;  %v2982_v15 = vmax.f32 %v2926_v59, %v2942_v41  ;;  %v2938_v34 = vmul.f32 0.010009766, %v2922_v27  ;;  %v4729_v37 = vld [vmem:[#allocation2 + $0x60] sm:$0xff]  ;;  %v4730_v59 = vld [vmem:[#allocation2 + $0x68] sm:$0xff]  ;;  %v6584_v0 = vpop.permute.xlu2 %3161 }
 0x530   : > { %v2881_v54 = vunpack.c.l.bf16 %v2803_v45  ;;  %v2882_v3 = vunpack.c.h.bf16 %v2803_v45  ;;  %v2895_v45 = vadd.f32 %v2886_v55, %v2871_v6  ;;  %v2943_v18 = vmul.f32 0.010009766, %v2927_v2 }
 0x531   : > { %v2944_v28 = vmul.f32 0.010009766, %v2928_v16 }
 0x532   : > { %v2905_v51 = vadd.f32 %v2891_v8, %v2881_v54  ;;  %v2906_v57 = vadd.f32 %v2891_v8, %v2882_v3  ;;  %v2894_v8 = vadd.f32 %v2885_v29, %v2870_v38  ;;  %v2910_v17 = vpack.c.bf16 %v2896_v33, %v2895_v45 }
 0x533   : > { %v2984_v36 = vmax.f32 %v2928_v16, %v2944_v28 }
 0x534   : > { %v2915_v39 = vpack.c.bf16 %v2906_v57, %v2905_v51  ;;  %v2909_v63 = vpack.c.bf16 %v2894_v8, %v2893_v7  ;;  %v2924_v51 = vunpack.c.h.bf16 %v2912_v14  ;;  %v2920_v38 = vunpack.c.h.bf16 %v2910_v17 }
 0x535   : > { %v2765_v32 = vpop.f32.mrf.mxu0  ;;  %v2794_v5 = vpop.f32.mrf.mxu1  ;;  %v2994_v53 = vpack.c.bf16 %v2984_v36, %v2982_v15 }
 0x536   : > { %v2804_v47 = vpack.c.bf16 %v2794_v5, %v2765_v32  ;;  %v2929_v21 = vunpack.c.l.bf16 %v2915_v39  ;;  %v2930_v44 = vunpack.c.h.bf16 %v2915_v39  ;;  %v2940_v32 = vmul.f32 0.010009766, %v2924_v51  ;;  %v3154_v28 = vpop.permute.xlu1 %3153 }
 0x537   : > { %v2919_v5 = vunpack.c.l.bf16 %v2910_v17  ;;  %v2917_v6 = vunpack.c.l.bf16 %v2909_v63  ;;  %v2918_v46 = vunpack.c.h.bf16 %v2909_v63  ;;  %v2936_v23 = vmul.f32 0.010009766, %v2920_v38 }
 0x538   : > { %v2883_v1 = vunpack.c.l.bf16 %v2804_v47  ;;  %v2884_v25 = vunpack.c.h.bf16 %v2804_v47  ;;  %v2945_v54 = vmul.f32 0.010009766, %v2929_v21  ;;  %v2946_v3 = vmul.f32 0.010009766, %v2930_v44 }
 0x539   : > { %v2983_v47 = vmax.f32 %v2927_v2, %v2943_v18  ;;  %v2980_v40 = vmax.f32 %v2924_v51, %v2940_v32  ;;  %v2976_v14 = vmax.f32 %v2920_v38, %v2936_v23 }
 0x53a   : > { %v2907_v56 = vadd.f32 %v2892_v48, %v2883_v1  ;;  %v2908_v19 = vadd.f32 %v2892_v48, %v2884_v25  ;;  %v2985_v20 = vmax.f32 %v2929_v21, %v2945_v54  ;;  %v2986_v4 = vmax.f32 %v2930_v44, %v2946_v3  ;;  %v4731_v54 = vld [vmem:[#allocation2 + $0x70] sm:$0xff]  ;;  %v4732_v3 = vld [vmem:[#allocation2 + $0x78] sm:$0xff] }
 0x53b   : > { %v2937_v48 = vmul.f32 0.010009766, %v2921_v62  ;;  %v2979_v1 = vmax.f32 %v2923_v52, %v2939_v9  ;;  %v2935_v25 = vmul.f32 0.010009766, %v2919_v5  ;;  %v2993_v7 = vpack.c.bf16 %v2983_v47, %v2981_v11 }
 0x53c   : > { %v2916_v12 = vpack.c.bf16 %v2908_v19, %v2907_v56  ;;  %v2978_v44 = vmax.f32 %v2922_v27, %v2938_v34  ;;  %v2933_v56 = vmul.f32 0.010009766, %v2917_v6  ;;  %v2934_v19 = vmul.f32 0.010009766, %v2918_v46 }
 0x53d   : > { %v2977_v21 = vmax.f32 %v2921_v62, %v2937_v48  ;;  %v2975_v33 = vmax.f32 %v2919_v5, %v2935_v25  ;;  %v3159_v9 = vperm.slane %v3154_v28, %v6460_v49  ;;  %v3167_v47 = vperm.slane %v6584_v0, %v6460_v49 }
 0x53e   : > { %v2931_v13 = vunpack.c.l.bf16 %v2916_v12  ;;  %v2932_v61 = vunpack.c.h.bf16 %v2916_v12  ;;  %v2992_v45 = vpack.c.bf16 %v2980_v40, %v2978_v44  ;;  %v2973_v12 = vmax.f32 %v2917_v6, %v2933_v56  ;;  %v3146_v27 = vpop.permute.xlu1 %3145 }
 0x53f   : > { %v2991_v8 = vpack.c.bf16 %v2979_v1, %v2977_v21  ;;  %v2974_v2 = vmax.f32 %v2918_v46, %v2934_v19  ;;  %v3151_v32 = vperm.slane %v3146_v27, %v6460_v49  ;;  %v3190_v48 = vunpack.c.l.bf16 %v3159_v9 }
 0x540   : > { %v2947_v29 = vmul.f32 0.010009766, %v2931_v13  ;;  %v2948_v57 = vmul.f32 0.010009766, %v2932_v61  ;;  %v2989_v16 = vpack.c.bf16 %v2975_v33, %v2973_v12 }
 0x541   : > { %v2990_v60 = vpack.c.bf16 %v2976_v14, %v2974_v2  ;;  %v3189_v25 = vunpack.c.l.bf16 %v3151_v32  ;;  %v3191_v32 = vunpack.c.l.bf16 %v3167_v47 }
 0x542   : > { %v2987_v42 = vmax.f32 %v2931_v13, %v2947_v29  ;;  %v2988_v30 = vmax.f32 %v2932_v61, %v2948_v57 }
 0x544   : > { %v2995_v55 = vpack.c.bf16 %v2987_v42, %v2985_v20  ;;  %v2996_v39 = vpack.c.bf16 %v2988_v30, %v2986_v4  ;;  %v3122_v20 = vpop.permute.xlu2 %3121  ;;  %v3138_v42 = vpop.permute.xlu0 %3137 }
 0x545   : > { %v3127_v11 = vperm.slane %v3122_v20, %v6460_v49 }
 0x546   : > { %3042 = vmatpush.bf16.msra.mxu2 %v2995_v55  ;;  %3071 = vmatpush.bf16.msra.mxu3 %v2996_v39  ;;  %v3130_v5 = vpop.permute.xlu1 %3129  ;;  %v3143_v39 = vperm.slane %v3138_v42, %v6460_v49 }
 0x547   : > { %v3135_v34 = vperm.slane %v3130_v5, %v6460_v49 }
 0x548   : > { %v3188_v21 = vunpack.c.l.bf16 %v3143_v39 }
 0x549   : > { %v3187_v12 = vunpack.c.l.bf16 %v3135_v34 }
 0x54a   : > { %3043 = vmatpush.bf16.msra.mxu2 %v2993_v7  ;;  %3072 = vmatpush.bf16.msra.mxu3 %v2994_v53 }
 0x54c   : > { %v3106_v55 = vpop.permute.xlu2 %3105  ;;  %v3114_v15 = vpop.permute.xlu0 %3113 }
 0x54d   : > { %v3111_v23 = vperm.slane %v3106_v55, %v6460_v49  ;;  %v3119_v19 = vperm.slane %v3114_v15, %v6460_v49 }
 0x54e   : > { %3044 = vmatpush.bf16.msra.mxu2 %v2991_v8  ;;  %3073 = vmatpush.bf16.msra.mxu3 %v2992_v45 }
 0x552   : > { %3045 = vmatpush.bf16.msra.mxu2 %v2989_v16  ;;  %3074 = vmatpush.bf16.msra.mxu3 %v2990_v60  ;;  %v4737_v60 = vld [vmem:[%s6765_s4 + $0x20] sm:$0xff] }
 0x553   : > { %4625 = vmatmul.msk.bf16.vlgmr.msrb.gmra.mxu0 %vm1821_vm9, %v4737_v60  ;;  %4629 = vmatmul.msk.bf16.vlgmr.msrb.gmra.mxu1 %vm1821_vm9, %v4737_v60 }
 0x555   : > { %4593 = vmatmul.msk.bf16.vlgmr.msra.gmra.mxu2 %vm2128_vm11, %v4729_v37  ;;  %4597 = vmatmul.msk.bf16.vlgmr.msra.gmra.mxu3 %vm2128_vm11, %v4729_v37 }
 0x565   : > { %4594 = vmatmul.msk.bf16.gmra.mxu2 %vm2128_vm11, %v4730_v59  ;;  %4598 = vmatmul.msk.bf16.gmra.mxu3 %vm2128_vm11, %v4730_v59 }
 0x575   : > { %4595 = vmatmul.msk.bf16.gmra.mxu2 %vm2128_vm11, %v4731_v54  ;;  %4599 = vmatmul.msk.bf16.gmra.mxu3 %vm2128_vm11, %v4731_v54 }
 0x585   : > { %4596 = vmatmul.msk.bf16.gmra.mxu2 %vm2128_vm11, %v4732_v3  ;;  %4600 = vmatmul.msk.bf16.gmra.mxu3 %vm2128_vm11, %v4732_v3 }
 0x5d8   : > { %v3047_v13 = vpop.f32.mrf.mxu2  ;;  %v3076_v61 = vpop.f32.mrf.mxu3 }
 0x5d9   : > { %v6582_v63 = vpack.c.bf16 %v3076_v61, %v3047_v13  ;;  %v3186_v13 = vunpack.c.l.bf16 %v3127_v11  ;;  %v3184_v61 = vunpack.c.l.bf16 %v3111_v23 }
 0x5e0   : > { %v3049_v17 = vpop.f32.mrf.mxu2  ;;  %v3078_v52 = vpop.f32.mrf.mxu3 }
 0x5e1   : > { %v3097_v14 = vpack.c.bf16 %v3078_v52, %v3049_v17 }
 0x5e3   : > { %v3171_v42 = vunpack.c.h.bf16 %v3097_v14 }
 0x5e8   : > { %v3052_v51 = vpop.f32.mrf.mxu2  ;;  %v3081_v29 = vpop.f32.mrf.mxu3 }
 0x5e9   : > { %v3098_v8 = vpack.c.bf16 %v3081_v29, %v3052_v51  ;;  %v3169_v51 = vunpack.c.h.bf16 %v6582_v63 }
 0x5eb   : > { %v3172_v17 = vunpack.c.l.bf16 %v3098_v8  ;;  %v3173_v52 = vunpack.c.h.bf16 %v3098_v8  ;;  %v3193_v55 = vadd.f32 %v3184_v61, %v3169_v51 }
 0x5ed   : > { %v3196_v39 = vadd.f32 %v3186_v13, %v3172_v17 }
 0x5f0   : > { %v3054_v57 = vpop.f32.mrf.mxu2  ;;  %v3083_v18 = vpop.f32.mrf.mxu3 }
 0x5f1   : > { %v3099_v7 = vpack.c.bf16 %v3083_v18, %v3054_v57  ;;  %v3168_v57 = vunpack.c.l.bf16 %v6582_v63 }
 0x5f3   : > { %v3174_v37 = vunpack.c.l.bf16 %v3099_v7  ;;  %v3175_v59 = vunpack.c.h.bf16 %v3099_v7  ;;  %v3192_v63 = vadd.f32 %v3184_v61, %v3168_v57 }
 0x5f8   : > { %v3057_v41 = vpop.f32.mrf.mxu2  ;;  %v3086_v62 = vpop.f32.mrf.mxu3 }
 0x5f9   : > { %v3100_v36 = vpack.c.bf16 %v3086_v62, %v3057_v41  ;;  %v3185_v41 = vunpack.c.l.bf16 %v3119_v19  ;;  %v3170_v62 = vunpack.c.l.bf16 %v3097_v14 }
 0x5fb   : > { %v3176_v45 = vunpack.c.l.bf16 %v3100_v36  ;;  %v3177_v33 = vunpack.c.h.bf16 %v3100_v36  ;;  %v3197_v36 = vadd.f32 %v3186_v13, %v3173_v52  ;;  %v3194_v34 = vadd.f32 %v3185_v41, %v3170_v62 }
 0x5fd   : > { %v3200_v29 = vadd.f32 %v3188_v21, %v3176_v45  ;;  %v3201_v18 = vadd.f32 %v3188_v21, %v3177_v33  ;;  %v3210_v23 = vpack.c.bf16 %v3197_v36, %v3196_v39  ;;  %v3208_v45 = vpack.c.bf16 %v3193_v55, %v3192_v63 }
 0x5fe   : > { %v4988_v55 = vmov 5  }
 0x5ff   : > { %v3220_v13 = vunpack.c.l.bf16 %v3210_v23  ;;  %v3221_v61 = vunpack.c.h.bf16 %v3210_v23  ;;  %4850 = vset.pattern.permute.xlu0 %v4988_v55  ;;  %4849 = vset.pattern.permute.xlu2 %v4988_v55 }
 0x600   : > { %v3059_v4 = vpop.f32.mrf.mxu2  ;;  %v3088_v30 = vpop.f32.mrf.mxu3  ;;  %3535 = vperm.xlu0 %4850, %v6979_v43   ;;  %4848 = vset.pattern.permute.xlu1 %v4988_v55 }
 0x601   : > { %v3101_v38 = vpack.c.bf16 %v3088_v30, %v3059_v4  ;;  %v3198_v4 = vadd.f32 %v3187_v12, %v3174_v37  ;;  %v3199_v30 = vadd.f32 %v3187_v12, %v3175_v59  ;;  %v4738_v59 = vld [vmem:[%s6765_s4 + $0x28] sm:$0xff]  ;;  %v3237_v63 = vmul.f32 0.010009766, %v3221_v61  ;;  %3559 = vperm.xlu2 %4849, %v6980_v22   ;;  %3551 = vperm.xlu1 %4848, %v6981_v24  }
 0x602   : > { %4626 = vmatmul.msk.bf16.gmra.mxu0 %vm1821_vm9, %v4738_v59  ;;  %4630 = vmatmul.msk.bf16.gmra.mxu1 %vm1821_vm9, %v4738_v59 }
 0x603   : > { %v3178_v53 = vunpack.c.l.bf16 %v3101_v38  ;;  %v3179_v40 = vunpack.c.h.bf16 %v3101_v38 }
 0x605   : > { %v3202_v54 = vadd.f32 %v3189_v25, %v3178_v53  ;;  %v3203_v3 = vadd.f32 %v3189_v25, %v3179_v40  ;;  %v3211_v25 = vpack.c.bf16 %v3199_v30, %v3198_v4  ;;  %v3217_v4 = vunpack.c.h.bf16 %v3208_v45 }
 0x607   : > { %v3213_v9 = vpack.c.bf16 %v3203_v3, %v3202_v54  ;;  %v3222_v12 = vunpack.c.l.bf16 %v3211_v25  ;;  %v3223_v37 = vunpack.c.h.bf16 %v3211_v25 }
 0x608   : > { %v3062_v6 = vpop.f32.mrf.mxu2  ;;  %v3091_v46 = vpop.f32.mrf.mxu3  ;;  %3511 = vperm.xlu0 %4850, %v6982_v58  }
 0x609   : > { %v3102_v1 = vpack.c.bf16 %v3091_v46, %v3062_v6  ;;  %v3212_v6 = vpack.c.bf16 %v3201_v18, %v3200_v29  ;;  %v3226_v7 = vunpack.c.l.bf16 %v3213_v9  ;;  %v3227_v40 = vunpack.c.h.bf16 %v3213_v9  ;;  %3519 = vperm.xlu2 %4849, %v6983_v26   ;;  %3543 = vperm.xlu1 %4848, %v6984_v35  }
 0x60a   : > { %v3238_v18 = vmul.f32 0.010009766, %v3222_v12 }
 0x60b   : > { %v3180_v44 = vunpack.c.l.bf16 %v3102_v1  ;;  %v3181_v56 = vunpack.c.h.bf16 %v3102_v1  ;;  %v3195_v1 = vadd.f32 %v3185_v41, %v3171_v42  ;;  %v3224_v21 = vunpack.c.l.bf16 %v3212_v6 }
 0x60c   : > { %v3225_v47 = vunpack.c.h.bf16 %v3212_v6  ;;  %v3242_v14 = vmul.f32 0.010009766, %v3226_v7  ;;  %v3243_v60 = vmul.f32 0.010009766, %v3227_v40  ;;  %v3216_v42 = vunpack.c.l.bf16 %v3208_v45  ;;  %v4735_v45 = vld [vmem:[#allocation2 + $0x90] sm:$0xff] }
 0x60d   : > { %v3204_v2 = vadd.f32 %v3190_v48, %v3180_v44  ;;  %v3205_v16 = vadd.f32 %v3190_v48, %v3181_v56  ;;  %v3209_v33 = vpack.c.bf16 %v3195_v1, %v3194_v34  ;;  %v3240_v54 = vmul.f32 0.010009766, %v3224_v21 }
 0x60e   : > { %v3241_v3 = vmul.f32 0.010009766, %v3225_v47  ;;  %v3282_v29 = vmax.f32 %v3226_v7, %v3242_v14  ;;  %v3233_v34 = vmul.f32 0.010009766, %v3217_v4  ;;  %v3355_v14 = vpop.f32.mrf.mxu0 }
 0x60f   : > { %v3214_v27 = vpack.c.bf16 %v3205_v16, %v3204_v2  ;;  %v3280_v30 = vmax.f32 %v3224_v21, %v3240_v54 }
 0x610   : > { %v3064_v28 = vpop.f32.mrf.mxu2  ;;  %v3093_v0 = vpop.f32.mrf.mxu3  ;;  %v3281_v9 = vmax.f32 %v3225_v47, %v3241_v3  ;;  %v3273_v23 = vmax.f32 %v3217_v4, %v3233_v34 }
 0x611   : > { %v3103_v20 = vpack.c.bf16 %v3093_v0, %v3064_v28  ;;  %v3228_v46 = vunpack.c.l.bf16 %v3214_v27  ;;  %v3229_v11 = vunpack.c.h.bf16 %v3214_v27  ;;  %v3218_v28 = vunpack.c.l.bf16 %v3209_v33  ;;  %3503 = vperm.xlu2 %4849, %v6985_v50   ;;  %3527 = vperm.xlu1 %4848, %v6986_v10  }
 0x612   : > { %v3219_v0 = vunpack.c.h.bf16 %v3209_v33  ;;  %v3283_v27 = vmax.f32 %v3227_v40, %v3243_v60  ;;  %v3292_v39 = vpack.c.bf16 %v3282_v29, %v3280_v30  ;;  %v4736_v33 = vld [vmem:[#allocation2 + $0x98] sm:$0xff] }
 0x613   : > { %v3182_v5 = vunpack.c.l.bf16 %v3103_v20  ;;  %v3183_v38 = vunpack.c.h.bf16 %v3103_v20  ;;  %v3244_v44 = vmul.f32 0.010009766, %v3228_v46  ;;  %v3245_v56 = vmul.f32 0.010009766, %v3229_v11 }
 0x614   : > { %v3239_v20 = vmul.f32 0.010009766, %v3223_v37  ;;  %v3293_v36 = vpack.c.bf16 %v3283_v27, %v3281_v9 }
 0x615   : > { %v3206_v15 = vadd.f32 %v3191_v32, %v3182_v5  ;;  %v3207_v48 = vadd.f32 %v3191_v32, %v3183_v38  ;;  %v3284_v57 = vmax.f32 %v3228_v46, %v3244_v44  ;;  %v3285_v17 = vmax.f32 %v3229_v11, %v3245_v56  ;;  %v4739_v44 = vld [vmem:[%s6765_s4 + $0x30] sm:$0xff]  ;;  %v4733_v56 = vld [vmem:[#allocation2 + $0x80] sm:$0xff] }
 0x616   : > { %v3236_v32 = vmul.f32 0.010009766, %v3220_v13  ;;  %v3278_v5 = vmax.f32 %v3222_v12, %v3238_v18  ;;  %v3234_v38 = vmul.f32 0.010009766, %v3218_v28  ;;  %v3279_v6 = vmax.f32 %v3223_v37, %v3239_v20  ;;  %4627 = vmatmul.msk.bf16.gmra.mxu0 %vm1821_vm9, %v4739_v44  ;;  %4631 = vmatmul.msk.bf16.gmra.mxu1 %vm1821_vm9, %v4739_v44  ;;  %v3384_v12 = vpop.f32.mrf.mxu1 }
 0x617   : > { %v3215_v53 = vpack.c.bf16 %v3207_v48, %v3206_v15  ;;  %v3235_v46 = vmul.f32 0.010009766, %v3219_v0  ;;  %v3277_v15 = vmax.f32 %v3221_v61, %v3237_v63  ;;  %v3232_v48 = vmul.f32 0.010009766, %v3216_v42 }
 0x618   : > { %v3276_v11 = vmax.f32 %v3220_v13, %v3236_v32  ;;  %v3274_v7 = vmax.f32 %v3218_v28, %v3234_v38 }
 0x619   : > { %v3230_v19 = vunpack.c.l.bf16 %v3215_v53  ;;  %v3231_v8 = vunpack.c.h.bf16 %v3215_v53  ;;  %v3291_v25 = vpack.c.bf16 %v3279_v6, %v3277_v15  ;;  %v3275_v53 = vmax.f32 %v3219_v0, %v3235_v46 }
 0x61a   : > { %v3290_v1 = vpack.c.bf16 %v3278_v5, %v3276_v11  ;;  %v3272_v40 = vmax.f32 %v3216_v42, %v3232_v48 }
 0x61b   : > { %v3246_v2 = vmul.f32 0.010009766, %v3230_v19  ;;  %v3247_v16 = vmul.f32 0.010009766, %v3231_v8  ;;  %v3289_v47 = vpack.c.bf16 %v3275_v53, %v3273_v23 }
 0x61c   : > { %v3288_v21 = vpack.c.bf16 %v3274_v7, %v3272_v40 }
 0x61d   : > { %v3286_v51 = vmax.f32 %v3230_v19, %v3246_v2  ;;  %v3287_v52 = vmax.f32 %v3231_v8, %v3247_v16  ;;  %v4740_v19 = vld [vmem:[%s6765_s4 + $0x38] sm:$0xff]  ;;  %v4734_v8 = vld [vmem:[#allocation2 + $0x88] sm:$0xff]  ;;  %v3357_v2 = vpop.f32.mrf.mxu0 }
 0x61e   : > { %v3386_v16 = vpop.f32.mrf.mxu1 }
 0x61f   : > { %v3294_v41 = vpack.c.bf16 %v3286_v51, %v3284_v57  ;;  %v3295_v62 = vpack.c.bf16 %v3287_v52, %v3285_v17 }
 0x621   : > { %3440 = vmatpush.bf16.msrb.mxu2 %v3294_v41  ;;  %3469 = vmatpush.bf16.msrb.mxu3 %v3295_v62 }
 0x625   : > { %3441 = vmatpush.bf16.msrb.mxu2 %v3292_v39  ;;  %3470 = vmatpush.bf16.msrb.mxu3 %v3293_v36 }
 0x626   : > { %4628 = vmatmul.msk.bf16.gmra.mxu0 %vm1821_vm9, %v4740_v19  ;;  %4632 = vmatmul.msk.bf16.gmra.mxu1 %vm1821_vm9, %v4740_v19 }
 0x629   : > { %3442 = vmatpush.bf16.msrb.mxu2 %v3290_v1  ;;  %3471 = vmatpush.bf16.msrb.mxu3 %v3291_v25 }
 0x62d   : > { %3443 = vmatpush.bf16.msrb.mxu2 %v3288_v21  ;;  %3472 = vmatpush.bf16.msrb.mxu3 %v3289_v47 }
 0x630   : > { %4649 = vmatmul.msk.bf16.vlgmr.msrb.gmra.mxu2 %vm2128_vm11, %v4733_v56  ;;  %4653 = vmatmul.msk.bf16.vlgmr.msrb.gmra.mxu3 %vm2128_vm11, %v4733_v56 }
 0x640   : > { %4650 = vmatmul.msk.bf16.gmra.mxu2 %vm2128_vm11, %v4734_v8  ;;  %4654 = vmatmul.msk.bf16.gmra.mxu3 %vm2128_vm11, %v4734_v8 }
 0x650   : > { %4651 = vmatmul.msk.bf16.gmra.mxu2 %vm2128_vm11, %v4735_v45  ;;  %4655 = vmatmul.msk.bf16.gmra.mxu3 %vm2128_vm11, %v4735_v45 }
 0x65b   : > { %v6635_v28 = vpop.permute.xlu2 %3559 }
 0x65c   : > { %v3565_v19 = vperm.slane %v6635_v28, %v6460_v49 }
 0x660   : > { %4652 = vmatmul.msk.bf16.gmra.mxu2 %vm2128_vm11, %v4736_v33  ;;  %4656 = vmatmul.msk.bf16.gmra.mxu3 %vm2128_vm11, %v4736_v33 }
 0x663   : > { %v3520_v30 = vpop.permute.xlu2 %3519 }
 0x664   : > { %v3525_v15 = vperm.slane %v3520_v30, %v6460_v49 }
 0x66b   : > { %v3504_v39 = vpop.permute.xlu2 %3503 }
 0x66c   : > { %v3509_v48 = vperm.slane %v3504_v39, %v6460_v49 }
 0x672   : > { %v3536_v55 = vpop.permute.xlu0 %3535 }
 0x673   : > { %v3552_v20 = vpop.permute.xlu1 %3551 }
 0x674   : > { %v3557_v25 = vperm.slane %v3552_v20, %v6460_v49 }
 0x67b   : > { %v3544_v63 = vpop.permute.xlu1 %3543 }
 0x67c   : > { %v3549_v7 = vperm.slane %v3544_v63, %v6460_v49 }
 0x67f   : > { %v3360_v13 = vpop.f32.mrf.mxu0  ;;  %v3389_v61 = vpop.f32.mrf.mxu1 }
 0x683   : > { %v3528_v53 = vpop.permute.xlu1 %3527 }
 0x687   : > { %v3362_v17 = vpop.f32.mrf.mxu0  ;;  %v3391_v52 = vpop.f32.mrf.mxu1 }
 0x693   : > { %v3365_v62 = vpop.f32.mrf.mxu0  ;;  %v3394_v27 = vpop.f32.mrf.mxu1 }
 0x69b   : > { %v3367_v9 = vpop.f32.mrf.mxu0  ;;  %v3396_v32 = vpop.f32.mrf.mxu1 }
 0x6a3   : > { %v3370_v36 = vpop.f32.mrf.mxu0  ;;  %v3399_v6 = vpop.f32.mrf.mxu1 }
 0x6ab   : > { %v3372_v63 = vpop.f32.mrf.mxu0 }
 0x6b3   : > { %v3445_v60 = vpop.f32.mrf.mxu2  ;;  %v3474_v37 = vpop.f32.mrf.mxu3 }
 0x6b4   : > { %v3446_v59 = vadd.f32 %v3445_v60, %v3355_v14  ;;  %v3475_v54 = vadd.f32 %v3474_v37, %v3384_v12  ;;  %v3584_v14 = vunpack.c.l.bf16 %v3525_v15  ;;  %v6643_v12 = vunpack.c.l.bf16 %v3509_v48 }
 0x6b5   : > { %v3541_v60 = vperm.slane %v3536_v55, %v6460_v49 }
 0x6b6   : > { %v6633_v3 = vpack.c.bf16 %v3475_v54, %v3446_v59  ;;  %v3512_v59 = vpop.permute.xlu0 %3511  ;;  %v3588_v54 = vunpack.c.l.bf16 %v3557_v25 }
 0x6b7   : > { %v3586_v20 = vunpack.c.l.bf16 %v3541_v60 }
 0x6b8   : > { %v3567_v25 = vunpack.c.h.bf16 %v6633_v3 }
 0x6bb   : > { %v3447_v57 = vpop.f32.mrf.mxu2  ;;  %v3476_v51 = vpop.f32.mrf.mxu3 }
 0x6c3   : > { %v3450_v29 = vpop.f32.mrf.mxu2  ;;  %v3479_v18 = vpop.f32.mrf.mxu3 }
 0x6c4   : > { %v3451_v40 = vadd.f32 %v3450_v29, %v3360_v13  ;;  %v3480_v23 = vadd.f32 %v3479_v18, %v3389_v61  ;;  %v3587_v13 = vunpack.c.l.bf16 %v3549_v7  ;;  %v3533_v61 = vperm.slane %v3528_v53, %v6460_v49 }
 0x6c5   : > { %v3477_v29 = vadd.f32 %v3476_v51, %v3386_v16 }
 0x6c6   : > { %v3496_v18 = vpack.c.bf16 %v3480_v23, %v3451_v40  ;;  %v4989_v23 = vmov 6  }
 0x6c7   : > { %4853 = vset.pattern.permute.xlu0 %v4989_v23  ;;  %4852 = vset.pattern.permute.xlu2 %v4989_v23 }
 0x6c8   : > { %v3570_v16 = vunpack.c.l.bf16 %v3496_v18  ;;  %v3571_v48 = vunpack.c.h.bf16 %v3496_v18  ;;  %3834 = vperm.xlu0 %4853, %v6979_v43   ;;  %4851 = vset.pattern.permute.xlu1 %v4989_v23 }
 0x6c9   : > { %3858 = vperm.xlu2 %4852, %v6980_v22   ;;  %3850 = vperm.xlu1 %4851, %v6981_v24  }
 0x6cb   : > { %v3452_v0 = vpop.f32.mrf.mxu2  ;;  %v3481_v41 = vpop.f32.mrf.mxu3 }
 0x6cc   : > { %v3453_v21 = vadd.f32 %v3452_v0, %v3362_v17  ;;  %v3482_v47 = vadd.f32 %v3481_v41, %v3391_v52  ;;  %v3448_v52 = vadd.f32 %v3447_v57, %v3357_v2 }
 0x6ce   : > { %v3497_v0 = vpack.c.bf16 %v3482_v47, %v3453_v21  ;;  %v3495_v2 = vpack.c.bf16 %v3477_v29, %v3448_v52  ;;  %v3591_v29 = vadd.f32 %v6643_v12, %v3567_v25 }
 0x6d0   : > { %v3572_v57 = vunpack.c.l.bf16 %v3497_v0  ;;  %v3573_v51 = vunpack.c.h.bf16 %v3497_v0  ;;  %v3568_v21 = vunpack.c.l.bf16 %v3495_v2  ;;  %v3569_v47 = vunpack.c.h.bf16 %v3495_v2  ;;  %3810 = vperm.xlu0 %4853, %v6982_v58  }
 0x6d1   : > { %3818 = vperm.xlu2 %4852, %v6983_v26   ;;  %3842 = vperm.xlu1 %4851, %v6984_v35  }
 0x6d3   : > { %v3455_v42 = vpop.f32.mrf.mxu2  ;;  %v3484_v4 = vpop.f32.mrf.mxu3 }
 0x6d4   : > { %v3456_v34 = vadd.f32 %v3455_v42, %v3365_v62  ;;  %v3485_v1 = vadd.f32 %v3484_v4, %v3394_v27  ;;  %v3517_v42 = vperm.slane %v3512_v59, %v6460_v49  ;;  %v3595_v59 = vadd.f32 %v3584_v14, %v3571_v48 }
 0x6d6   : > { %v3498_v37 = vpack.c.bf16 %v3485_v1, %v3456_v34  ;;  %v3583_v7 = vunpack.c.l.bf16 %v3517_v42 }
 0x6d8   : > { %v3574_v4 = vunpack.c.l.bf16 %v3498_v37  ;;  %v3575_v30 = vunpack.c.h.bf16 %v3498_v37  ;;  %v3594_v37 = vadd.f32 %v3584_v14, %v3570_v16  ;;  %v3592_v18 = vadd.f32 %v3583_v7, %v3568_v21 }
 0x6d9   : > { %3802 = vperm.xlu2 %4852, %v6985_v50   ;;  %3826 = vperm.xlu1 %4851, %v6986_v10  }
 0x6da   : > { %v3598_v34 = vadd.f32 %v3586_v20, %v3574_v4  ;;  %v3599_v1 = vadd.f32 %v3586_v20, %v3575_v30 }
 0x6db   : > { %v3457_v5 = vpop.f32.mrf.mxu2  ;;  %v3486_v38 = vpop.f32.mrf.mxu3 }
 0x6dc   : > { %v3458_v46 = vadd.f32 %v3457_v5, %v3367_v9  ;;  %v3487_v11 = vadd.f32 %v3486_v38, %v3396_v32  ;;  %v3566_v9 = vunpack.c.l.bf16 %v6633_v3  ;;  %v3585_v32 = vunpack.c.l.bf16 %v3533_v61  ;;  %v3401_v5 = vpop.f32.mrf.mxu1 }
 0x6de   : > { %v3499_v8 = vpack.c.bf16 %v3487_v11, %v3458_v46  ;;  %v3590_v3 = vadd.f32 %v6643_v12, %v3566_v9 }
 0x6e0   : > { %v3576_v28 = vunpack.c.l.bf16 %v3499_v8  ;;  %v3577_v41 = vunpack.c.h.bf16 %v3499_v8  ;;  %v3589_v8 = vunpack.c.l.bf16 %v3565_v19  ;;  %v3593_v19 = vadd.f32 %v3583_v7, %v3569_v47 }
 0x6e2   : > { %v3601_v46 = vadd.f32 %v3587_v13, %v3577_v41 }
 0x6e3   : > { %v3460_v44 = vpop.f32.mrf.mxu2  ;;  %v3489_v56 = vpop.f32.mrf.mxu3 }
 0x6e4   : > { %v3461_v45 = vadd.f32 %v3460_v44, %v3370_v36  ;;  %v3490_v33 = vadd.f32 %v3489_v56, %v3399_v6  ;;  %v3600_v6 = vadd.f32 %v3587_v13, %v3576_v28  ;;  %v3596_v44 = vadd.f32 %v3585_v32, %v3572_v57 }
 0x6e5   : > { %v3597_v56 = vadd.f32 %v3585_v32, %v3573_v51  ;;  %v3606_v32 = vpack.c.bf16 %v3591_v29, %v3590_v3 }
 0x6e6   : > { %v3500_v17 = vpack.c.bf16 %v3490_v33, %v3461_v45  ;;  %v3611_v45 = vpack.c.bf16 %v3601_v46, %v3600_v6 }
 0x6e7   : > { %v3609_v0 = vpack.c.bf16 %v3597_v56, %v3596_v44  ;;  %v3614_v21 = vunpack.c.l.bf16 %v3606_v32  ;;  %v3615_v47 = vunpack.c.h.bf16 %v3606_v32 }
 0x6e8   : > { %v3578_v62 = vunpack.c.l.bf16 %v3500_v17  ;;  %v3579_v27 = vunpack.c.h.bf16 %v3500_v17  ;;  %v3624_v41 = vunpack.c.l.bf16 %v3611_v45 }
 0x6ea   : > { %v3602_v38 = vadd.f32 %v3588_v54, %v3578_v62  ;;  %v3603_v55 = vadd.f32 %v3588_v54, %v3579_v27  ;;  %v3610_v54 = vpack.c.bf16 %v3599_v1, %v3598_v34  ;;  %v3625_v62 = vunpack.c.h.bf16 %v3611_v45 }
 0x6eb   : > { %v3462_v39 = vpop.f32.mrf.mxu2  ;;  %v3491_v36 = vpop.f32.mrf.mxu3  ;;  %v3608_v27 = vpack.c.bf16 %v3595_v59, %v3594_v37  ;;  %v3640_v2 = vmul.f32 0.010009766, %v3624_v41 }
 0x6ec   : > { %v3463_v11 = vadd.f32 %v3462_v39, %v3372_v63  ;;  %v3492_v15 = vadd.f32 %v3491_v36, %v3401_v5  ;;  %v3612_v53 = vpack.c.bf16 %v3603_v55, %v3602_v38  ;;  %v3622_v20 = vunpack.c.l.bf16 %v3610_v54 }
 0x6ed   : > { %v3623_v42 = vunpack.c.h.bf16 %v3610_v54  ;;  %v3607_v63 = vpack.c.bf16 %v3593_v19, %v3592_v18  ;;  %v3620_v5 = vunpack.c.l.bf16 %v3609_v0  ;;  %v3621_v38 = vunpack.c.h.bf16 %v3609_v0 }
 0x6ee   : > { %v3501_v40 = vpack.c.bf16 %v3492_v15, %v3463_v11  ;;  %v3626_v13 = vunpack.c.l.bf16 %v3612_v53  ;;  %v3627_v61 = vunpack.c.h.bf16 %v3612_v53  ;;  %v3641_v16 = vmul.f32 0.010009766, %v3625_v62 }
 0x6ef   : > { %v3638_v57 = vmul.f32 0.010009766, %v3622_v20  ;;  %v3639_v51 = vmul.f32 0.010009766, %v3623_v42  ;;  %v3618_v39 = vunpack.c.l.bf16 %v3608_v27  ;;  %v3619_v36 = vunpack.c.h.bf16 %v3608_v27 }
 0x6f0   : > { %v3580_v33 = vunpack.c.l.bf16 %v3501_v40  ;;  %v3581_v60 = vunpack.c.h.bf16 %v3501_v40  ;;  %v3642_v9 = vmul.f32 0.010009766, %v3626_v13  ;;  %v3643_v14 = vmul.f32 0.010009766, %v3627_v61 }
 0x6f1   : > { %v3616_v48 = vunpack.c.l.bf16 %v3607_v63  ;;  %v3617_v34 = vunpack.c.h.bf16 %v3607_v63  ;;  %v3636_v1 = vmul.f32 0.010009766, %v3620_v5  ;;  %v3637_v25 = vmul.f32 0.010009766, %v3621_v38 }
 0x6f2   : > { %v3604_v17 = vadd.f32 %v3589_v8, %v3580_v33  ;;  %v3605_v52 = vadd.f32 %v3589_v8, %v3581_v60  ;;  %v3682_v6 = vmax.f32 %v3626_v13, %v3642_v9  ;;  %v3683_v11 = vmax.f32 %v3627_v61, %v3643_v14 }
 0x6f3   : > { %v3680_v40 = vmax.f32 %v3624_v41, %v3640_v2  ;;  %v3681_v23 = vmax.f32 %v3625_v62, %v3641_v16  ;;  %v3678_v44 = vmax.f32 %v3622_v20, %v3638_v57  ;;  %v3679_v56 = vmax.f32 %v3623_v42, %v3639_v51  ;;  %v4741_v20 = vld [vmem:[#allocation2 + $0xa0] sm:$0xff]  ;;  %v4742_v42 = vld [vmem:[#allocation2 + $0xa8] sm:$0xff] }
 0x6f4   : > { %v3613_v28 = vpack.c.bf16 %v3605_v52, %v3604_v17  ;;  %v3634_v8 = vmul.f32 0.010009766, %v3618_v39  ;;  %v3635_v45 = vmul.f32 0.010009766, %v3619_v36  ;;  %v3676_v33 = vmax.f32 %v3620_v5, %v3636_v1 }
 0x6f5   : > { %v3632_v60 = vmul.f32 0.010009766, %v3616_v48  ;;  %v3690_v3 = vpack.c.bf16 %v3680_v40, %v3678_v44  ;;  %v3691_v37 = vpack.c.bf16 %v3681_v23, %v3679_v56  ;;  %v3677_v59 = vmax.f32 %v3621_v38, %v3637_v25 }
 0x6f6   : > { %v3628_v4 = vunpack.c.l.bf16 %v3613_v28  ;;  %v3629_v30 = vunpack.c.h.bf16 %v3613_v28  ;;  %v3633_v54 = vmul.f32 0.010009766, %v3617_v34  ;;  %v3674_v13 = vmax.f32 %v3618_v39, %v3634_v8 }
 0x6f7   : > { %v3675_v61 = vmax.f32 %v3619_v36, %v3635_v45  ;;  %v3630_v17 = vmul.f32 0.010009766, %v3614_v21  ;;  %v3631_v52 = vmul.f32 0.010009766, %v3615_v47  ;;  %v3672_v19 = vmax.f32 %v3616_v48, %v3632_v60 }
 0x6f8   : > { %v3644_v12 = vmul.f32 0.010009766, %v3628_v4  ;;  %v3645_v55 = vmul.f32 0.010009766, %v3629_v30  ;;  %v3688_v29 = vpack.c.bf16 %v3676_v33, %v3674_v13  ;;  %v3673_v0 = vmax.f32 %v3617_v34, %v3633_v54 }
 0x6f9   : > { %v3689_v18 = vpack.c.bf16 %v3677_v59, %v3675_v61  ;;  %v3670_v28 = vmax.f32 %v3614_v21, %v3630_v17  ;;  %v3671_v41 = vmax.f32 %v3615_v47, %v3631_v52 }
 0x6fa   : > { %v3684_v46 = vmax.f32 %v3628_v4, %v3644_v12  ;;  %v3685_v15 = vmax.f32 %v3629_v30, %v3645_v55  ;;  %v4743_v4 = vld [vmem:[#allocation2 + $0xb0] sm:$0xff]  ;;  %v4744_v30 = vld [vmem:[#allocation2 + $0xb8] sm:$0xff] }
 0x6fb   : > { %v3686_v62 = vpack.c.bf16 %v3672_v19, %v3670_v28  ;;  %v3687_v27 = vpack.c.bf16 %v3673_v0, %v3671_v41 }
 0x6fc   : > { %v3692_v7 = vpack.c.bf16 %v3684_v46, %v3682_v6  ;;  %v3693_v53 = vpack.c.bf16 %v3685_v15, %v3683_v11 }
 0x6fe   : > { %3739 = vmatpush.bf16.msra.mxu0 %v3692_v7  ;;  %3768 = vmatpush.bf16.msra.mxu1 %v3693_v53 }
 0x702   : > { %3740 = vmatpush.bf16.msra.mxu0 %v3690_v3  ;;  %3769 = vmatpush.bf16.msra.mxu1 %v3691_v37 }
 0x706   : > { %3741 = vmatpush.bf16.msra.mxu0 %v3688_v29  ;;  %3770 = vmatpush.bf16.msra.mxu1 %v3689_v18 }
 0x70a   : > { %3742 = vmatpush.bf16.msra.mxu0 %v3686_v62  ;;  %3771 = vmatpush.bf16.msra.mxu1 %v3687_v27 }
 0x70d   : > { %4673 = vmatmul.msk.bf16.vlgmr.msra.gmra.mxu0 %vm2128_vm11, %v4741_v20  ;;  %4677 = vmatmul.msk.bf16.vlgmr.msra.gmra.mxu1 %vm2128_vm11, %v4741_v20 }
 0x71d   : > { %4674 = vmatmul.msk.bf16.gmra.mxu0 %vm2128_vm11, %v4742_v42  ;;  %4678 = vmatmul.msk.bf16.gmra.mxu1 %vm2128_vm11, %v4742_v42 }
 0x723   : > { %v6670_v16 = vpop.permute.xlu2 %3858 }
 0x724   : > { %v3864_v44 = vperm.slane %v6670_v16, %v6460_v49 }
 0x72b   : > { %v3819_v36 = vpop.permute.xlu2 %3818 }
 0x72c   : > { %v3824_v53 = vperm.slane %v3819_v36, %v6460_v49 }
 0x72d   : > { %4675 = vmatmul.msk.bf16.gmra.mxu0 %vm2128_vm11, %v4743_v4  ;;  %4679 = vmatmul.msk.bf16.gmra.mxu1 %vm2128_vm11, %v4743_v4 }
 0x72e   : > { %v3883_v52 = vunpack.c.l.bf16 %v3824_v53 }
 0x733   : > { %v3803_v34 = vpop.permute.xlu2 %3802 }
 0x734   : > { %v3808_v56 = vperm.slane %v3803_v34, %v6460_v49 }
 0x736   : > { %v3881_v0 = vunpack.c.l.bf16 %v3808_v56 }
 0x73a   : > { %v3835_v46 = vpop.permute.xlu0 %3834 }
 0x73b   : > { %v3851_v57 = vpop.permute.xlu1 %3850  ;;  %v3840_v40 = vperm.slane %v3835_v46, %v6460_v49  ;;  %v4990_v46 = vmov 7  }
 0x73c   : > { %v3856_v48 = vperm.slane %v3851_v57, %v6460_v49  ;;  %4856 = vset.pattern.permute.xlu0 %v4990_v46  ;;  %4855 = vset.pattern.permute.xlu2 %v4990_v46 }
 0x73d   : > { %4676 = vmatmul.msk.bf16.gmra.mxu0 %vm2128_vm11, %v4744_v30  ;;  %4680 = vmatmul.msk.bf16.gmra.mxu1 %vm2128_vm11, %v4744_v30  ;;  %v3885_v29 = vunpack.c.l.bf16 %v3840_v40 }
 0x73e   : > { %v3887_v8 = vunpack.c.l.bf16 %v3856_v48  ;;  %4133 = vperm.xlu0 %4856, %v6979_v43   ;;  %4854 = vset.pattern.permute.xlu1 %v4990_v46  ;;  %v3888_v48 = vunpack.c.l.bf16 %v3864_v44 }
 0x73f   : > { %4157 = vperm.xlu2 %4855, %v6980_v22   ;;  %4149 = vperm.xlu1 %4854, %v6981_v24  }
 0x742   : > { %v3811_v33 = vpop.permute.xlu0 %3810 }
 0x743   : > { %v3843_v6 = vpop.permute.xlu1 %3842  ;;  %v3816_v28 = vperm.slane %v3811_v33, %v6460_v49 }
 0x744   : > { %v3848_v1 = vperm.slane %v3843_v6, %v6460_v49 }
 0x746   : > { %v3886_v60 = vunpack.c.l.bf16 %v3848_v1  ;;  %4109 = vperm.xlu0 %4856, %v6982_v58  }
 0x747   : > { %4117 = vperm.xlu2 %4855, %v6983_v26   ;;  %4141 = vperm.xlu1 %4854, %v6984_v35  }
 0x74b   : > { %v3827_v25 = vpop.permute.xlu1 %3826 }
 0x74c   : > { %v3832_v37 = vperm.slane %v3827_v25, %v6460_v49 }
 0x74e   : > { %v3884_v20 = vunpack.c.l.bf16 %v3832_v37  ;;  %4858 = vset.pattern.permute.xlu0 %v6911_v31 }
 0x74f   : > { %4101 = vperm.xlu2 %4855, %v6985_v50   ;;  %4125 = vperm.xlu1 %4854, %v6986_v10   ;;  %v4745_v50 = vld [vmem:[#allocation2 + $0xc0] sm:$0xff]  ;;  %v4746_v10 = vld [vmem:[#allocation2 + $0xc8] sm:$0xff] }
 0x757   : > { %4857 = vset.pattern.permute.xlu1 %v6911_v31 }
 0x78a   : > { %v3744_v9 = vpop.f32.mrf.mxu0  ;;  %v3773_v14 = vpop.f32.mrf.mxu1 }
 0x78b   : > { %v6668_v32 = vpack.c.bf16 %v3773_v14, %v3744_v9 }
 0x78d   : > { %v3865_v30 = vunpack.c.l.bf16 %v6668_v32 }
 0x792   : > { %v3746_v63 = vpop.f32.mrf.mxu0  ;;  %v3775_v5 = vpop.f32.mrf.mxu1 }
 0x793   : > { %v3794_v27 = vpack.c.bf16 %v3775_v5, %v3746_v63 }
 0x795   : > { %v3867_v63 = vunpack.c.l.bf16 %v3794_v27  ;;  %v3868_v5 = vunpack.c.h.bf16 %v3794_v27 }
 0x79a   : > { %v3749_v38 = vpop.f32.mrf.mxu0  ;;  %v3778_v12 = vpop.f32.mrf.mxu1 }
 0x79b   : > { %v3795_v3 = vpack.c.bf16 %v3778_v12, %v3749_v38 }
 0x79d   : > { %v3869_v9 = vunpack.c.l.bf16 %v3795_v3  ;;  %v3870_v12 = vunpack.c.h.bf16 %v3795_v3 }
 0x79f   : > { %v3894_v53 = vadd.f32 %v3883_v52, %v3870_v12 }
 0x7a2   : > { %v3751_v55 = vpop.f32.mrf.mxu0  ;;  %v3780_v2 = vpop.f32.mrf.mxu1 }
 0x7a3   : > { %v3796_v59 = vpack.c.bf16 %v3780_v2, %v3751_v55 }
 0x7a5   : > { %v3871_v42 = vunpack.c.l.bf16 %v3796_v59  ;;  %v3872_v4 = vunpack.c.h.bf16 %v3796_v59 }
 0x7aa   : > { %v3754_v51 = vpop.f32.mrf.mxu0  ;;  %v3783_v39 = vpop.f32.mrf.mxu1 }
 0x7ab   : > { %v3797_v23 = vpack.c.bf16 %v3783_v39, %v3754_v51  ;;  %v3866_v51 = vunpack.c.h.bf16 %v6668_v32  ;;  %v3882_v39 = vunpack.c.l.bf16 %v3816_v28  ;;  %v3889_v32 = vadd.f32 %v3881_v0, %v3865_v30 }
 0x7ad   : > { %v3873_v18 = vunpack.c.l.bf16 %v3797_v23  ;;  %v3874_v19 = vunpack.c.h.bf16 %v3797_v23  ;;  %v3892_v43 = vadd.f32 %v3882_v39, %v3868_v5 }
 0x7af   : > { %v3897_v55 = vadd.f32 %v3885_v29, %v3873_v18  ;;  %v3898_v2 = vadd.f32 %v3885_v29, %v3874_v19 }
 0x7b1   : > { %v3909_v40 = vpack.c.bf16 %v3898_v2, %v3897_v55 }
 0x7b2   : > { %v3756_v11 = vpop.f32.mrf.mxu0  ;;  %v3785_v15 = vpop.f32.mrf.mxu1 }
 0x7b3   : > { %v3798_v7 = vpack.c.bf16 %v3785_v15, %v3756_v11  ;;  %v3895_v11 = vadd.f32 %v3884_v20, %v3871_v42  ;;  %v3896_v15 = vadd.f32 %v3884_v20, %v3872_v4  ;;  %v3921_v59 = vunpack.c.l.bf16 %v3909_v40 }
 0x7b4   : > { %v3922_v22 = vunpack.c.h.bf16 %v3909_v40 }
 0x7b5   : > { %v3875_v54 = vunpack.c.l.bf16 %v3798_v7  ;;  %v3876_v13 = vunpack.c.h.bf16 %v3798_v7  ;;  %v3893_v7 = vadd.f32 %v3883_v52, %v3869_v9  ;;  %v3908_v33 = vpack.c.bf16 %v3896_v15, %v3895_v11 }
 0x7b6   : > { %v3938_v27 = vmul.f32 0.010009766, %v3922_v22 }
 0x7b7   : > { %v3899_v14 = vadd.f32 %v3886_v60, %v3875_v54  ;;  %v3900_v38 = vadd.f32 %v3886_v60, %v3876_v13  ;;  %v3907_v37 = vpack.c.bf16 %v3894_v53, %v3893_v7  ;;  %v3919_v29 = vunpack.c.l.bf16 %v3908_v33 }
 0x7b8   : > { %v3920_v18 = vunpack.c.h.bf16 %v3908_v33  ;;  %v4748_v33 = vld [vmem:[#allocation2 + $0xd8] sm:$0xff] }
 0x7b9   : > { %v3910_v34 = vpack.c.bf16 %v3900_v38, %v3899_v14  ;;  %v3917_v20 = vunpack.c.l.bf16 %v3907_v37  ;;  %v3918_v42 = vunpack.c.h.bf16 %v3907_v37  ;;  %v3935_v38 = vmul.f32 0.010009766, %v3919_v29 }
 0x7ba   : > { %v3759_v21 = vpop.f32.mrf.mxu0  ;;  %v3788_v47 = vpop.f32.mrf.mxu1  ;;  %v3936_v12 = vmul.f32 0.010009766, %v3920_v18 }
 0x7bb   : > { %v3799_v45 = vpack.c.bf16 %v3788_v47, %v3759_v21  ;;  %v3923_v60 = vunpack.c.l.bf16 %v3910_v34  ;;  %v3924_v3 = vunpack.c.h.bf16 %v3910_v34  ;;  %v3934_v46 = vmul.f32 0.010009766, %v3918_v42 }
 0x7bd   : > { %v3877_v61 = vunpack.c.l.bf16 %v3799_v45  ;;  %v3878_v17 = vunpack.c.h.bf16 %v3799_v45  ;;  %v3891_v45 = vadd.f32 %v3882_v39, %v3867_v63  ;;  %v3939_v28 = vmul.f32 0.010009766, %v3923_v60 }
 0x7be   : > { %v3975_v63 = vmax.f32 %v3919_v29, %v3935_v38 }
 0x7bf   : > { %v3901_v41 = vadd.f32 %v3887_v8, %v3877_v61  ;;  %v3902_v62 = vadd.f32 %v3887_v8, %v3878_v17  ;;  %v3890_v8 = vadd.f32 %v3881_v0, %v3866_v51  ;;  %v3906_v52 = vpack.c.bf16 %v3892_v43, %v3891_v45  ;;  %v4747_v43 = vld [vmem:[#allocation2 + $0xd0] sm:$0xff] }
 0x7c1   : > { %v3911_v36 = vpack.c.bf16 %v3902_v62, %v3901_v41  ;;  %v3905_v17 = vpack.c.bf16 %v3890_v8, %v3889_v32  ;;  %v3940_v41 = vmul.f32 0.010009766, %v3924_v3  ;;  %v3937_v62 = vmul.f32 0.010009766, %v3921_v59 }
 0x7c2   : > { %v3761_v16 = vpop.f32.mrf.mxu0  ;;  %v3790_v57 = vpop.f32.mrf.mxu1  ;;  %v3915_v55 = vunpack.c.l.bf16 %v3906_v52  ;;  %v3916_v58 = vunpack.c.h.bf16 %v3906_v52 }
 0x7c3   : > { %v3800_v6 = vpack.c.bf16 %v3790_v57, %v3761_v16  ;;  %v3925_v23 = vunpack.c.l.bf16 %v3911_v36  ;;  %v3926_v21 = vunpack.c.h.bf16 %v3911_v36  ;;  %v3979_v57 = vmax.f32 %v3923_v60, %v3939_v28 }
 0x7c4   : > { %v3980_v51 = vmax.f32 %v3924_v3, %v3940_v41  ;;  %v3913_v39 = vunpack.c.l.bf16 %v3905_v17  ;;  %v3914_v26 = vunpack.c.h.bf16 %v3905_v17  ;;  %v3977_v35 = vmax.f32 %v3921_v59, %v3937_v62 }
 0x7c5   : > { %v3879_v1 = vunpack.c.l.bf16 %v3800_v6  ;;  %v3880_v25 = vunpack.c.h.bf16 %v3800_v6  ;;  %v3941_v54 = vmul.f32 0.010009766, %v3925_v23  ;;  %v3942_v24 = vmul.f32 0.010009766, %v3926_v21 }
 0x7c6   : > { %v3978_v36 = vmax.f32 %v3922_v22, %v3938_v27  ;;  %v3933_v6 = vmul.f32 0.010009766, %v3917_v20  ;;  %v3931_v5 = vmul.f32 0.010009766, %v3915_v55  ;;  %v3989_v11 = vpack.c.bf16 %v3979_v57, %v3977_v35 }
 0x7c7   : > { %v3903_v47 = vadd.f32 %v3888_v48, %v3879_v1  ;;  %v3904_v56 = vadd.f32 %v3888_v48, %v3880_v25  ;;  %v3981_v4 = vmax.f32 %v3925_v23, %v3941_v54  ;;  %v3982_v9 = vmax.f32 %v3926_v21, %v3942_v24 }
 0x7c8   : > { %v3990_v15 = vpack.c.bf16 %v3980_v51, %v3978_v36  ;;  %v3976_v48 = vmax.f32 %v3920_v18, %v3936_v12  ;;  %v3932_v34 = vmul.f32 0.010009766, %v3916_v58  ;;  %v3973_v1 = vmax.f32 %v3917_v20, %v3933_v6 }
 0x7c9   : > { %v3912_v44 = vpack.c.bf16 %v3904_v56, %v3903_v47  ;;  %v3974_v25 = vmax.f32 %v3918_v42, %v3934_v46  ;;  %v3929_v32 = vmul.f32 0.010009766, %v3913_v39  ;;  %v3930_v7 = vmul.f32 0.010009766, %v3914_v26 }
 0x7ca   : > { %v3987_v53 = vpack.c.bf16 %v3975_v63, %v3973_v1  ;;  %v3971_v23 = vmax.f32 %v3915_v55, %v3931_v5  ;;  %v3972_v21 = vmax.f32 %v3916_v58, %v3932_v34 }
 0x7cb   : > { %v3927_v13 = vunpack.c.l.bf16 %v3912_v44  ;;  %v3928_v61 = vunpack.c.h.bf16 %v3912_v44  ;;  %v3988_v40 = vpack.c.bf16 %v3976_v48, %v3974_v25  ;;  %v3969_v47 = vmax.f32 %v3913_v39, %v3929_v32 }
 0x7cc   : > { %v3970_v56 = vmax.f32 %v3914_v26, %v3930_v7 }
 0x7cd   : > { %v3943_v19 = vmul.f32 0.010009766, %v3927_v13  ;;  %v3944_v0 = vmul.f32 0.010009766, %v3928_v61  ;;  %v3985_v8 = vpack.c.bf16 %v3971_v23, %v3969_v47 }
 0x7ce   : > { %v3986_v45 = vpack.c.bf16 %v3972_v21, %v3970_v56 }
 0x7cf   : > { %v3983_v30 = vmax.f32 %v3927_v13, %v3943_v19  ;;  %v3984_v14 = vmax.f32 %v3928_v61, %v3944_v0  ;;  %v6703_v13 = vpop.permute.xlu2 %4157  ;;  %v4150_v61 = vpop.permute.xlu1 %4149 }
 0x7d0   : > { %v4134_v19 = vpop.permute.xlu0 %4133  ;;  %v4155_v41 = vperm.slane %v4150_v61, %v6460_v49  ;;  %v4163_v38 = vperm.slane %v6703_v13, %v6460_v49 }
 0x7d1   : > { %v3991_v2 = vpack.c.bf16 %v3983_v30, %v3981_v4  ;;  %v3992_v16 = vpack.c.bf16 %v3984_v14, %v3982_v9  ;;  %v4139_v4 = vperm.slane %v4134_v19, %v6460_v49 }
 0x7d2   : > { %v4186_v55 = vunpack.c.l.bf16 %v4155_v41 }
 0x7d3   : > { %4038 = vmatpush.bf16.msra.mxu2 %v3991_v2  ;;  %4067 = vmatpush.bf16.msra.mxu3 %v3992_v16  ;;  %v4184_v46 = vunpack.c.l.bf16 %v4139_v4 }
 0x7d7   : > { %4039 = vmatpush.bf16.msra.mxu2 %v3989_v11  ;;  %4068 = vmatpush.bf16.msra.mxu3 %v3990_v15  ;;  %v4118_v29 = vpop.permute.xlu2 %4117  ;;  %v4142_v18 = vpop.permute.xlu1 %4141 }
 0x7d8   : > { %v4147_v62 = vperm.slane %v4142_v18, %v6460_v49  ;;  %v4123_v12 = vperm.slane %v4118_v29, %v6460_v49  ;;  %v4110_v16 = vpop.permute.xlu0 %4109 }
 0x7d9   : > { %v4115_v48 = vperm.slane %v4110_v16, %v6460_v49 }
 0x7da   : > { %v4185_v57 = vunpack.c.l.bf16 %v4147_v62  ;;  %v4182_v15 = vunpack.c.l.bf16 %v4123_v12 }
 0x7db   : > { %4040 = vmatpush.bf16.msra.mxu2 %v3987_v53  ;;  %4069 = vmatpush.bf16.msra.mxu3 %v3988_v40 }
 0x7df   : > { %4041 = vmatpush.bf16.msra.mxu2 %v3985_v8  ;;  %4070 = vmatpush.bf16.msra.mxu3 %v3986_v45  ;;  %v4102_v27 = vpop.permute.xlu2 %4101  ;;  %v4126_v20 = vpop.permute.xlu1 %4125 }
 0x7e0   : > { %v4107_v2 = vperm.slane %v4102_v27, %v6460_v49  ;;  %v4131_v51 = vperm.slane %v4126_v20, %v6460_v49  ;;  %v4293_v49 = vld [vmem:[%s6769_s8] sm:$0xff] }
 0x7e1   : > { %4296 = vperm.xlu1 %4857, %v4293_v49  }
 0x7e2   : > { %4697 = vmatmul.msk.bf16.vlgmr.msra.gmra.mxu2 %vm2128_vm11, %v4745_v50  ;;  %4701 = vmatmul.msk.bf16.vlgmr.msra.gmra.mxu3 %vm2128_vm11, %v4745_v50  ;;  %v4183_v32 = vunpack.c.l.bf16 %v4131_v51  ;;  %v4180_v40 = vunpack.c.l.bf16 %v4107_v2 }
 0x7f2   : > { %4698 = vmatmul.msk.bf16.gmra.mxu2 %vm2128_vm11, %v4746_v10  ;;  %4702 = vmatmul.msk.bf16.gmra.mxu3 %vm2128_vm11, %v4746_v10 }
 0x802   : > { %4699 = vmatmul.msk.bf16.gmra.mxu2 %vm2128_vm11, %v4747_v43  ;;  %4703 = vmatmul.msk.bf16.gmra.mxu3 %vm2128_vm11, %v4747_v43 }
 0x812   : > { %4700 = vmatmul.msk.bf16.gmra.mxu2 %vm2128_vm11, %v4748_v33  ;;  %4704 = vmatmul.msk.bf16.gmra.mxu3 %vm2128_vm11, %v4748_v33 }
 0x865   : > { %v4043_v31 = vpop.f32.mrf.mxu2  ;;  %v4072_v44 = vpop.f32.mrf.mxu3 }
 0x866   : > { %v6701_v60 = vpack.c.bf16 %v4072_v44, %v4043_v31  ;;  %v4181_v31 = vunpack.c.l.bf16 %v4115_v48 }
 0x868   : > { %v4164_v23 = vunpack.c.l.bf16 %v6701_v60  ;;  %v4165_v33 = vunpack.c.h.bf16 %v6701_v60 }
 0x86a   : > { %v4189_v62 = vadd.f32 %v4180_v40, %v4165_v33 }
 0x86d   : > { %v4045_v3 = vpop.f32.mrf.mxu2  ;;  %v4074_v37 = vpop.f32.mrf.mxu3 }
 0x86e   : > { %v4093_v25 = vpack.c.bf16 %v4074_v37, %v4045_v3 }
 0x870   : > { %v4166_v37 = vunpack.c.l.bf16 %v4093_v25 }
 0x872   : > { %v4190_v27 = vadd.f32 %v4181_v31, %v4166_v37 }
 0x875   : > { %v4048_v59 = vpop.f32.mrf.mxu2  ;;  %v4077_v22 = vpop.f32.mrf.mxu3 }
 0x876   : > { %v4094_v63 = vpack.c.bf16 %v4077_v22, %v4048_v59  ;;  %v4167_v59 = vunpack.c.h.bf16 %v4093_v25 }
 0x878   : > { %v4168_v56 = vunpack.c.l.bf16 %v4094_v63  ;;  %v4169_v8 = vunpack.c.h.bf16 %v4094_v63  ;;  %v4191_v20 = vadd.f32 %v4181_v31, %v4167_v59 }
 0x87a   : > { %v4192_v29 = vadd.f32 %v4182_v15, %v4168_v56  ;;  %v4193_v18 = vadd.f32 %v4182_v15, %v4169_v8  ;;  %v4205_v51 = vpack.c.bf16 %v4191_v20, %v4190_v27 }
 0x87d   : > { %v4050_v54 = vpop.f32.mrf.mxu2  ;;  %v4079_v24 = vpop.f32.mrf.mxu3 }
 0x87e   : > { %v4095_v39 = vpack.c.bf16 %v4079_v24, %v4050_v54  ;;  %v4187_v24 = vunpack.c.l.bf16 %v4163_v38 }
 0x880   : > { %v4170_v7 = vunpack.c.l.bf16 %v4095_v39  ;;  %v4171_v53 = vunpack.c.h.bf16 %v4095_v39 }
 0x882   : > { %v4194_v22 = vadd.f32 %v4183_v32, %v4170_v7  ;;  %v4195_v54 = vadd.f32 %v4183_v32, %v4171_v53  ;;  %v4214_v53 = vunpack.c.l.bf16 %v4205_v51 }
 0x884   : > { %v4230_v33 = vmul.f32 0.010009766, %v4214_v53 }
 0x885   : > { %v4053_v17 = vpop.f32.mrf.mxu2  ;;  %v4082_v52 = vpop.f32.mrf.mxu3 }
 0x886   : > { %v4096_v30 = vpack.c.bf16 %v4082_v52, %v4053_v17  ;;  %v4188_v52 = vadd.f32 %v4180_v40, %v4164_v23  ;;  %v4215_v40 = vunpack.c.h.bf16 %v4205_v51 }
 0x888   : > { %v4172_v5 = vunpack.c.l.bf16 %v4096_v30  ;;  %v4173_v11 = vunpack.c.h.bf16 %v4096_v30  ;;  %v4231_v31 = vmul.f32 0.010009766, %v4215_v40 }
 0x88a   : > { %v4196_v45 = vadd.f32 %v4184_v46, %v4172_v5  ;;  %v4197_v50 = vadd.f32 %v4184_v46, %v4173_v11 }
 0x88c   : > { %v4208_v19 = vpack.c.bf16 %v4197_v50, %v4196_v45 }
 0x88d   : > { %v4055_v0 = vpop.f32.mrf.mxu2  ;;  %v4084_v28 = vpop.f32.mrf.mxu3 }
 0x88e   : > { %v4097_v42 = vpack.c.bf16 %v4084_v28, %v4055_v0  ;;  %v4220_v38 = vunpack.c.l.bf16 %v4208_v19  ;;  %v4221_v12 = vunpack.c.h.bf16 %v4208_v19 }
 0x890   : > { %v4174_v26 = vunpack.c.l.bf16 %v4097_v42  ;;  %v4175_v35 = vunpack.c.h.bf16 %v4097_v42  ;;  %v4207_v42 = vpack.c.bf16 %v4195_v54, %v4194_v22  ;;  %v4236_v63 = vmul.f32 0.010009766, %v4220_v38 }
 0x891   : > { %v4237_v5 = vmul.f32 0.010009766, %v4221_v12 }
 0x892   : > { %v4198_v21 = vadd.f32 %v4185_v57, %v4174_v26  ;;  %v4199_v47 = vadd.f32 %v4185_v57, %v4175_v35  ;;  %v4204_v57 = vpack.c.bf16 %v4189_v62, %v4188_v52  ;;  %v4218_v39 = vunpack.c.l.bf16 %v4207_v42 }
 0x893   : > { %v4219_v26 = vunpack.c.h.bf16 %v4207_v42  ;;  %v4276_v50 = vmax.f32 %v4220_v38, %v4236_v63  ;;  %v4270_v52 = vmax.f32 %v4214_v53, %v4230_v33 }
 0x894   : > { %v4209_v13 = vpack.c.bf16 %v4199_v47, %v4198_v21  ;;  %v4234_v32 = vmul.f32 0.010009766, %v4218_v39  ;;  %v4212_v8 = vunpack.c.l.bf16 %v4204_v57  ;;  %v4213_v45 = vunpack.c.h.bf16 %v4204_v57 }
 0x895   : > { %v4058_v9 = vpop.f32.mrf.mxu2  ;;  %v4087_v14 = vpop.f32.mrf.mxu3  ;;  %v4235_v7 = vmul.f32 0.010009766, %v4219_v26 }
 0x896   : > { %v4098_v58 = vpack.c.bf16 %v4087_v14, %v4058_v9  ;;  %v4222_v30 = vunpack.c.l.bf16 %v4209_v13  ;;  %v4223_v9 = vunpack.c.h.bf16 %v4209_v13  ;;  %v4206_v14 = vpack.c.bf16 %v4193_v18, %v4192_v29 }
 0x897   : > { %v4274_v37 = vmax.f32 %v4218_v39, %v4234_v32  ;;  %v4275_v59 = vmax.f32 %v4219_v26, %v4235_v7  ;;  %v4229_v13 = vmul.f32 0.010009766, %v4213_v45  ;;  %v4271_v29 = vmax.f32 %v4215_v40, %v4231_v31 }
 0x898   : > { %v4176_v36 = vunpack.c.l.bf16 %v4098_v58  ;;  %v4177_v6 = vunpack.c.h.bf16 %v4098_v58  ;;  %v4239_v46 = vmul.f32 0.010009766, %v4223_v9  ;;  %v4216_v11 = vunpack.c.l.bf16 %v4206_v14 }
 0x899   : > { %v4217_v15 = vunpack.c.h.bf16 %v4206_v14  ;;  %v4269_v19 = vmax.f32 %v4213_v45, %v4229_v13 }
 0x89a   : > { %v4200_v34 = vadd.f32 %v4186_v55, %v4176_v36  ;;  %v4201_v1 = vadd.f32 %v4186_v55, %v4177_v6  ;;  %v4238_v6 = vmul.f32 0.010009766, %v4222_v30  ;;  %v4279_v56 = vmax.f32 %v4223_v9, %v4239_v46 }
 0x89b   : > { %v4233_v49 = vmul.f32 0.010009766, %v4217_v15 }
 0x89c   : > { %v4210_v44 = vpack.c.bf16 %v4201_v1, %v4200_v34  ;;  %v4278_v47 = vmax.f32 %v4222_v30, %v4238_v6 }
 0x89d   : > { %v4060_v10 = vpop.f32.mrf.mxu2  ;;  %v4089_v43 = vpop.f32.mrf.mxu3  ;;  %v4273_v54 = vmax.f32 %v4217_v15, %v4233_v49 }
 0x89e   : > { %v4099_v3 = vpack.c.bf16 %v4089_v43, %v4060_v10  ;;  %v4224_v0 = vunpack.c.l.bf16 %v4210_v44  ;;  %v4225_v28 = vunpack.c.h.bf16 %v4210_v44  ;;  %v4277_v10 = vmax.f32 %v4221_v12, %v4237_v5 }
 0x89f   : > { %v4232_v43 = vmul.f32 0.010009766, %v4216_v11  ;;  %v4288_v44 = vpack.c.bf16 %v4278_v47, %v4276_v50 }
 0x8a0   : > { %v4178_v61 = vunpack.c.l.bf16 %v4099_v3  ;;  %v4179_v17 = vunpack.c.h.bf16 %v4099_v3  ;;  %v4240_v55 = vmul.f32 0.010009766, %v4224_v0  ;;  %v4241_v58 = vmul.f32 0.010009766, %v4225_v28 }
 0x8a1   : > { %v4289_v3 = vpack.c.bf16 %v4279_v56, %v4277_v10  ;;  %v4272_v22 = vmax.f32 %v4216_v11, %v4232_v43 }
 0x8a2   : > { %v4202_v41 = vadd.f32 %v4187_v24, %v4178_v61  ;;  %v4203_v60 = vadd.f32 %v4187_v24, %v4179_v17  ;;  %v4280_v48 = vmax.f32 %v4224_v0, %v4240_v55  ;;  %v4281_v1 = vmax.f32 %v4225_v28, %v4241_v58 }
 0x8a3   : > { %v4228_v24 = vmul.f32 0.010009766, %v4212_v8  ;;  %v4286_v61 = vpack.c.bf16 %v4274_v37, %v4272_v22  ;;  %v4287_v17 = vpack.c.bf16 %v4275_v59, %v4273_v54  ;;  %v4285_v28 = vpack.c.bf16 %v4271_v29, %v4269_v19 }
 0x8a4   : > { %v4211_v4 = vpack.c.bf16 %v4203_v60, %v4202_v41  ;;  %v4292_v41 = vld [vmem:[%s6767_s6] sm:$0xf]  ;;  %v4297_v60 = vpop.permute.xlu1 %4296 }
 0x8a5   : > { %v4268_v18 = vmax.f32 %v4212_v8, %v4228_v24 }
 0x8a6   : > { %v4226_v2 = vunpack.c.l.bf16 %v4211_v4  ;;  %v4227_v16 = vunpack.c.h.bf16 %v4211_v4 }
 0x8a7   : > { %v4284_v0 = vpack.c.bf16 %v4270_v52, %v4268_v18 }
 0x8a8   : > { %v4242_v35 = vmul.f32 0.010009766, %v4226_v2  ;;  %v4243_v36 = vmul.f32 0.010009766, %v4227_v16 }
 0x8aa   : > { %v4282_v34 = vmax.f32 %v4226_v2, %v4242_v35  ;;  %v4283_v25 = vmax.f32 %v4227_v16, %v4243_v36 }
 0x8ac   : > { %v4290_v23 = vpack.c.bf16 %v4282_v34, %v4280_v48  ;;  %v4291_v21 = vpack.c.bf16 %v4283_v25, %v4281_v1 }
 0x8ae   : > { %4306 = vmatpush.bf16.msrb.mxu0 %v4290_v23  ;;  %4319 = vmatpush.bf16.msrb.mxu1 %v4291_v21 }
 0x8b2   : > { %4307 = vmatpush.bf16.msrb.mxu0 %v4288_v44  ;;  %4320 = vmatpush.bf16.msrb.mxu1 %v4289_v3 }
 0x8b6   : > { %4308 = vmatpush.bf16.msrb.mxu0 %v4286_v61  ;;  %4321 = vmatpush.bf16.msrb.mxu1 %v4287_v17 }
 0x8ba   : > { %4309 = vmatpush.bf16.msrb.mxu0 %v4284_v0  ;;  %4322 = vmatpush.bf16.msrb.mxu1 %v4285_v28 }
 0x8bd   : > { %4705 = vmatmul.msk.bf16.vlgmr.msrb.gmra.mxu0 %vm2128_vm11, %v4292_v41  ;;  %4706 = vmatmul.msk.bf16.vlgmr.msrb.gmra.mxu1 %vm2128_vm11, %v4292_v41 }
 0x93a   : > { %v4311_v62 = vpop.f32.mrf.mxu0  ;;  %v4324_v27 = vpop.f32.mrf.mxu1 }
 0x93b   : > { %v4312_v20 = vadd.f32 %v4311_v62, %v4297_v60  ;;  %v4325_v42 = vadd.f32 %v4324_v27, %v4297_v60 }
 0x93d   : > { %4328 = vst [vmem:[%s367_s29] sm:$0xff] %v4312_v20 }
 0x93e   : > { %4329 = vst [vmem:[%s367_s29 + $0x8] sm:$0xff] %v4325_v42 }
 0x93f   : > { %4916 = shalt.err (!%p4913_p9)
}
 0x940   : > { %4754 = dma.vmem_to_hbm [thread:$0]  (%p5081_p4), %s4347_s15, 256, %s4349_s16, %s4331_s18  }
 0x942   : > { %v4313_v4 = vpop.f32.mrf.mxu0  ;;  %v4326_v30 = vpop.f32.mrf.mxu1 }
 0x943 PF: > { %p4766_p10 = scmp.ge.s32.totalorder %s4971_s14, 2  ;;  %s4360_s23 = sand.u32 1, %s4951_s30  }
 0x944   : > { %s4361_s28 = scalar_lea.sflag [#allocation4], %s4360_s23 }
 0x945   : > { %p4761_p11 = pnand %p4766_p10, %p5088_p8 }
 0x947   : > { %p4762_p12 = pneg %p4761_p11 }
 0x949   : > { %4946 = dma.done.wait (%p4762_p12), %s4361_s28, 256  }
 0x94a   : > { %4948 = vsyncadd (%p4762_p12), %s4361_s28, 4294967040  ;;  %s23_s14 = sadd.s32 1, %s4971_s14   ;;  %s6987_s30 = smov %s4955_s10 }
 0x94b   : > { %p20_p13 = scmp.ge.s32.totalorder %s23_s14, 4   ;;  %s6988_s10 = smov %s4959_s11 }
 0x94c   : > { %s6989_s11 = smov %s5094_s22  ;;  %s6990_s12 = smov %s4967_s13 }
 0x94d   : > { %s6991_s13 = smov %s6993_s17  ;;  %22 = sbr.rel (!%p20_p13) target bundleno = 7 (0x7), region = 103 }
 0x952   :  { %4367 = vsyncpa [#allocation3], 1 }
 0x953   :  { %4369 = vsyncpa [#allocation3 + $0x1], 1 }
 0x954   :  { %4370 = vsyncpa [#allocation4], 1 }
 0x955   :  { %4372 = vsyncpa [#allocation4 + $0x1], 1 }

</bundles_post_ra>
